<compile_context>
chip_gen: v5e
topology: v5e:2x2
jax: 0.10.0
libtpu: 0.0.40
codegen_flags: <defaults>
</compile_context>

<pallas_src>
import jax
import jax.numpy as jnp
from jax.experimental import pallas as pl
from jax.experimental.pallas import tpu as pltpu

HIDDEN = 1024  # fixed by the module definition


def _round_up(n: int, m: int) -> int:
    return ((n + m - 1) // m) * m


def adv_mlp_kernel(x_ref, w1_ref, b1_ref, w2_ref, b2_ref, w3_ref, b3_ref, o_ref):
    # GRL is identity in the forward pass.
    # Cast to bf16 in-kernel (cheap VPU op) so the MXU runs at bf16 rate while
    # x is DMA'd only once, straight from the caller's f32 buffer.
    x = x_ref[...].astype(jnp.bfloat16)  # [TB, F]

    # Linear 1 + ReLU (Dropout -> identity in eval mode). bf16 MXU, f32 accum.
    h1 = jnp.dot(x, w1_ref[...], preferred_element_type=jnp.float32) + b1_ref[...]
    h1 = jnp.maximum(h1, 0.0)

    # Linear 2 + ReLU (Dropout -> identity in eval mode).
    h2 = jnp.dot(h1.astype(jnp.bfloat16), w2_ref[...],
                 preferred_element_type=jnp.float32) + b2_ref[...]
    h2 = jnp.maximum(h2, 0.0)

    # Linear 3 (out_features=1): VPU multiply + lane reduction against the
    # [1, 1024] w3 row instead of a lane-padded [1024, 1] MXU pass.
    logits = jnp.sum(h2 * w3_ref[...], axis=-1, keepdims=True) + b3_ref[...]

    # Sigmoid: exp + approximate reciprocal, both land on the EUP slot.
    o_ref[...] = pl.reciprocal(1.0 + jnp.exp(-logits), approx=True).astype(o_ref.dtype)


def adversarial_network_forward(x, params, *, tile_b: int = 256):
    """x: [B, in_feature] float32. Returns [B, 1] float32 in (0, 1)."""
    w1, b1, w2, b2, w3_row, b3 = params
    B, F = x.shape

    # Batch tile: multiple of 8 sublanes, capped at tile_b rows; pad B up to a
    # whole number of tiles (padded rows are sliced off at the end).
    TB = min(tile_b, _round_up(B, 8))
    Bp = _round_up(B, TB)
    if Bp != B:
        x = jnp.pad(x, ((0, Bp - B), (0, 0)))

    grid = (Bp // TB,)
    tile = lambda i: (i, 0)    # x / out tiles walk the batch
    const = lambda i: (0, 0)   # weights & biases stay resident in VMEM

    # NOTE: for very large in_feature, pipeline_mode=pl.Buffered(1) on the
    # weight specs would halve their VMEM since their block index is constant.
    out = pl.pallas_call(
        adv_mlp_kernel,
        out_shape=jax.ShapeDtypeStruct((Bp, 1), jnp.float32),
        grid_spec=pltpu.PrefetchScalarGridSpec(
            num_scalar_prefetch=0,
            grid=grid,
            in_specs=[
                pl.BlockSpec((TB, F), tile),            # x        (f32, cast in-kernel)
                pl.BlockSpec((F, HIDDEN), const),       # W1       (bf16)
                pl.BlockSpec((1, HIDDEN), const),       # b1       (f32)
                pl.BlockSpec((HIDDEN, HIDDEN), const),  # W2       (bf16)
                pl.BlockSpec((1, HIDDEN), const),       # b2       (f32)
                pl.BlockSpec((1, HIDDEN), const),       # w3 row   (f32)
                pl.BlockSpec((1, 1), const),            # b3       (f32)
            ],
            out_specs=pl.BlockSpec((TB, 1), tile),
        ),
        compiler_params=pltpu.CompilerParams(
            dimension_semantics=("parallel",),  # batch tiles are independent
            vmem_limit_bytes=32 << 20,
        ),
    )(x, w1, b1, w2, b2, w3_row, b3)
    return out[:B]


def init_params(key, in_feature):
    """PyTorch nn.Linear default init: U(-1/sqrt(fan_in), 1/sqrt(fan_in)).

    W1/W2 stored as [in, out] bf16 (MXU operands); biases f32; the final
    layer's weight is stored as a [1, 1024] f32 row (PyTorch layout)."""
    ks = jax.random.split(key, 6)

    def lin(kw, kb, fan_in, fan_out, w_dtype):
        bound = 1.0 / jnp.sqrt(fan_in)
        w = jax.random.uniform(kw, (fan_in, fan_out), jnp.float32, -bound, bound)
        b = jax.random.uniform(kb, (1, fan_out), jnp.float32, -bound, bound)
        return w.astype(w_dtype), b

    w1, b1 = lin(ks[0], ks[1], in_feature, HIDDEN, jnp.bfloat16)
    w2, b2 = lin(ks[2], ks[3], HIDDEN, HIDDEN, jnp.bfloat16)
    w3, b3 = lin(ks[4], ks[5], HIDDEN, 1, jnp.float32)
    w3_row = w3.T  # [1, 1024] row for the VPU multiply-reduce
    return (w1, b1, w2, b2, w3_row, b3)


if __name__ == "__main__":
    key = jax.random.PRNGKey(0)
    k_x, k_p = jax.random.split(key)

    batch = 12        # not a multiple of the 8-row sublane tile -> exercises padding
    in_feature = 32

    x = jax.random.normal(k_x, (batch, in_feature), jnp.float32)
    params = init_params(k_p, in_feature)

    y = adversarial_network_forward(x, params)
    y = jax.block_until_ready(y)

    # Sanity: shape [B, 1], values in (0, 1) from the sigmoid.
    assert y.shape == (batch, 1)
    assert bool(jnp.all((y > 0.0) & (y < 1.0)))

    # Cross-check against a plain-JAX reference of the same (bf16-weight) math.
    w1, b1, w2, b2, w3_row, b3 = params
    xb = x.astype(jnp.bfloat16)
    h1 = jnp.maximum(jnp.dot(xb, w1, preferred_element_type=jnp.float32) + b1, 0.0)
    h2 = jnp.maximum(
        jnp.dot(h1.astype(jnp.bfloat16), w2, preferred_element_type=jnp.float32) + b2,
        0.0)
    logits = jnp.sum(h2 * w3_row, axis=-1, keepdims=True) + b3
    y_ref = jax.nn.sigmoid(logits)
    assert bool(jnp.allclose(y, y_ref, atol=2e-3, rtol=2e-3))

    print("KERNEL_OK")
</pallas_src>

<mosaic_0001>
module attributes {stable_mosaic.version = 11 : i64} {
  func.func @adv_mlp_kernel(%arg0: i32, %arg1: memref<16x32xf32, #tpu.memory_space<vmem>>, %arg2: memref<32x1024xbf16, #tpu.memory_space<vmem>>, %arg3: memref<1x1024xf32, #tpu.memory_space<vmem>>, %arg4: memref<1024x1024xbf16, #tpu.memory_space<vmem>>, %arg5: memref<1x1024xf32, #tpu.memory_space<vmem>>, %arg6: memref<1x1024xf32, #tpu.memory_space<vmem>>, %arg7: memref<1x1xf32, #tpu.memory_space<vmem>>, %arg8: memref<16x1xf32, #tpu.memory_space<vmem>>) attributes {dimension_semantics = [#tpu.dimension_semantics<parallel>], iteration_bounds = array<i64: 1>, scalar_prefetch = 0 : i64, scratch_operands = 0 : i64, tpu.core_type = #tpu.core_type<tc>, window_params = [{transform_indices = @transform_0, window_bounds = array<i64: 16, 32>}, {pipeline_mode = #tpu.pipeline_mode<synchronous>, transform_indices = @transform_1, window_bounds = array<i64: 32, 1024>}, {pipeline_mode = #tpu.pipeline_mode<synchronous>, transform_indices = @transform_2, window_bounds = array<i64: 1, 1024>}, {pipeline_mode = #tpu.pipeline_mode<synchronous>, transform_indices = @transform_3, window_bounds = array<i64: 1024, 1024>}, {pipeline_mode = #tpu.pipeline_mode<synchronous>, transform_indices = @transform_4, window_bounds = array<i64: 1, 1024>}, {pipeline_mode = #tpu.pipeline_mode<synchronous>, transform_indices = @transform_5, window_bounds = array<i64: 1, 1024>}, {pipeline_mode = #tpu.pipeline_mode<synchronous>, transform_indices = @transform_6, window_bounds = array<i64: 1, 1>}, {transform_indices = @transform_7, window_bounds = array<i64: 16, 1>}]} {
    %c0 = arith.constant 0 : index
    %c0_0 = arith.constant 0 : index
    %0 = vector.load %arg1[%c0, %c0_0] : memref<16x32xf32, #tpu.memory_space<vmem>>, vector<16x32xf32>
    %1 = arith.truncf %0 : vector<16x32xf32> to vector<16x32xbf16>
    %c0_1 = arith.constant 0 : index
    %c0_2 = arith.constant 0 : index
    %2 = vector.load %arg2[%c0_1, %c0_2] : memref<32x1024xbf16, #tpu.memory_space<vmem>>, vector<32x1024xbf16>
    %cst = arith.constant dense<0.000000e+00> : vector<16x1024xf32>
    %3 = tpu.matmul %1, %2, %cst {dimension_numbers = #tpu.dot_dimension_numbers<[1], [0], [0], [1], [0, 0, 1, 1], [], []>} : vector<16x32xbf16>, vector<32x1024xbf16>, vector<16x1024xf32> -> vector<16x1024xf32>
    %c0_3 = arith.constant 0 : index
    %c0_4 = arith.constant 0 : index
    %4 = vector.load %arg3[%c0_3, %c0_4] : memref<1x1024xf32, #tpu.memory_space<vmem>>, vector<1x1024xf32>
    %5 = vector.broadcast %4 : vector<1x1024xf32> to vector<16x1024xf32>
    %6 = arith.addf %3, %5 : vector<16x1024xf32>
    %cst_5 = arith.constant 0.000000e+00 : f32
    %7 = vector.broadcast %cst_5 : f32 to vector<16x1024xf32>
    %8 = arith.maximumf %6, %7 : vector<16x1024xf32>
    %9 = arith.truncf %8 : vector<16x1024xf32> to vector<16x1024xbf16>
    %c0_6 = arith.constant 0 : index
    %c0_7 = arith.constant 0 : index
    %10 = vector.load %arg4[%c0_6, %c0_7] : memref<1024x1024xbf16, #tpu.memory_space<vmem>>, vector<1024x1024xbf16>
    %cst_8 = arith.constant dense<0.000000e+00> : vector<16x1024xf32>
    %11 = tpu.matmul %9, %10, %cst_8 {dimension_numbers = #tpu.dot_dimension_numbers<[1], [0], [0], [1], [0, 0, 1, 1], [], []>} : vector<16x1024xbf16>, vector<1024x1024xbf16>, vector<16x1024xf32> -> vector<16x1024xf32>
    %c0_9 = arith.constant 0 : index
    %c0_10 = arith.constant 0 : index
    %12 = vector.load %arg5[%c0_9, %c0_10] : memref<1x1024xf32, #tpu.memory_space<vmem>>, vector<1x1024xf32>
    %13 = vector.broadcast %12 : vector<1x1024xf32> to vector<16x1024xf32>
    %14 = arith.addf %11, %13 : vector<16x1024xf32>
    %cst_11 = arith.constant 0.000000e+00 : f32
    %15 = vector.broadcast %cst_11 : f32 to vector<16x1024xf32>
    %16 = arith.maximumf %14, %15 : vector<16x1024xf32>
    %c0_12 = arith.constant 0 : index
    %c0_13 = arith.constant 0 : index
    %17 = vector.load %arg6[%c0_12, %c0_13] : memref<1x1024xf32, #tpu.memory_space<vmem>>, vector<1x1024xf32>
    %18 = vector.broadcast %17 : vector<1x1024xf32> to vector<16x1024xf32>
    %19 = arith.mulf %16, %18 : vector<16x1024xf32>
    %cst_14 = arith.constant dense<0.000000e+00> : vector<16xf32>
    %20 = vector.multi_reduction <add>, %19, %cst_14 [1] : vector<16x1024xf32> to vector<16xf32>
    %21 = vector.shape_cast %20 : vector<16xf32> to vector<16x1xf32>
    %c0_15 = arith.constant 0 : index
    %c0_16 = arith.constant 0 : index
    %22 = vector.load %arg7[%c0_15, %c0_16] : memref<1x1xf32, #tpu.memory_space<vmem>>, vector<1x1xf32>
    %23 = vector.broadcast %22 : vector<1x1xf32> to vector<16x1xf32>
    %24 = arith.addf %21, %23 : vector<16x1xf32>
    %cst_17 = arith.constant 0.000000e+00 : f32
    %25 = vector.broadcast %cst_17 : f32 to vector<16x1xf32>
    %26 = arith.subf %25, %24 : vector<16x1xf32>
    %27 = math.exp %26 : vector<16x1xf32>
    %cst_18 = arith.constant 1.000000e+00 : f32
    %28 = vector.broadcast %cst_18 : f32 to vector<16x1xf32>
    %29 = arith.addf %28, %27 : vector<16x1xf32>
    %30 = tpu.reciprocal %29 {approx = true} : vector<16x1xf32> -> vector<16x1xf32>
    %c0_19 = arith.constant 0 : index
    %c0_20 = arith.constant 0 : index
    %31 = vector.load %arg8[%c0_19, %c0_20] : memref<16x1xf32, #tpu.memory_space<vmem>>, vector<16x1xf32>
    tpu.vector_store %arg8[%c0_19, %c0_20], %30 {strides = array<i32>} : memref<16x1xf32, #tpu.memory_space<vmem>>, vector<16x1xf32>,
    return
  }
  func.func @transform_0(%arg0: i32) -> (i32, i32) {
    %c0_i32 = arith.constant 0 : i32
    %c0_i32_0 = arith.constant 0 : i32
    return %arg0, %c0_i32 : i32, i32
  }
  func.func @transform_1(%arg0: i32) -> (i32, i32) {
    %c0_i32 = arith.constant 0 : i32
    %c0_i32_0 = arith.constant 0 : i32
    %c0_i32_1 = arith.constant 0 : i32
    return %c0_i32, %c0_i32_0 : i32, i32
  }
  func.func @transform_2(%arg0: i32) -> (i32, i32) {
    %c0_i32 = arith.constant 0 : i32
    %c0_i32_0 = arith.constant 0 : i32
    %c0_i32_1 = arith.constant 0 : i32
    return %c0_i32, %c0_i32_0 : i32, i32
  }
  func.func @transform_3(%arg0: i32) -> (i32, i32) {
    %c0_i32 = arith.constant 0 : i32
    %c0_i32_0 = arith.constant 0 : i32
    %c0_i32_1 = arith.constant 0 : i32
    return %c0_i32, %c0_i32_0 : i32, i32
  }
  func.func @transform_4(%arg0: i32) -> (i32, i32) {
    %c0_i32 = arith.constant 0 : i32
    %c0_i32_0 = arith.constant 0 : i32
    %c0_i32_1 = arith.constant 0 : i32
    return %c0_i32, %c0_i32_0 : i32, i32
  }
  func.func @transform_5(%arg0: i32) -> (i32, i32) {
    %c0_i32 = arith.constant 0 : i32
    %c0_i32_0 = arith.constant 0 : i32
    %c0_i32_1 = arith.constant 0 : i32
    return %c0_i32, %c0_i32_0 : i32, i32
  }
  func.func @transform_6(%arg0: i32) -> (i32, i32) {
    %c0_i32 = arith.constant 0 : i32
    %c0_i32_0 = arith.constant 0 : i32
    %c0_i32_1 = arith.constant 0 : i32
    return %c0_i32, %c0_i32_0 : i32, i32
  }
  func.func @transform_7(%arg0: i32) -> (i32, i32) {
    %c0_i32 = arith.constant 0 : i32
    %c0_i32_0 = arith.constant 0 : i32
    return %arg0, %c0_i32 : i32, i32
  }
}

</mosaic_0001>

<bundles_post_ra>
// kernel: tpu_custom_call.1
= control target key start
LH: loop header
LB: loop body
LE: loop exit
PB: predicated region body
PF: predicated region fallthrough
CT: control target
= control target key end

     0   :  { %s7617_s0 = inlined_call_operand.hbm [shape: f32[16,32], index: 0, kind: input, shape index: {}]   ;;  %s7618_s1 = inlined_call_operand.hbm [shape: bf16[32,1024], index: 1, kind: input, shape index: {}]   ;;  %s7619_s2 = inlined_call_operand.hbm [shape: f32[1,1024], index: 2, kind: input, shape index: {}]   ;;  %s7620_s3 = inlined_call_operand.hbm [shape: bf16[1024,1024], index: 3, kind: input, shape index: {}]   ;;  %s7621_s4 = inlined_call_operand.hbm [shape: f32[1,1024], index: 4, kind: input, shape index: {}]   ;;  %s7622_s5 = inlined_call_operand.hbm [shape: f32[1,1024], index: 5, kind: input, shape index: {}]   ;;  %s7623_s6 = inlined_call_operand.<no memory space> [shape: f32[1,1], index: 6, kind: input, shape index: {}]   ;;  %s7624_s7 = inlined_call_operand.vmem [shape: f32[16,1], index: 7, kind: output, shape index: {}]  }
   0x1   :  { %v12_v0 = vstv %s7623_s6 }
   0x2   :  { %13 = vst [vmem:[#allocation2] sm:$0x1] %v12_v0 }
   0x3   :  { %14 = vsyncpa [#allocation4], 0 }
   0x4   :  { %15 = vsyncpa [#allocation6], 0 }
   0x5   :  { %16 = vsyncpa [#allocation9], 0  ;;  %s35_s28 = sshll.u32 %s7618_s1, 4  ;;  %s36_s28 = int_to_ptr.hbm [resolvable:$true] %s35_s28 }
   0x6   :  { %17 = vsyncpa [#allocation12], 0  ;;  %s7278_s29 = smov [#allocation5]   ;;  %s59_s10 = sshll.u32 %s7620_s3, 4  ;;  %s60_s10 = int_to_ptr.hbm [resolvable:$true] %s59_s10 }
   0x7   :  { %s37_s30 = sshll.u32 %s7278_s29, 4  ;;  %s7279_s11 = smov 512   ;;  %s38_s30 = int_to_ptr.vmem [resolvable:$true] %s37_s30 }
   0x8   :  { %s7280_s12 = smov 32   ;;  %s7281_s6 = smov [#allocation8]  }
   0x9   :  { %43 = dma.hbm_to_vmem [thread:$0]  %s36_s28, 2048, %s38_s30, [#allocation6], %s7279_s11, %s7279_s11, %s7280_s12  }
   0xa   :  { %s61_s13 = sshll.u32 %s7281_s6, 4  ;;  %s22_s16 = sshll.u32 %s7617_s0, 4  ;;  %s62_s13 = int_to_ptr.vmem [resolvable:$true] %s61_s13  ;;  %s23_s16 = int_to_ptr.hbm [resolvable:$true] %s22_s16 }
   0xb   :  { %67 = dma.hbm_to_vmem [thread:$0]  %s60_s10, 65536, %s62_s13, [#allocation9], %s7279_s11, %s7279_s11, %s7280_s12  }
   0xc   :  { %s7282_s1 = smov [#allocation3]   ;;  %s49_s3 = sshll.u32 %s7619_s2, 4  ;;  %s50_s3 = int_to_ptr.hbm [resolvable:$true] %s49_s3 }
   0xd   :  { %s24_s17 = sshll.u32 %s7282_s1, 4  ;;  %s7283_s20 = smov 128   ;;  %s25_s17 = int_to_ptr.vmem [resolvable:$true] %s24_s17 }
   0xe   :  { %s7284_s21 = smov 8   ;;  %s7285_s22 = smov [#allocation7]  }
   0xf   :  { %30 = dma.hbm_to_vmem [thread:$0]  %s23_s16, 256, %s25_s17, [#allocation4], %s7283_s20, %s7283_s20, %s7284_s21  }
  0x10   :  { %s51_s23 = sshll.u32 %s7285_s22, 4  ;;  %s73_s0 = sshll.u32 %s7621_s4, 4  ;;  %s52_s23 = int_to_ptr.vmem [resolvable:$true] %s51_s23  ;;  %s74_s0 = int_to_ptr.hbm [resolvable:$true] %s73_s0 }
  0x11   :  { %54 = dma.hbm_to_vmem [thread:$0]  %s50_s3, 128, %s52_s23, [#allocation6]  }
  0x12   :  { %s84_s28 = sshll.u32 %s7622_s5, 4  ;;  %s7286_s29 = smov [#allocation10]   ;;  %s85_s28 = int_to_ptr.hbm [resolvable:$true] %s84_s28 }
  0x13   :  { %s75_s30 = sshll.u32 %s7286_s29, 4  ;;  %s7287_s2 = smov [#allocation11]   ;;  %s76_s30 = int_to_ptr.vmem [resolvable:$true] %s75_s30 }
  0x14   :  { %78 = dma.hbm_to_vmem [thread:$0]  %s74_s0, 128, %s76_s30, [#allocation9]  }
  0x15   :  { %s86_s8 = sshll.u32 %s7287_s2, 4  ;;  %s87_s8 = int_to_ptr.vmem [resolvable:$true] %s86_s8 }
  0x16   :  { %89 = dma.hbm_to_vmem [thread:$0]  %s85_s28, 128, %s87_s8, [#allocation12]  }
  0x17   :  { %7270 = dma.done.wait [#allocation4], 256  }
  0x18   :  { %7271 = vsyncadd [#allocation4], 4294967040 }
  0x19   :  { %7272 = dma.done.wait [#allocation6], 2176  }
  0x1a   :  { %7273 = vsyncadd [#allocation6], 4294965120 }
  0x1b   :  { %7274 = dma.done.wait [#allocation9], 65664  }
  0x1c   :  { %7275 = vsyncadd [#allocation9], 4294901632 }
  0x1d   :  { %7276 = dma.done.wait [#allocation12], 128  }
  0x1e   :  { %7277 = vsyncadd [#allocation12], 4294967168  ;;  %v4489_v1 = vld [vmem:[#allocation5 + $0x40] sm:$0xf]  ;;  %v6583_v3 = vld [vmem:[#allocation5 + $0x44] sm:$0xf] }
  0x1f   :  { %v6587_v2 = vld [vmem:[#allocation5 + $0x5c] sm:$0xf0]  ;;  %v4491_v5 = vld [vmem:[#allocation5 + $0x60] sm:$0xf0]  ;;  %v4497_v6 = vld [vmem:[#allocation5 + $0x48] sm:$0xf] }
  0x20   :  { %v4490_v4 = vor.u32 %v6587_v2, %v4489_v1  ;;  %v6588_v7 = vld [vmem:[#allocation5 + $0x64] sm:$0xf0]  ;;  %v4494_v8 = vor.u32 %v6583_v3, %v4491_v5  ;;  %v6584_v10 = vld [vmem:[#allocation5 + $0x4c] sm:$0xf]  ;;  %v4457_v12 = vld [vmem:[#allocation5] sm:$0xf] }
  0x21   :  { %v4498_v9 = vor.u32 %v6588_v7, %v4497_v6  ;;  %v4499_v11 = vld [vmem:[#allocation5 + $0x68] sm:$0xf0]  ;;  %v6579_v14 = vld [vmem:[#allocation5 + $0x1c] sm:$0xf0]  ;;  %v6575_v15 = vld [vmem:[#allocation5 + $0x4] sm:$0xf] }
  0x22   :  { %244 = vmatpush.bf16.msra.mxu0 %v4490_v4  ;;  %v4502_v13 = vor.u32 %v6584_v10, %v4499_v11  ;;  %v4459_v16 = vld [vmem:[#allocation5 + $0x20] sm:$0xf0]  ;;  %258 = vmatpush.bf16.msra.mxu1 %v4494_v8  ;;  %v4458_v17 = vor.u32 %v6579_v14, %v4457_v12  ;;  %v4465_v19 = vld [vmem:[#allocation5 + $0x8] sm:$0xf]  ;;  %v6576_v21 = vld [vmem:[#allocation5 + $0xc] sm:$0xf] }
  0x23   :  { %272 = vmatpush.bf16.msra.mxu2 %v4498_v9  ;;  %v4462_v18 = vor.u32 %v6575_v15, %v4459_v16  ;;  %v6580_v20 = vld [vmem:[#allocation5 + $0x24] sm:$0xf0]  ;;  %v4467_v23 = vld [vmem:[#allocation5 + $0x28] sm:$0xf0]  ;;  %v117_v24 = vld [vmem:[#allocation3] sm:$0xff]  ;;  %vm234_vm0 = vcmask 261120  }
  0x24   :  { %286 = vmatpush.bf16.msra.mxu3 %v4502_v13  ;;  %v4466_v22 = vor.u32 %v6580_v20, %v4465_v19  ;;  %v118_v25 = vld [vmem:[#allocation3 + $0x8] sm:$0xff]  ;;  %v4470_v26 = vor.u32 %v6576_v21, %v4467_v23  ;;  %v4505_v28 = vld [vmem:[#allocation5 + $0x50] sm:$0xf]  ;;  %v6585_v30 = vld [vmem:[#allocation5 + $0x54] sm:$0xf]  ;;  %vm4444_vm1 = vcmask 7168  }
  0x25   :  { %v7349_v27 = vpack.c.bf16 %v118_v25, %v117_v24  ;;  %v6589_v29 = vld [vmem:[#allocation5 + $0x6c] sm:$0xf0]  ;;  %v4507_v32 = vld [vmem:[#allocation5 + $0x70] sm:$0xf0]  ;;  %v4513_v33 = vld [vmem:[#allocation5 + $0x58] sm:$0xf] }
  0x26   :  { %245 = vmatpush.bf16.msra.mxu0 %v4458_v17  ;;  %v4506_v31 = vor.u32 %v6589_v29, %v4505_v28  ;;  %v6590_v34 = vld [vmem:[#allocation5 + $0x74] sm:$0xf0]  ;;  %259 = vmatpush.bf16.msra.mxu1 %v4462_v18  ;;  %v4510_v35 = vor.u32 %v6585_v30, %v4507_v32  ;;  %v6586_v37 = vld [vmem:[#allocation5 + $0x5c] sm:$0xf]  ;;  %v4473_v39 = vld [vmem:[#allocation5 + $0x10] sm:$0xf] }
  0x27   :  { %273 = vmatpush.bf16.msra.mxu2 %v4466_v22  ;;  %v4514_v36 = vor.u32 %v6590_v34, %v4513_v33  ;;  %v4515_v38 = vld [vmem:[#allocation5 + $0x78] sm:$0xf0]  ;;  %v6581_v41 = vld [vmem:[#allocation5 + $0x2c] sm:$0xf0]  ;;  %v6577_v42 = vld [vmem:[#allocation5 + $0x14] sm:$0xf] }
  0x28   :  { %287 = vmatpush.bf16.msra.mxu3 %v4470_v26  ;;  %v4518_v40 = vor.u32 %v6586_v37, %v4515_v38  ;;  %v4475_v43 = vld [vmem:[#allocation5 + $0x30] sm:$0xf0]  ;;  %v4474_v44 = vor.u32 %v6581_v41, %v4473_v39  ;;  %v4481_v46 = vld [vmem:[#allocation5 + $0x18] sm:$0xf]  ;;  %v6578_v48 = vld [vmem:[#allocation5 + $0x1c] sm:$0xf] }
  0x29   :  { %4519 = vmatmul.msk.bf16.vlgmr.msra.gmra.mxu0 %vm234_vm0, %v7349_v27  ;;  %v4478_v45 = vor.u32 %v6577_v42, %v4475_v43  ;;  %v6582_v47 = vld [vmem:[#allocation5 + $0x34] sm:$0xf0]  ;;  %4520 = vmatmul.msk.bf16.vlgmr.msra.gmra.mxu1 %vm234_vm0, %v7349_v27  ;;  %v4483_v49 = vld [vmem:[#allocation5 + $0x38] sm:$0xf0]  ;;  %v4753_v50 = vld [vmem:[#allocation8 + $0x1c0] sm:$0xf] }
  0x2a   :  { %300 = vmatpush.bf16.msrb.mxu0 %v4506_v31  ;;  %314 = vmatpush.bf16.msrb.mxu1 %v4510_v35  ;;  %v6651_v51 = vld [vmem:[#allocation8 + $0x1dc] sm:$0xf0]  ;;  %v4482_v52 = vor.u32 %v6582_v47, %v4481_v46  ;;  %v4486_v57 = vor.u32 %v6578_v48, %v4483_v49 }
  0x2b   :  { %4521 = vmatmul.msk.bf16.vlgmr.msra.gmra.mxu2 %vm234_vm0, %v7349_v27  ;;  %4522 = vmatmul.msk.bf16.vlgmr.msra.gmra.mxu3 %vm234_vm0, %v7349_v27  ;;  %v4754_v53 = vor.u32 %v6651_v51, %v4753_v50  ;;  %v5009_v54 = vld [vmem:[#allocation8 + $0x3c0] sm:$0xf] }
  0x2c   :  { %328 = vmatpush.bf16.msrb.mxu2 %v4514_v36  ;;  %v6715_v55 = vld [vmem:[#allocation8 + $0x3dc] sm:$0xf0]  ;;  %342 = vmatpush.bf16.msrb.mxu3 %v4518_v40 }
  0x2d   :  { %v4721_v56 = vld [vmem:[#allocation8 + $0x180] sm:$0xf]  ;;  %v5010_v58 = vor.u32 %v6715_v55, %v5009_v54 }
  0x2e   :  { %301 = vmatpush.bf16.msrb.mxu0 %v4474_v44  ;;  %v6643_v59 = vld [vmem:[#allocation8 + $0x19c] sm:$0xf0]  ;;  %315 = vmatpush.bf16.msrb.mxu1 %v4478_v45 }
  0x2f   :  { %v4977_v60 = vld [vmem:[#allocation8 + $0x380] sm:$0xf]  ;;  %v4722_v62 = vor.u32 %v6643_v59, %v4721_v56 }
  0x30   :  { %v6707_v61 = vld [vmem:[#allocation8 + $0x39c] sm:$0xf0]  ;;  %329 = vmatpush.bf16.msrb.mxu2 %v4482_v52  ;;  %343 = vmatpush.bf16.msrb.mxu3 %v4486_v57 }
  0x31   :  { %v5265_v63 = vld [vmem:[#allocation8 + $0x5c0] sm:$0xf]  ;;  %v4978_v2 = vor.u32 %v6707_v61, %v4977_v60 }
  0x32   :  { %3464 = vmatpush.bf16.msra.mxu0 %v4754_v53  ;;  %v6779_v0 = vld [vmem:[#allocation8 + $0x5dc] sm:$0xf0]  ;;  %3478 = vmatpush.bf16.msra.mxu1 %v5010_v58 }
  0x33   :  { %v5521_v1 = vld [vmem:[#allocation8 + $0x7c0] sm:$0xf]  ;;  %v5266_v3 = vor.u32 %v6779_v0, %v5265_v63 }
  0x34   :  { %v6843_v4 = vld [vmem:[#allocation8 + $0x7dc] sm:$0xf0] }
  0x35   :  { %v4689_v5 = vld [vmem:[#allocation8 + $0x140] sm:$0xf]  ;;  %v5522_v7 = vor.u32 %v6843_v4, %v5521_v1  ;;  %3492 = vmatpush.bf16.msra.mxu2 %v5266_v3 }
  0x36   :  { %v6635_v6 = vld [vmem:[#allocation8 + $0x15c] sm:$0xf0]  ;;  %3465 = vmatpush.bf16.msra.mxu0 %v4722_v62  ;;  %3479 = vmatpush.bf16.msra.mxu1 %v4978_v2 }
  0x37   :  { %v4945_v8 = vld [vmem:[#allocation8 + $0x340] sm:$0xf]  ;;  %3506 = vmatpush.bf16.msra.mxu3 %v5522_v7  ;;  %v4690_v14 = vor.u32 %v6635_v6, %v4689_v5 }
  0x38   :  { %v6699_v9 = vld [vmem:[#allocation8 + $0x35c] sm:$0xf0] }
  0x39   :  { %v5233_v10 = vld [vmem:[#allocation8 + $0x580] sm:$0xf]  ;;  %v4946_v17 = vor.u32 %v6699_v9, %v4945_v8  ;;  %4523 = vmatmul.msk.bf16.vlgmr.msrb.gmra.mxu0 %vm234_vm0, %v7349_v27  ;;  %4524 = vmatmul.msk.bf16.vlgmr.msrb.gmra.mxu1 %vm234_vm0, %v7349_v27 }
  0x3a   :  { %v6771_v11 = vld [vmem:[#allocation8 + $0x59c] sm:$0xf0]  ;;  %3466 = vmatpush.bf16.msra.mxu0 %v4690_v14 }
  0x3b   :  { %v5489_v12 = vld [vmem:[#allocation8 + $0x780] sm:$0xf]  ;;  %v5234_v15 = vor.u32 %v6771_v11, %v5233_v10  ;;  %3480 = vmatpush.bf16.msra.mxu1 %v4946_v17  ;;  %4525 = vmatmul.msk.bf16.vlgmr.msrb.gmra.mxu2 %vm234_vm0, %v7349_v27 }
  0x3c   :  { %v6835_v13 = vld [vmem:[#allocation8 + $0x79c] sm:$0xf0]  ;;  %4526 = vmatmul.msk.bf16.vlgmr.msrb.gmra.mxu3 %vm234_vm0, %v7349_v27 }
  0x3d   :  { %v5490_v16 = vor.u32 %v6835_v13, %v5489_v12  ;;  %v5201_v18 = vld [vmem:[#allocation8 + $0x540] sm:$0xf]  ;;  %3493 = vmatpush.bf16.msra.mxu2 %v5234_v15 }
  0x3e   :  { %v6763_v19 = vld [vmem:[#allocation8 + $0x55c] sm:$0xf0] }
  0x3f   :  { %v5457_v20 = vld [vmem:[#allocation8 + $0x740] sm:$0xf]  ;;  %v5202_v25 = vor.u32 %v6763_v19, %v5201_v18  ;;  %3507 = vmatpush.bf16.msra.mxu3 %v5490_v16 }
  0x40   :  { %v6827_v21 = vld [vmem:[#allocation8 + $0x75c] sm:$0xf0] }
  0x41   :  { %v4657_v22 = vld [vmem:[#allocation8 + $0x100] sm:$0xf]  ;;  %v5458_v28 = vor.u32 %v6827_v21, %v5457_v20  ;;  %3494 = vmatpush.bf16.msra.mxu2 %v5202_v25 }
  0x42   :  { %v6627_v23 = vld [vmem:[#allocation8 + $0x11c] sm:$0xf0] }
  0x43   :  { %v4913_v24 = vld [vmem:[#allocation8 + $0x300] sm:$0xf]  ;;  %v4658_v33 = vor.u32 %v6627_v23, %v4657_v22  ;;  %3508 = vmatpush.bf16.msra.mxu3 %v5458_v28 }
  0x44   :  { %v6691_v26 = vld [vmem:[#allocation8 + $0x31c] sm:$0xf0] }
  0x45   :  { %v5169_v29 = vld [vmem:[#allocation8 + $0x500] sm:$0xf]  ;;  %v4914_v34 = vor.u32 %v6691_v26, %v4913_v24  ;;  %3467 = vmatpush.bf16.msra.mxu0 %v4658_v33 }
  0x46   :  { %v6755_v30 = vld [vmem:[#allocation8 + $0x51c] sm:$0xf0] }
  0x47   :  { %v5425_v31 = vld [vmem:[#allocation8 + $0x700] sm:$0xf]  ;;  %v5170_v38 = vor.u32 %v6755_v30, %v5169_v29  ;;  %3481 = vmatpush.bf16.msra.mxu1 %v4914_v34 }
  0x48   :  { %v6819_v32 = vld [vmem:[#allocation8 + $0x71c] sm:$0xf0] }
  0x49   :  { %v4625_v35 = vld [vmem:[#allocation8 + $0xc0] sm:$0xf]  ;;  %v5426_v40 = vor.u32 %v6819_v32, %v5425_v31  ;;  %3495 = vmatpush.bf16.msra.mxu2 %v5170_v38 }
  0x4a   :  { %v6619_v36 = vld [vmem:[#allocation8 + $0xdc] sm:$0xf0] }
  0x4b   :  { %v4881_v37 = vld [vmem:[#allocation8 + $0x2c0] sm:$0xf]  ;;  %v4626_v45 = vor.u32 %v6619_v36, %v4625_v35  ;;  %3509 = vmatpush.bf16.msra.mxu3 %v5426_v40 }
  0x4c   :  { %v6683_v39 = vld [vmem:[#allocation8 + $0x2dc] sm:$0xf0] }
  0x4d   :  { %v5137_v41 = vld [vmem:[#allocation8 + $0x4c0] sm:$0xf]  ;;  %v4882_v46 = vor.u32 %v6683_v39, %v4881_v37  ;;  %3468 = vmatpush.bf16.msra.mxu0 %v4626_v45 }
  0x4e   :  { %v6747_v42 = vld [vmem:[#allocation8 + $0x4dc] sm:$0xf0] }
  0x4f   :  { %v5393_v43 = vld [vmem:[#allocation8 + $0x6c0] sm:$0xf]  ;;  %v5138_v50 = vor.u32 %v6747_v42, %v5137_v41  ;;  %3482 = vmatpush.bf16.msra.mxu1 %v4882_v46 }
  0x50   :  { %v6811_v44 = vld [vmem:[#allocation8 + $0x6dc] sm:$0xf0] }
  0x51   :  { %v4593_v47 = vld [vmem:[#allocation8 + $0x80] sm:$0xf]  ;;  %v5394_v52 = vor.u32 %v6811_v44, %v5393_v43  ;;  %3496 = vmatpush.bf16.msra.mxu2 %v5138_v50 }
  0x52   :  { %v6611_v48 = vld [vmem:[#allocation8 + $0x9c] sm:$0xf0] }
  0x53   :  { %v4849_v49 = vld [vmem:[#allocation8 + $0x280] sm:$0xf]  ;;  %v4594_v57 = vor.u32 %v6611_v48, %v4593_v47  ;;  %3510 = vmatpush.bf16.msra.mxu3 %v5394_v52 }
  0x54   :  { %v6675_v51 = vld [vmem:[#allocation8 + $0x29c] sm:$0xf0] }
  0x55   :  { %v5105_v53 = vld [vmem:[#allocation8 + $0x480] sm:$0xf]  ;;  %v4850_v27 = vor.u32 %v6675_v51, %v4849_v49  ;;  %3469 = vmatpush.bf16.msra.mxu0 %v4594_v57 }
  0x56   :  { %v6739_v54 = vld [vmem:[#allocation8 + $0x49c] sm:$0xf0] }
  0x57   :  { %v5361_v55 = vld [vmem:[#allocation8 + $0x680] sm:$0xf]  ;;  %v5106_v61 = vor.u32 %v6739_v54, %v5105_v53  ;;  %3483 = vmatpush.bf16.msra.mxu1 %v4850_v27 }
  0x58   :  { %v6803_v56 = vld [vmem:[#allocation8 + $0x69c] sm:$0xf0] }
  0x59   :  { %v4561_v58 = vld [vmem:[#allocation8 + $0x40] sm:$0xf]  ;;  %v5362_v63 = vor.u32 %v6803_v56, %v5361_v55  ;;  %3497 = vmatpush.bf16.msra.mxu2 %v5106_v61 }
  0x5a   :  { %v6603_v59 = vld [vmem:[#allocation8 + $0x5c] sm:$0xf0] }
  0x5b   :  { %v4817_v60 = vld [vmem:[#allocation8 + $0x240] sm:$0xf]  ;;  %v4562_v4 = vor.u32 %v6603_v59, %v4561_v58  ;;  %3511 = vmatpush.bf16.msra.mxu3 %v5362_v63 }
  0x5c   :  { %v6667_v62 = vld [vmem:[#allocation8 + $0x25c] sm:$0xf0] }
  0x5d   :  { %v5073_v0 = vld [vmem:[#allocation8 + $0x440] sm:$0xf]  ;;  %v4818_v7 = vor.u32 %v6667_v62, %v4817_v60  ;;  %3470 = vmatpush.bf16.msra.mxu0 %v4562_v4 }
  0x5e   :  { %v6731_v1 = vld [vmem:[#allocation8 + $0x45c] sm:$0xf0] }
  0x5f   :  { %v5329_v2 = vld [vmem:[#allocation8 + $0x640] sm:$0xf]  ;;  %v5074_v11 = vor.u32 %v6731_v1, %v5073_v0  ;;  %3484 = vmatpush.bf16.msra.mxu1 %v4818_v7 }
  0x60   :  { %v6795_v3 = vld [vmem:[#allocation8 + $0x65c] sm:$0xf0] }
  0x61   :  { %v4529_v5 = vld [vmem:[#allocation8] sm:$0xf]  ;;  %v5330_v15 = vor.u32 %v6795_v3, %v5329_v2  ;;  %3498 = vmatpush.bf16.msra.mxu2 %v5074_v11 }
  0x62   :  { %v6595_v6 = vld [vmem:[#allocation8 + $0x1c] sm:$0xf0] }
  0x63   :  { %v4785_v8 = vld [vmem:[#allocation8 + $0x200] sm:$0xf]  ;;  %v4530_v19 = vor.u32 %v6595_v6, %v4529_v5  ;;  %3512 = vmatpush.bf16.msra.mxu3 %v5330_v15 }
  0x64   :  { %v6659_v9 = vld [vmem:[#allocation8 + $0x21c] sm:$0xf0] }
  0x65   :  { %v5777_v10 = vld [vmem:[#allocation8 + $0x9c0] sm:$0xf]  ;;  %v4786_v23 = vor.u32 %v6659_v9, %v4785_v8  ;;  %3471 = vmatpush.bf16.msra.mxu0 %v4530_v19 }
  0x66   :  { %v6907_v12 = vld [vmem:[#allocation8 + $0x9dc] sm:$0xf0] }
  0x67   :  { %v6033_v13 = vld [vmem:[#allocation8 + $0xbc0] sm:$0xf]  ;;  %v5778_v24 = vor.u32 %v6907_v12, %v5777_v10  ;;  %3485 = vmatpush.bf16.msra.mxu1 %v4786_v23 }
  0x68   :  { %v6971_v14 = vld [vmem:[#allocation8 + $0xbdc] sm:$0xf0] }
  0x69   :  { %v5041_v16 = vld [vmem:[#allocation8 + $0x400] sm:$0xf]  ;;  %v6034_v28 = vor.u32 %v6971_v14, %v6033_v13  ;;  %3520 = vmatpush.bf16.msrb.mxu0 %v5778_v24 }
  0x6a   :  { %v6723_v17 = vld [vmem:[#allocation8 + $0x41c] sm:$0xf0] }
  0x6b   :  { %v5297_v18 = vld [vmem:[#allocation8 + $0x600] sm:$0xf]  ;;  %v5042_v31 = vor.u32 %v6723_v17, %v5041_v16  ;;  %3534 = vmatpush.bf16.msrb.mxu1 %v6034_v28 }
  0x6c   :  { %v6787_v20 = vld [vmem:[#allocation8 + $0x61c] sm:$0xf0] }
  0x6d   :  { %v6289_v21 = vld [vmem:[#allocation8 + $0xdc0] sm:$0xf]  ;;  %v5298_v34 = vor.u32 %v6787_v20, %v5297_v18  ;;  %3499 = vmatpush.bf16.msra.mxu2 %v5042_v31 }
  0x6e   :  { %v7035_v22 = vld [vmem:[#allocation8 + $0xddc] sm:$0xf0] }
  0x6f   :  { %v6545_v25 = vld [vmem:[#allocation8 + $0xfc0] sm:$0xf]  ;;  %v6290_v35 = vor.u32 %v7035_v22, %v6289_v21  ;;  %3513 = vmatpush.bf16.msra.mxu3 %v5298_v34 }
  0x70   :  { %v7099_v26 = vld [vmem:[#allocation8 + $0xfdc] sm:$0xf0] }
  0x71   :  { %v5745_v29 = vld [vmem:[#allocation8 + $0x980] sm:$0xf]  ;;  %v6546_v36 = vor.u32 %v7099_v26, %v6545_v25  ;;  %3548 = vmatpush.bf16.msrb.mxu2 %v6290_v35 }
  0x72   :  { %v6899_v30 = vld [vmem:[#allocation8 + $0x99c] sm:$0xf0] }
  0x73   :  { %v6001_v32 = vld [vmem:[#allocation8 + $0xb80] sm:$0xf]  ;;  %v5746_v39 = vor.u32 %v6899_v30, %v5745_v29  ;;  %3562 = vmatpush.bf16.msrb.mxu3 %v6546_v36 }
  0x74   :  { %v6963_v33 = vld [vmem:[#allocation8 + $0xb9c] sm:$0xf0] }
  0x75   :  { %v6257_v37 = vld [vmem:[#allocation8 + $0xd80] sm:$0xf]  ;;  %v6002_v42 = vor.u32 %v6963_v33, %v6001_v32  ;;  %3521 = vmatpush.bf16.msrb.mxu0 %v5746_v39 }
  0x76   :  { %v7027_v38 = vld [vmem:[#allocation8 + $0xd9c] sm:$0xf0] }
  0x77   :  { %v6513_v40 = vld [vmem:[#allocation8 + $0xf80] sm:$0xf]  ;;  %v6258_v47 = vor.u32 %v7027_v38, %v6257_v37  ;;  %3535 = vmatpush.bf16.msrb.mxu1 %v6002_v42 }
  0x78   :  { %v7091_v41 = vld [vmem:[#allocation8 + $0xf9c] sm:$0xf0] }
  0x79   :  { %v5713_v43 = vld [vmem:[#allocation8 + $0x940] sm:$0xf]  ;;  %v6514_v48 = vor.u32 %v7091_v41, %v6513_v40  ;;  %3549 = vmatpush.bf16.msrb.mxu2 %v6258_v47 }
  0x7a   :  { %v6891_v44 = vld [vmem:[#allocation8 + $0x95c] sm:$0xf0] }
  0x7b   :  { %v5969_v45 = vld [vmem:[#allocation8 + $0xb40] sm:$0xf]  ;;  %v5714_v49 = vor.u32 %v6891_v44, %v5713_v43  ;;  %3563 = vmatpush.bf16.msrb.mxu3 %v6514_v48 }
  0x7c   :  { %v6955_v46 = vld [vmem:[#allocation8 + $0xb5c] sm:$0xf0] }
  0x7d   :  { %v5970_v50 = vor.u32 %v6955_v46, %v5969_v45  ;;  %v5681_v51 = vld [vmem:[#allocation8 + $0x900] sm:$0xf]  ;;  %3522 = vmatpush.bf16.msrb.mxu0 %v5714_v49 }
  0x7e   :  { %v6883_v52 = vld [vmem:[#allocation8 + $0x91c] sm:$0xf0] }
  0x7f   :  { %v5937_v53 = vld [vmem:[#allocation8 + $0xb00] sm:$0xf]  ;;  %v5682_v55 = vor.u32 %v6883_v52, %v5681_v51  ;;  %3536 = vmatpush.bf16.msrb.mxu1 %v5970_v50 }
  0x80   :  { %v6947_v54 = vld [vmem:[#allocation8 + $0xb1c] sm:$0xf0] }
  0x81   :  { %v5938_v56 = vor.u32 %v6947_v54, %v5937_v53  ;;  %3523 = vmatpush.bf16.msrb.mxu0 %v5682_v55  ;;  %v6225_v57 = vld [vmem:[#allocation8 + $0xd40] sm:$0xf]  ;;  %v7367_v53 = vld [vmem:[#allocation7] sm:$0xff] }
  0x82   :  { %v7019_v27 = vld [vmem:[#allocation8 + $0xd5c] sm:$0xf0]  ;;  %v138_v55 = vperm.slane %v7367_v53, 0 }
  0x83   :  { %3537 = vmatpush.bf16.msrb.mxu1 %v5938_v56  ;;  %v6481_v58 = vld [vmem:[#allocation8 + $0xf40] sm:$0xf]  ;;  %v6226_v59 = vor.u32 %v7019_v27, %v6225_v57  ;;  %v139_v57 = vperm.slane %v7367_v53, 1 }
  0x84   :  { %v7083_v60 = vld [vmem:[#allocation8 + $0xf5c] sm:$0xf0] }
  0x85   :  { %v6482_v61 = vor.u32 %v7083_v60, %v6481_v58  ;;  %v5649_v62 = vld [vmem:[#allocation8 + $0x8c0] sm:$0xf]  ;;  %3550 = vmatpush.bf16.msrb.mxu2 %v6226_v59 }
  0x86   :  { %v6875_v63 = vld [vmem:[#allocation8 + $0x8dc] sm:$0xf0] }
  0x87   :  { %v5905_v0 = vld [vmem:[#allocation8 + $0xac0] sm:$0xf]  ;;  %v5650_v1 = vor.u32 %v6875_v63, %v5649_v62  ;;  %3564 = vmatpush.bf16.msrb.mxu3 %v6482_v61 }
  0x88   :  { %v6939_v2 = vld [vmem:[#allocation8 + $0xadc] sm:$0xf0] }
  0x89   :  { %v5906_v3 = vor.u32 %v6939_v2, %v5905_v0  ;;  %v6193_v4 = vld [vmem:[#allocation8 + $0xd00] sm:$0xf]  ;;  %3524 = vmatpush.bf16.msrb.mxu0 %v5650_v1  ;;  %v6647_v1 = vld [vmem:[#allocation8 + $0x1c4] sm:$0xf] }
  0x8a   :  { %v7011_v5 = vld [vmem:[#allocation8 + $0xd1c] sm:$0xf0]  ;;  %v4755_v2 = vld [vmem:[#allocation8 + $0x1e0] sm:$0xf0] }
  0x8b   :  { %v6194_v6 = vor.u32 %v7011_v5, %v6193_v4  ;;  %v6449_v7 = vld [vmem:[#allocation8 + $0xf00] sm:$0xf]  ;;  %3538 = vmatpush.bf16.msrb.mxu1 %v5906_v3  ;;  %v140_v4 = vperm.slane %v7367_v53, 2 }
  0x8c   :  { %v7075_v8 = vld [vmem:[#allocation8 + $0xf1c] sm:$0xf0] }
  0x8d   :  { %v6450_v9 = vor.u32 %v7075_v8, %v6449_v7  ;;  %v5617_v10 = vld [vmem:[#allocation8 + $0x880] sm:$0xf]  ;;  %3551 = vmatpush.bf16.msrb.mxu2 %v6194_v6  ;;  %v6711_v6 = vld [vmem:[#allocation8 + $0x3c4] sm:$0xf]  ;;  %v141_v8 = vperm.slane %v7367_v53, 3 }
  0x8e   :  { %v6867_v11 = vld [vmem:[#allocation8 + $0x89c] sm:$0xf0]  ;;  %v5011_v7 = vld [vmem:[#allocation8 + $0x3e0] sm:$0xf0] }
  0x8f   :  { %v5873_v12 = vld [vmem:[#allocation8 + $0xa80] sm:$0xf]  ;;  %v5618_v13 = vor.u32 %v6867_v11, %v5617_v10  ;;  %3565 = vmatpush.bf16.msrb.mxu3 %v6450_v9  ;;  %v4758_v11 = vor.u32 %v6647_v1, %v4755_v2 }
  0x90   :  { %v6931_v14 = vld [vmem:[#allocation8 + $0xa9c] sm:$0xf0] }
  0x91   :  { %v5874_v15 = vor.u32 %v6931_v14, %v5873_v12  ;;  %v6161_v16 = vld [vmem:[#allocation8 + $0xcc0] sm:$0xf]  ;;  %3525 = vmatpush.bf16.msrb.mxu0 %v5618_v13  ;;  %v5014_v13 = vor.u32 %v6711_v6, %v5011_v7  ;;  %v6639_v14 = vld [vmem:[#allocation8 + $0x184] sm:$0xf] }
  0x92   :  { %v7003_v17 = vld [vmem:[#allocation8 + $0xcdc] sm:$0xf0]  ;;  %v5459_v6 = vld [vmem:[#allocation8 + $0x760] sm:$0xf0] }
  0x93   :  { %v6417_v18 = vld [vmem:[#allocation8 + $0xec0] sm:$0xf]  ;;  %v6162_v19 = vor.u32 %v7003_v17, %v6161_v16  ;;  %3539 = vmatpush.bf16.msrb.mxu1 %v5874_v15  ;;  %v4723_v15 = vld [vmem:[#allocation8 + $0x1a0] sm:$0xf0] }
  0x94   :  { %v7067_v20 = vld [vmem:[#allocation8 + $0xedc] sm:$0xf0] }
  0x95   :  { %v6418_v21 = vor.u32 %v7067_v20, %v6417_v18  ;;  %v5585_v22 = vld [vmem:[#allocation8 + $0x840] sm:$0xf]  ;;  %3552 = vmatpush.bf16.msrb.mxu2 %v6162_v19  ;;  %v6703_v18 = vld [vmem:[#allocation8 + $0x384] sm:$0xf] }
  0x96   :  { %v6859_v23 = vld [vmem:[#allocation8 + $0x85c] sm:$0xf0]  ;;  %v4979_v19 = vld [vmem:[#allocation8 + $0x3a0] sm:$0xf0] }
  0x97   :  { %v5586_v24 = vor.u32 %v6859_v23, %v5585_v22  ;;  %v5841_v25 = vld [vmem:[#allocation8 + $0xa40] sm:$0xf]  ;;  %3566 = vmatpush.bf16.msrb.mxu3 %v6418_v21  ;;  %v6775_v22 = vld [vmem:[#allocation8 + $0x5c4] sm:$0xf] }
  0x98   :  { %v6923_v26 = vld [vmem:[#allocation8 + $0xa5c] sm:$0xf0] }
  0x99   :  { %v5842_v28 = vor.u32 %v6923_v26, %v5841_v25  ;;  %v6129_v29 = vld [vmem:[#allocation8 + $0xc80] sm:$0xf]  ;;  %3526 = vmatpush.bf16.msrb.mxu0 %v5586_v24  ;;  %v142_v25 = vperm.slane %v7367_v53, 4 }
  0x9a   :  { %v6995_v30 = vld [vmem:[#allocation8 + $0xc9c] sm:$0xf0] }
  0x9b   :  { %v6385_v31 = vld [vmem:[#allocation8 + $0xe80] sm:$0xf]  ;;  %v6130_v32 = vor.u32 %v6995_v30, %v6129_v29  ;;  %3540 = vmatpush.bf16.msrb.mxu1 %v5842_v28  ;;  %v143_v28 = vperm.slane %v7367_v53, 5  ;;  %v4726_v29 = vor.u32 %v6639_v14, %v4723_v15  ;;  %v5267_v30 = vld [vmem:[#allocation8 + $0x5e0] sm:$0xf0] }
  0x9c   :  { %v7059_v33 = vld [vmem:[#allocation8 + $0xe9c] sm:$0xf0]  ;;  %v4627_v14 = vld [vmem:[#allocation8 + $0xe0] sm:$0xf0] }
  0x9d   :  { %v6386_v34 = vor.u32 %v7059_v33, %v6385_v31  ;;  %v5553_v35 = vld [vmem:[#allocation8 + $0x800] sm:$0xf]  ;;  %3553 = vmatpush.bf16.msrb.mxu2 %v6130_v32  ;;  %v6839_v31 = vld [vmem:[#allocation8 + $0x7c4] sm:$0xf] }
  0x9e   :  { %v6851_v36 = vld [vmem:[#allocation8 + $0x81c] sm:$0xf0] }
  0x9f   :  { %v5809_v37 = vld [vmem:[#allocation8 + $0xa00] sm:$0xf]  ;;  %v5554_v38 = vor.u32 %v6851_v36, %v5553_v35  ;;  %3567 = vmatpush.bf16.msrb.mxu3 %v6386_v34  ;;  %v4982_v34 = vor.u32 %v6703_v18, %v4979_v19  ;;  %v5523_v35 = vld [vmem:[#allocation8 + $0x7e0] sm:$0xf0] }
  0xa0   :  { %v6915_v39 = vld [vmem:[#allocation8 + $0xa1c] sm:$0xf0]  ;;  %v6631_v36 = vld [vmem:[#allocation8 + $0x144] sm:$0xf] }
  0xa1   :  { %v5810_v40 = vor.u32 %v6915_v39, %v5809_v37  ;;  %v6097_v41 = vld [vmem:[#allocation8 + $0xc40] sm:$0xf]  ;;  %3527 = vmatpush.bf16.msrb.mxu0 %v5554_v38  ;;  %v4691_v37 = vld [vmem:[#allocation8 + $0x160] sm:$0xf0] }
  0xa2   :  { %v6987_v42 = vld [vmem:[#allocation8 + $0xc5c] sm:$0xf0]  ;;  %v6679_v18 = vld [vmem:[#allocation8 + $0x2c4] sm:$0xf] }
  0xa3   :  { %v6353_v43 = vld [vmem:[#allocation8 + $0xe40] sm:$0xf]  ;;  %3541 = vmatpush.bf16.msrb.mxu1 %v5810_v40  ;;  %v6098_v45 = vor.u32 %v6987_v42, %v6097_v41  ;;  %v6695_v40 = vld [vmem:[#allocation8 + $0x344] sm:$0xf] }
  0xa4   :  { %v7051_v44 = vld [vmem:[#allocation8 + $0xe5c] sm:$0xf0]  ;;  %v4947_v41 = vld [vmem:[#allocation8 + $0x360] sm:$0xf0] }
  0xa5   :  { %v6354_v46 = vor.u32 %v7051_v44, %v6353_v43  ;;  %3554 = vmatpush.bf16.msrb.mxu2 %v6098_v45  ;;  %v6065_v47 = vld [vmem:[#allocation8 + $0xc00] sm:$0xf]  ;;  %v5270_v44 = vor.u32 %v6775_v22, %v5267_v30  ;;  %v4883_v19 = vld [vmem:[#allocation8 + $0x2e0] sm:$0xf0] }
  0xa6   :  { %v6979_v48 = vld [vmem:[#allocation8 + $0xc1c] sm:$0xf0]  ;;  %v247_v54 = vpop.f32.mrf.mxu0  ;;  %v261_v56 = vpop.f32.mrf.mxu1 }
  0xa7   :  { %3568 = vmatpush.bf16.msrb.mxu3 %v6354_v46  ;;  %v6066_v49 = vor.u32 %v6979_v48, %v6065_v47  ;;  %v6321_v50 = vld [vmem:[#allocation8 + $0xe00] sm:$0xf]  ;;  %v248_v27 = vadd.f32 %v247_v54, %v138_v55  ;;  %v262_v58 = vadd.f32 %v261_v56, %v139_v57  ;;  %v5526_v46 = vor.u32 %v6839_v31, %v5523_v35  ;;  %v6767_v48 = vld [vmem:[#allocation8 + $0x584] sm:$0xf] }
  0xa8   :  { %v7043_v51 = vld [vmem:[#allocation8 + $0xe1c] sm:$0xf0]  ;;  %v4694_v47 = vor.u32 %v6631_v36, %v4691_v37  ;;  %v4950_v54 = vor.u32 %v6695_v40, %v4947_v41  ;;  %v6623_v56 = vld [vmem:[#allocation8 + $0x104] sm:$0xf]  ;;  %v4886_v31 = vor.u32 %v6679_v18, %v4883_v19 }
  0xa9   :  { %v6322_v52 = vor.u32 %v7043_v51, %v6321_v50  ;;  %3555 = vmatpush.bf16.msrb.mxu2 %v6066_v49  ;;  %v350_v62 = vmax.f32 %v248_v27, 0.0  ;;  %v351_v3 = vmax.f32 %v262_v58, 0.0  ;;  %v5235_v49 = vld [vmem:[#allocation8 + $0x5a0] sm:$0xf0] }
  0xaa   :  { %v6831_v50 = vld [vmem:[#allocation8 + $0x784] sm:$0xf] }
  0xab   :  { %3569 = vmatpush.bf16.msrb.mxu3 %v6322_v52  ;;  %v6687_v58 = vld [vmem:[#allocation8 + $0x304] sm:$0xf] }
  0xac   :  { %v4595_v35 = vld [vmem:[#allocation8 + $0xa0] sm:$0xf0] }
  0xad   :  { %v6671_v36 = vld [vmem:[#allocation8 + $0x284] sm:$0xf] }
  0xae   :  { %v275_v59 = vpop.f32.mrf.mxu2  ;;  %v289_v60 = vpop.f32.mrf.mxu3  ;;  %v4851_v37 = vld [vmem:[#allocation8 + $0x2a0] sm:$0xf0] }
  0xaf   :  { %v249_v61 = vpop.f32.mrf.mxu0  ;;  %v263_v0 = vpop.f32.mrf.mxu1  ;;  %v276_v16 = vadd.f32 %v275_v59, %v140_v4  ;;  %v290_v20 = vadd.f32 %v289_v60, %v141_v8  ;;  %v4915_v59 = vld [vmem:[#allocation8 + $0x320] sm:$0xf0]  ;;  %v144_v60 = vperm.slane %v7367_v53, 6 }
  0xb0   :  { %v250_v63 = vadd.f32 %v249_v61, %v138_v55  ;;  %v264_v5 = vadd.f32 %v263_v0, %v139_v57  ;;  %v5491_v55 = vld [vmem:[#allocation8 + $0x7a0] sm:$0xf0] }
  0xb1   :  { %v352_v38 = vmax.f32 %v276_v16, 0.0  ;;  %v353_v42 = vmax.f32 %v290_v20, 0.0  ;;  %v4659_v57 = vld [vmem:[#allocation8 + $0x120] sm:$0xf0]  ;;  %v5494_v2 = vor.u32 %v6831_v50, %v5491_v55 }
  0xb2   :  { %v358_v9 = vmax.f32 %v250_v63, 0.0  ;;  %v359_v10 = vmax.f32 %v264_v5, 0.0  ;;  %v6759_v63 = vld [vmem:[#allocation8 + $0x544] sm:$0xf] }
  0xb3   :  { %v6823_v5 = vld [vmem:[#allocation8 + $0x744] sm:$0xf] }
  0xb4   :  { %v7373_v12 = vpack.c.bf16 %v358_v9, %v350_v62  ;;  %v7375_v17 = vpack.c.bf16 %v359_v10, %v351_v3  ;;  %v5238_v62 = vor.u32 %v6767_v48, %v5235_v49  ;;  %v4662_v3 = vor.u32 %v6623_v56, %v4659_v57  ;;  %v6743_v40 = vld [vmem:[#allocation8 + $0x4c4] sm:$0xf] }
  0xb5   :  { %v5139_v41 = vld [vmem:[#allocation8 + $0x4e0] sm:$0xf0] }
  0xb6   :  { %v277_v21 = vpop.f32.mrf.mxu2  ;;  %3472 = vmatmul.bf16.vlgmr.msra.gmra.mxu0 %v7373_v12  ;;  %v291_v24 = vpop.f32.mrf.mxu3  ;;  %3486 = vmatmul.bf16.vlgmr.msra.gmra.mxu1 %v7375_v17  ;;  %v5395_v48 = vld [vmem:[#allocation8 + $0x6e0] sm:$0xf0] }
  0xb7   :  { %v278_v23 = vadd.f32 %v277_v21, %v140_v4  ;;  %3576 = vmatpush.bf16.msra.mxu0 %v4758_v11  ;;  %v303_v26 = vpop.f32.mrf.mxu0  ;;  %v292_v32 = vadd.f32 %v291_v24, %v141_v8  ;;  %3590 = vmatpush.bf16.msra.mxu1 %v5014_v13  ;;  %v317_v33 = vpop.f32.mrf.mxu1  ;;  %v5203_v4 = vld [vmem:[#allocation8 + $0x560] sm:$0xf0]  ;;  %v145_v8 = vperm.slane %v7367_v53, 7  ;;  %v4918_v11 = vor.u32 %v6687_v58, %v4915_v59 }
  0xb8   :  { %v304_v52 = vadd.f32 %v303_v26, %v142_v25  ;;  %v318_v27 = vadd.f32 %v317_v33, %v143_v28  ;;  %v6615_v13 = vld [vmem:[#allocation8 + $0xc4] sm:$0xf]  ;;  %v5206_v21 = vor.u32 %v6759_v63, %v5203_v4  ;;  %v5462_v24 = vor.u32 %v6823_v5, %v5459_v6 }
  0xb9   :  { %v360_v39 = vmax.f32 %v278_v23, 0.0  ;;  %v361_v43 = vmax.f32 %v292_v32, 0.0  ;;  %v6751_v26 = vld [vmem:[#allocation8 + $0x504] sm:$0xf]  ;;  %v4630_v30 = vor.u32 %v6615_v13, %v4627_v14 }
  0xba   :  { %v354_v7 = vmax.f32 %v304_v52, 0.0  ;;  %v355_v15 = vmax.f32 %v318_v27, 0.0  ;;  %v5171_v53 = vld [vmem:[#allocation8 + $0x520] sm:$0xf0] }
  0xbb   :  { %v7381_v45 = vpack.c.bf16 %v360_v39, %v352_v38  ;;  %3577 = vmatpush.bf16.msra.mxu0 %v4726_v29  ;;  %v7383_v51 = vpack.c.bf16 %v361_v43, %v353_v42  ;;  %3591 = vmatpush.bf16.msra.mxu1 %v4982_v34  ;;  %v6815_v32 = vld [vmem:[#allocation8 + $0x704] sm:$0xf]  ;;  %v5174_v39 = vor.u32 %v6751_v26, %v5171_v53 }
  0xbc   :  { %v6607_v33 = vld [vmem:[#allocation8 + $0x84] sm:$0xf] }
  0xbd   :  { %3500 = vmatmul.bf16.vlgmr.msra.gmra.mxu2 %v7381_v45  ;;  %3514 = vmatmul.bf16.vlgmr.msra.gmra.mxu3 %v7383_v51  ;;  %v4598_v52 = vor.u32 %v6607_v33, %v4595_v35  ;;  %v6599_v55 = vld [vmem:[#allocation8 + $0x44] sm:$0xf] }
  0xbe   :  { %3604 = vmatpush.bf16.msra.mxu2 %v5270_v44  ;;  %v331_v61 = vpop.f32.mrf.mxu2  ;;  %3618 = vmatpush.bf16.msra.mxu3 %v5526_v46  ;;  %v4563_v56 = vld [vmem:[#allocation8 + $0x60] sm:$0xf0] }
  0xbf   :  { %v345_v0 = vpop.f32.mrf.mxu3  ;;  %3578 = vmatpush.bf16.msra.mxu0 %v4694_v47  ;;  %v305_v1 = vpop.f32.mrf.mxu0  ;;  %3592 = vmatpush.bf16.msra.mxu1 %v4950_v54  ;;  %v332_v22 = vadd.f32 %v331_v61, %v144_v60  ;;  %v6807_v47 = vld [vmem:[#allocation8 + $0x6c4] sm:$0xf]  ;;  %v4854_v54 = vor.u32 %v6671_v36, %v4851_v37 }
  0xc0   :  { %v306_v9 = vadd.f32 %v305_v1, %v142_v25  ;;  %v319_v10 = vpop.f32.mrf.mxu1  ;;  %v346_v29 = vadd.f32 %v345_v0, %v145_v8  ;;  %v6663_v27 = vld [vmem:[#allocation8 + $0x244] sm:$0xf] }
  0xc1   :  { %v320_v16 = vadd.f32 %v319_v10, %v143_v28  ;;  %v5427_v28 = vld [vmem:[#allocation8 + $0x720] sm:$0xf0]  ;;  %v356_v42 = vmax.f32 %v332_v22, 0.0 }
  0xc2   :  { %v362_v20 = vmax.f32 %v306_v9, 0.0  ;;  %3605 = vmatpush.bf16.msra.mxu2 %v5238_v62  ;;  %3619 = vmatpush.bf16.msra.mxu3 %v5494_v2  ;;  %v5430_v46 = vor.u32 %v6815_v32, %v5427_v28  ;;  %v357_v49 = vmax.f32 %v346_v29, 0.0  ;;  %v4819_v58 = vld [vmem:[#allocation8 + $0x260] sm:$0xf0]  ;;  %v5398_v62 = vor.u32 %v6807_v47, %v5395_v48 }
  0xc3   :  { %v363_v23 = vmax.f32 %v320_v16, 0.0  ;;  %3579 = vmatpush.bf16.msra.mxu0 %v4662_v3  ;;  %3593 = vmatpush.bf16.msra.mxu1 %v4918_v11  ;;  %v6735_v63 = vld [vmem:[#allocation8 + $0x484] sm:$0xf]  ;;  %v4566_v3 = vor.u32 %v6599_v55, %v4563_v56  ;;  %v4822_v4 = vor.u32 %v6663_v27, %v4819_v58 }
  0xc4   :  { %v7389_v25 = vpack.c.bf16 %v362_v20, %v354_v7  ;;  %v5107_v0 = vld [vmem:[#allocation8 + $0x4a0] sm:$0xf0] }
  0xc5   :  { %v7391_v34 = vpack.c.bf16 %v363_v23, %v355_v15  ;;  %v6799_v1 = vld [vmem:[#allocation8 + $0x684] sm:$0xf]  ;;  %v5110_v11 = vor.u32 %v6735_v63, %v5107_v0 }
  0xc6   :  { %3606 = vmatpush.bf16.msra.mxu2 %v5206_v21  ;;  %v333_v38 = vpop.f32.mrf.mxu2  ;;  %3528 = vmatmul.bf16.vlgmr.msrb.gmra.mxu0 %v7389_v25  ;;  %v5363_v5 = vld [vmem:[#allocation8 + $0x6a0] sm:$0xf0] }
  0xc7   :  { %3620 = vmatpush.bf16.msra.mxu3 %v5462_v24  ;;  %v334_v43 = vadd.f32 %v333_v38, %v144_v60  ;;  %v347_v44 = vpop.f32.mrf.mxu3  ;;  %3542 = vmatmul.bf16.vlgmr.msrb.gmra.mxu1 %v7391_v34  ;;  %v5142_v60 = vor.u32 %v6743_v40, %v5139_v41  ;;  %v6591_v6 = vld [vmem:[#allocation8 + $0x4] sm:$0xf]  ;;  %v5366_v16 = vor.u32 %v6799_v1, %v5363_v5 }
  0xc8   :  { %v348_v50 = vadd.f32 %v347_v44, %v145_v8  ;;  %3580 = vmatpush.bf16.msra.mxu0 %v4630_v30  ;;  %3594 = vmatpush.bf16.msra.mxu1 %v4886_v31  ;;  %v4531_v7 = vld [vmem:[#allocation8 + $0x20] sm:$0xf0] }
  0xc9   :  { %v364_v57 = vmax.f32 %v334_v43, 0.0  ;;  %v6655_v8 = vld [vmem:[#allocation8 + $0x204] sm:$0xf]  ;;  %v4534_v20 = vor.u32 %v6591_v6, %v4531_v7 }
  0xca   :  { %v365_v59 = vmax.f32 %v348_v50, 0.0  ;;  %3607 = vmatpush.bf16.msra.mxu2 %v5174_v39  ;;  %v4787_v9 = vld [vmem:[#allocation8 + $0x220] sm:$0xf0] }
  0xcb   :  { %v7395_v61 = vpack.c.bf16 %v364_v57, %v356_v42  ;;  %3621 = vmatpush.bf16.msra.mxu3 %v5430_v46  ;;  %v6903_v10 = vld [vmem:[#allocation8 + $0x9c4] sm:$0xf]  ;;  %v4790_v21 = vor.u32 %v6655_v8, %v4787_v9 }
  0xcc   :  { %v7397_v2 = vpack.c.bf16 %v365_v59, %v357_v49  ;;  %3581 = vmatpush.bf16.msra.mxu0 %v4598_v52  ;;  %3595 = vmatpush.bf16.msra.mxu1 %v4854_v54  ;;  %v5779_v13 = vld [vmem:[#allocation8 + $0x9e0] sm:$0xf0] }
  0xcd   :  { %3556 = vmatmul.bf16.vlgmr.msrb.gmra.mxu2 %v7395_v61  ;;  %v6967_v14 = vld [vmem:[#allocation8 + $0xbc4] sm:$0xf]  ;;  %v5782_v24 = vor.u32 %v6903_v10, %v5779_v13 }
  0xce   :  { %3570 = vmatmul.bf16.vlgmr.msrb.gmra.mxu3 %v7397_v2  ;;  %3608 = vmatpush.bf16.msra.mxu2 %v5142_v60  ;;  %v6035_v15 = vld [vmem:[#allocation8 + $0xbe0] sm:$0xf0] }
  0xcf   :  { %3622 = vmatpush.bf16.msra.mxu3 %v5398_v62  ;;  %v6727_v18 = vld [vmem:[#allocation8 + $0x444] sm:$0xf]  ;;  %v6038_v26 = vor.u32 %v6967_v14, %v6035_v15 }
  0xd0   :  { %v5075_v19 = vld [vmem:[#allocation8 + $0x460] sm:$0xf0]  ;;  %3582 = vmatpush.bf16.msra.mxu0 %v4566_v3  ;;  %3596 = vmatpush.bf16.msra.mxu1 %v4822_v4 }
  0xd1   :  { %v6791_v22 = vld [vmem:[#allocation8 + $0x644] sm:$0xf]  ;;  %v5078_v29 = vor.u32 %v6727_v18, %v5075_v19 }
  0xd2   :  { %v5331_v23 = vld [vmem:[#allocation8 + $0x660] sm:$0xf0]  ;;  %3609 = vmatpush.bf16.msra.mxu2 %v5110_v11 }
  0xd3   :  { %v6895_v53 = vld [vmem:[#allocation8 + $0x984] sm:$0xf]  ;;  %3623 = vmatpush.bf16.msra.mxu3 %v5366_v16  ;;  %v5334_v28 = vor.u32 %v6791_v22, %v5331_v23 }
  0xd4   :  { %v5747_v30 = vld [vmem:[#allocation8 + $0x9a0] sm:$0xf0]  ;;  %3583 = vmatpush.bf16.msra.mxu0 %v4534_v20  ;;  %3597 = vmatpush.bf16.msra.mxu1 %v4790_v21 }
  0xd5   :  { %v6959_v31 = vld [vmem:[#allocation8 + $0xb84] sm:$0xf]  ;;  %v5750_v40 = vor.u32 %v6895_v53, %v5747_v30 }
  0xd6   :  { %v6003_v32 = vld [vmem:[#allocation8 + $0xba0] sm:$0xf0]  ;;  %3610 = vmatpush.bf16.msra.mxu2 %v5078_v29 }
  0xd7   :  { %v6719_v33 = vld [vmem:[#allocation8 + $0x404] sm:$0xf]  ;;  %v6006_v41 = vor.u32 %v6959_v31, %v6003_v32  ;;  %3624 = vmatpush.bf16.msra.mxu3 %v5334_v28  ;;  %3584 = vmatmul.bf16.vlgmr.msra.gmra.mxu0 %v7373_v12 }
  0xd8   :  { %v5043_v35 = vld [vmem:[#allocation8 + $0x420] sm:$0xf0]  ;;  %3632 = vmatpush.bf16.msrb.mxu0 %v5782_v24  ;;  %3646 = vmatpush.bf16.msrb.mxu1 %v6038_v26 }
  0xd9   :  { %v6783_v36 = vld [vmem:[#allocation8 + $0x604] sm:$0xf]  ;;  %v5046_v46 = vor.u32 %v6719_v33, %v5043_v35  ;;  %3598 = vmatmul.bf16.vlgmr.msra.gmra.mxu1 %v7375_v17 }
  0xda   :  { %v5299_v37 = vld [vmem:[#allocation8 + $0x620] sm:$0xf0] }
  0xdb   :  { %v7031_v38 = vld [vmem:[#allocation8 + $0xdc4] sm:$0xf]  ;;  %v5302_v50 = vor.u32 %v6783_v36, %v5299_v37  ;;  %3611 = vmatpush.bf16.msra.mxu2 %v5046_v46 }
  0xdc   :  { %v6291_v39 = vld [vmem:[#allocation8 + $0xde0] sm:$0xf0]  ;;  %3633 = vmatpush.bf16.msrb.mxu0 %v5750_v40  ;;  %3647 = vmatpush.bf16.msrb.mxu1 %v6006_v41 }
  0xdd   :  { %v7095_v42 = vld [vmem:[#allocation8 + $0xfc4] sm:$0xf]  ;;  %v6294_v52 = vor.u32 %v7031_v38, %v6291_v39  ;;  %3625 = vmatpush.bf16.msra.mxu3 %v5302_v50 }
  0xde   :  { %v6547_v43 = vld [vmem:[#allocation8 + $0xfe0] sm:$0xf0]  ;;  %3612 = vmatmul.bf16.vlgmr.msra.gmra.mxu2 %v7381_v45 }
  0xdf   :  { %v6887_v44 = vld [vmem:[#allocation8 + $0x944] sm:$0xf]  ;;  %v6550_v54 = vor.u32 %v7095_v42, %v6547_v43  ;;  %3660 = vmatpush.bf16.msrb.mxu2 %v6294_v52 }
  0xe0   :  { %v5715_v47 = vld [vmem:[#allocation8 + $0x960] sm:$0xf0]  ;;  %3626 = vmatmul.bf16.vlgmr.msra.gmra.mxu3 %v7383_v51 }
  0xe1   :  { %v6951_v48 = vld [vmem:[#allocation8 + $0xb44] sm:$0xf]  ;;  %v5718_v57 = vor.u32 %v6887_v44, %v5715_v47  ;;  %3674 = vmatpush.bf16.msrb.mxu3 %v6550_v54 }
  0xe2   :  { %v5971_v49 = vld [vmem:[#allocation8 + $0xb60] sm:$0xf0] }
  0xe3   :  { %v7023_v55 = vld [vmem:[#allocation8 + $0xd84] sm:$0xf]  ;;  %v5974_v27 = vor.u32 %v6951_v48, %v5971_v49  ;;  %3634 = vmatpush.bf16.msrb.mxu0 %v5718_v57  ;;  %v4761_v57 = vld [vmem:[#allocation8 + $0x1c8] sm:$0xf] }
  0xe4   :  { %v6259_v56 = vld [vmem:[#allocation8 + $0xda0] sm:$0xf0] }
  0xe5   :  { %v7087_v58 = vld [vmem:[#allocation8 + $0xf84] sm:$0xf]  ;;  %v6262_v1 = vor.u32 %v7023_v55, %v6259_v56  ;;  %3648 = vmatpush.bf16.msrb.mxu1 %v5974_v27 }
  0xe6   :  { %v6515_v59 = vld [vmem:[#allocation8 + $0xfa0] sm:$0xf0] }
  0xe7   :  { %v6879_v60 = vld [vmem:[#allocation8 + $0x904] sm:$0xf]  ;;  %v6518_v3 = vor.u32 %v7087_v58, %v6515_v59  ;;  %3661 = vmatpush.bf16.msrb.mxu2 %v6262_v1  ;;  %v6652_v58 = vld [vmem:[#allocation8 + $0x1e4] sm:$0xf0] }
  0xe8   :  { %v5683_v62 = vld [vmem:[#allocation8 + $0x920] sm:$0xf0]  ;;  %v5017_v59 = vld [vmem:[#allocation8 + $0x3c8] sm:$0xf] }
  0xe9   :  { %v6943_v63 = vld [vmem:[#allocation8 + $0xb04] sm:$0xf]  ;;  %v5686_v6 = vor.u32 %v6879_v60, %v5683_v62  ;;  %3675 = vmatpush.bf16.msrb.mxu3 %v6518_v3  ;;  %v6716_v60 = vld [vmem:[#allocation8 + $0x3e4] sm:$0xf0] }
  0xea   :  { %v5939_v0 = vld [vmem:[#allocation8 + $0xb20] sm:$0xf0] }
  0xeb   :  { %v7015_v4 = vld [vmem:[#allocation8 + $0xd44] sm:$0xf]  ;;  %v5942_v7 = vor.u32 %v6943_v63, %v5939_v0  ;;  %3635 = vmatpush.bf16.msrb.mxu0 %v5686_v6  ;;  %v4762_v6 = vor.u32 %v6652_v58, %v4761_v57  ;;  %v4633_v57 = vld [vmem:[#allocation8 + $0xc8] sm:$0xf] }
  0xec   :  { %v6227_v5 = vld [vmem:[#allocation8 + $0xd60] sm:$0xf0] }
  0xed   :  { %v7079_v8 = vld [vmem:[#allocation8 + $0xf44] sm:$0xf]  ;;  %v6230_v15 = vor.u32 %v7015_v4, %v6227_v5  ;;  %3649 = vmatpush.bf16.msrb.mxu1 %v5942_v7  ;;  %v5018_v7 = vor.u32 %v6716_v60, %v5017_v59  ;;  %v4889_v59 = vld [vmem:[#allocation8 + $0x2c8] sm:$0xf] }
  0xee   :  { %v6483_v9 = vld [vmem:[#allocation8 + $0xf60] sm:$0xf0]  ;;  %v6684_v60 = vld [vmem:[#allocation8 + $0x2e4] sm:$0xf0] }
  0xef   :  { %v6871_v10 = vld [vmem:[#allocation8 + $0x8c4] sm:$0xf]  ;;  %v6486_v16 = vor.u32 %v7079_v8, %v6483_v9  ;;  %3662 = vmatpush.bf16.msrb.mxu2 %v6230_v15  ;;  %v4729_v8 = vld [vmem:[#allocation8 + $0x188] sm:$0xf] }
  0xf0   :  { %v5651_v11 = vld [vmem:[#allocation8 + $0x8e0] sm:$0xf0] }
  0xf1   :  { %v6935_v13 = vld [vmem:[#allocation8 + $0xac4] sm:$0xf]  ;;  %v5654_v20 = vor.u32 %v6871_v10, %v5651_v11  ;;  %3676 = vmatpush.bf16.msrb.mxu3 %v6486_v16  ;;  %v6644_v10 = vld [vmem:[#allocation8 + $0x1a4] sm:$0xf0] }
  0xf2   :  { %v5907_v14 = vld [vmem:[#allocation8 + $0xae0] sm:$0xf0]  ;;  %v4985_v11 = vld [vmem:[#allocation8 + $0x388] sm:$0xf] }
  0xf3   :  { %v7007_v18 = vld [vmem:[#allocation8 + $0xd04] sm:$0xf]  ;;  %v5910_v21 = vor.u32 %v6935_v13, %v5907_v14  ;;  %3636 = vmatpush.bf16.msrb.mxu0 %v5654_v20  ;;  %v6708_v13 = vld [vmem:[#allocation8 + $0x3a4] sm:$0xf0] }
  0xf4   :  { %v6195_v19 = vld [vmem:[#allocation8 + $0xd20] sm:$0xf0]  ;;  %v5273_v20 = vld [vmem:[#allocation8 + $0x5c8] sm:$0xf] }
  0xf5   :  { %v7071_v22 = vld [vmem:[#allocation8 + $0xf04] sm:$0xf]  ;;  %v6198_v30 = vor.u32 %v7007_v18, %v6195_v19  ;;  %3650 = vmatpush.bf16.msrb.mxu1 %v5910_v21  ;;  %v6780_v21 = vld [vmem:[#allocation8 + $0x5e4] sm:$0xf0] }
  0xf6   :  { %v6451_v23 = vld [vmem:[#allocation8 + $0xf20] sm:$0xf0] }
  0xf7   :  { %v6863_v24 = vld [vmem:[#allocation8 + $0x884] sm:$0xf]  ;;  %v6454_v31 = vor.u32 %v7071_v22, %v6451_v23  ;;  %3663 = vmatpush.bf16.msrb.mxu2 %v6198_v30  ;;  %v4730_v22 = vor.u32 %v6644_v10, %v4729_v8  ;;  %v4986_v23 = vor.u32 %v6708_v13, %v4985_v11  ;;  %v6636_v30 = vld [vmem:[#allocation8 + $0x164] sm:$0xf0] }
  0xf8   :  { %v5619_v26 = vld [vmem:[#allocation8 + $0x8a0] sm:$0xf0]  ;;  %v6676_v10 = vld [vmem:[#allocation8 + $0x2a4] sm:$0xf0] }
  0xf9   :  { %v6927_v53 = vld [vmem:[#allocation8 + $0xa84] sm:$0xf]  ;;  %v5622_v33 = vor.u32 %v6863_v24, %v5619_v26  ;;  %3677 = vmatpush.bf16.msrb.mxu3 %v6454_v31  ;;  %v5529_v24 = vld [vmem:[#allocation8 + $0x7c8] sm:$0xf] }
  0xfa   :  { %v5875_v29 = vld [vmem:[#allocation8 + $0xaa0] sm:$0xf0]  ;;  %v6844_v26 = vld [vmem:[#allocation8 + $0x7e4] sm:$0xf0] }
  0xfb   :  { %v6999_v32 = vld [vmem:[#allocation8 + $0xcc4] sm:$0xf]  ;;  %v5878_v35 = vor.u32 %v6927_v53, %v5875_v29  ;;  %3637 = vmatpush.bf16.msrb.mxu0 %v5622_v33  ;;  %v4697_v29 = vld [vmem:[#allocation8 + $0x148] sm:$0xf] }
  0xfc   :  { %v6163_v28 = vld [vmem:[#allocation8 + $0xce0] sm:$0xf0]  ;;  %v6700_v33 = vld [vmem:[#allocation8 + $0x364] sm:$0xf0] }
  0xfd   :  { %v7063_v36 = vld [vmem:[#allocation8 + $0xec4] sm:$0xf]  ;;  %v6166_v42 = vor.u32 %v6999_v32, %v6163_v28  ;;  %3651 = vmatpush.bf16.msrb.mxu1 %v5878_v35  ;;  %v5274_v32 = vor.u32 %v6780_v21, %v5273_v20  ;;  %v4953_v28 = vld [vmem:[#allocation8 + $0x348] sm:$0xf]  ;;  %v5530_v35 = vor.u32 %v6844_v26, %v5529_v24 }
  0xfe   :  { %v6419_v37 = vld [vmem:[#allocation8 + $0xee0] sm:$0xf0]  ;;  %v5145_v13 = vld [vmem:[#allocation8 + $0x4c8] sm:$0xf] }
  0xff   :  { %v6855_v38 = vld [vmem:[#allocation8 + $0x844] sm:$0xf]  ;;  %v6422_v43 = vor.u32 %v7063_v36, %v6419_v37  ;;  %3664 = vmatpush.bf16.msrb.mxu2 %v6166_v42  ;;  %v5241_v36 = vld [vmem:[#allocation8 + $0x588] sm:$0xf] }
 0x100   :  { %v5587_v39 = vld [vmem:[#allocation8 + $0x860] sm:$0xf0]  ;;  %v6772_v37 = vld [vmem:[#allocation8 + $0x5a4] sm:$0xf0] }
 0x101   :  { %v6919_v40 = vld [vmem:[#allocation8 + $0xa44] sm:$0xf]  ;;  %v5590_v48 = vor.u32 %v6855_v38, %v5587_v39  ;;  %3678 = vmatpush.bf16.msrb.mxu3 %v6422_v43  ;;  %v4698_v38 = vor.u32 %v6636_v30, %v4697_v29  ;;  %v5497_v39 = vld [vmem:[#allocation8 + $0x788] sm:$0xf] }
 0x102   :  { %v5843_v41 = vld [vmem:[#allocation8 + $0xa60] sm:$0xf0]  ;;  %v4665_v42 = vld [vmem:[#allocation8 + $0x108] sm:$0xf] }
 0x103   :  { %v6991_v44 = vld [vmem:[#allocation8 + $0xc84] sm:$0xf]  ;;  %v5846_v49 = vor.u32 %v6919_v40, %v5843_v41  ;;  %3638 = vmatpush.bf16.msrb.mxu0 %v5590_v48  ;;  %v6836_v40 = vld [vmem:[#allocation8 + $0x7a4] sm:$0xf0]  ;;  %v4954_v41 = vor.u32 %v6700_v33, %v4953_v28 }
 0x104   :  { %v6131_v46 = vld [vmem:[#allocation8 + $0xca0] sm:$0xf0]  ;;  %v6628_v43 = vld [vmem:[#allocation8 + $0x124] sm:$0xf0]  ;;  %v5498_v48 = vor.u32 %v6836_v40, %v5497_v39 }
 0x105   :  { %v7055_v47 = vld [vmem:[#allocation8 + $0xe84] sm:$0xf]  ;;  %v6134_v27 = vor.u32 %v6991_v44, %v6131_v46  ;;  %3652 = vmatpush.bf16.msrb.mxu1 %v5846_v49  ;;  %v5242_v44 = vor.u32 %v6772_v37, %v5241_v36  ;;  %v4921_v46 = vld [vmem:[#allocation8 + $0x308] sm:$0xf] }
 0x106   :  { %v6387_v50 = vld [vmem:[#allocation8 + $0xea0] sm:$0xf0]  ;;  %v5209_v49 = vld [vmem:[#allocation8 + $0x548] sm:$0xf] }
 0x107   :  { %v6847_v52 = vld [vmem:[#allocation8 + $0x804] sm:$0xf]  ;;  %v6390_v62 = vor.u32 %v7055_v47, %v6387_v50  ;;  %3665 = vmatpush.bf16.msrb.mxu2 %v6134_v27  ;;  %v6692_v47 = vld [vmem:[#allocation8 + $0x324] sm:$0xf0] }
 0x108   :  { %v5555_v54 = vld [vmem:[#allocation8 + $0x820] sm:$0xf0]  ;;  %v6764_v50 = vld [vmem:[#allocation8 + $0x564] sm:$0xf0] }
 0x109   :  { %v6911_v55 = vld [vmem:[#allocation8 + $0xa04] sm:$0xf]  ;;  %v5558_v1 = vor.u32 %v6847_v52, %v5555_v54  ;;  %3679 = vmatpush.bf16.msrb.mxu3 %v6390_v62  ;;  %v4666_v52 = vor.u32 %v6628_v43, %v4665_v42  ;;  %v5465_v54 = vld [vmem:[#allocation8 + $0x748] sm:$0xf]  ;;  %v5210_v58 = vor.u32 %v6764_v50, %v5209_v49 }
 0x10a   :  { %v5811_v56 = vld [vmem:[#allocation8 + $0xa20] sm:$0xf0]  ;;  %v6620_v27 = vld [vmem:[#allocation8 + $0xe4] sm:$0xf0] }
 0x10b   :  { %v6983_v63 = vld [vmem:[#allocation8 + $0xc44] sm:$0xf]  ;;  %v5814_v3 = vor.u32 %v6911_v55, %v5811_v56  ;;  %3639 = vmatpush.bf16.msrb.mxu0 %v5558_v1  ;;  %v6828_v55 = vld [vmem:[#allocation8 + $0x764] sm:$0xf0]  ;;  %v4922_v56 = vor.u32 %v6692_v47, %v4921_v46  ;;  %v4634_v1 = vor.u32 %v6620_v27, %v4633_v57 }
 0x10c   :  { %v6099_v0 = vld [vmem:[#allocation8 + $0xc60] sm:$0xf0]  ;;  %v5466_v62 = vor.u32 %v6828_v55, %v5465_v54  ;;  %v4569_v20 = vld [vmem:[#allocation8 + $0x48] sm:$0xf] }
 0x10d   :  { %v7047_v4 = vld [vmem:[#allocation8 + $0xe44] sm:$0xf]  ;;  %v6102_v9 = vor.u32 %v6983_v63, %v6099_v0  ;;  %3653 = vmatpush.bf16.msrb.mxu1 %v5814_v3  ;;  %v5177_v63 = vld [vmem:[#allocation8 + $0x508] sm:$0xf] }
 0x10e   :  { %v6355_v5 = vld [vmem:[#allocation8 + $0xe60] sm:$0xf0]  ;;  %3640 = vmatmul.bf16.vlgmr.msrb.gmra.mxu0 %v7389_v25  ;;  %v6756_v0 = vld [vmem:[#allocation8 + $0x524] sm:$0xf0] }
 0x10f   :  { %v6358_v14 = vor.u32 %v7047_v4, %v6355_v5  ;;  %v6975_v15 = vld [vmem:[#allocation8 + $0xc04] sm:$0xf]  ;;  %3688 = vmatpush.bf16.msra.mxu0 %v4762_v6  ;;  %3666 = vmatpush.bf16.msrb.mxu2 %v6102_v9  ;;  %v5433_v3 = vld [vmem:[#allocation8 + $0x708] sm:$0xf]  ;;  %v4890_v5 = vor.u32 %v6684_v60, %v4889_v59  ;;  %v5178_v8 = vor.u32 %v6756_v0, %v5177_v63 }
 0x110   :  { %v6067_v16 = vld [vmem:[#allocation8 + $0xc20] sm:$0xf0]  ;;  %3654 = vmatmul.bf16.vlgmr.msrb.gmra.mxu1 %v7391_v34  ;;  %v6820_v4 = vld [vmem:[#allocation8 + $0x724] sm:$0xf0] }
 0x111   :  { %v7039_v18 = vld [vmem:[#allocation8 + $0xe04] sm:$0xf]  ;;  %3702 = vmatpush.bf16.msra.mxu1 %v5018_v7  ;;  %v6070_v53 = vor.u32 %v6975_v15, %v6067_v16  ;;  %3680 = vmatpush.bf16.msrb.mxu3 %v6358_v14  ;;  %v4601_v6 = vld [vmem:[#allocation8 + $0x88] sm:$0xf]  ;;  %v5434_v11 = vor.u32 %v6820_v4, %v5433_v3 }
 0x112   :  { %v6323_v19 = vld [vmem:[#allocation8 + $0xe20] sm:$0xf0]  ;;  %v6612_v7 = vld [vmem:[#allocation8 + $0xa4] sm:$0xf0] }
 0x113   :  { %v6326_v31 = vor.u32 %v7039_v18, %v6323_v19  ;;  %3689 = vmatpush.bf16.msra.mxu0 %v4730_v22  ;;  %3667 = vmatpush.bf16.msrb.mxu2 %v6070_v53  ;;  %v4857_v9 = vld [vmem:[#allocation8 + $0x288] sm:$0xf]  ;;  %v4602_v15 = vor.u32 %v6612_v7, %v4601_v6 }
 0x114   :  { %v6748_v14 = vld [vmem:[#allocation8 + $0x4e4] sm:$0xf0]  ;;  %v4858_v19 = vor.u32 %v6676_v10, %v4857_v9 }
 0x115   :  { %3703 = vmatpush.bf16.msra.mxu1 %v4986_v23  ;;  %3681 = vmatpush.bf16.msrb.mxu3 %v6326_v31  ;;  %v5401_v16 = vld [vmem:[#allocation8 + $0x6c8] sm:$0xf]  ;;  %v5146_v22 = vor.u32 %v6748_v14, %v5145_v13 }
 0x116   :  { %3668 = vmatmul.bf16.vlgmr.msrb.gmra.mxu2 %v7395_v61  ;;  %v6812_v18 = vld [vmem:[#allocation8 + $0x6e4] sm:$0xf0] }
 0x117   :  { %3716 = vmatpush.bf16.msra.mxu2 %v5274_v32  ;;  %3690 = vmatpush.bf16.msra.mxu0 %v4698_v38  ;;  %v6604_v21 = vld [vmem:[#allocation8 + $0x64] sm:$0xf0]  ;;  %v5402_v26 = vor.u32 %v6812_v18, %v5401_v16 }
 0x118   :  { %3682 = vmatmul.bf16.vlgmr.msrb.gmra.mxu3 %v7397_v2  ;;  %v4825_v23 = vld [vmem:[#allocation8 + $0x248] sm:$0xf]  ;;  %v4570_v30 = vor.u32 %v6604_v21, %v4569_v20 }
 0x119   :  { %3730 = vmatpush.bf16.msra.mxu3 %v5530_v35  ;;  %3704 = vmatpush.bf16.msra.mxu1 %v4954_v41  ;;  %v6668_v24 = vld [vmem:[#allocation8 + $0x264] sm:$0xf0] }
 0x11a   :  { %v5113_v53 = vld [vmem:[#allocation8 + $0x488] sm:$0xf]  ;;  %v4826_v33 = vor.u32 %v6668_v24, %v4825_v23 }
 0x11b   :  { %3717 = vmatpush.bf16.msra.mxu2 %v5242_v44  ;;  %3691 = vmatpush.bf16.msra.mxu0 %v4666_v52  ;;  %v6740_v29 = vld [vmem:[#allocation8 + $0x4a4] sm:$0xf0] }
 0x11c   :  { %v5369_v31 = vld [vmem:[#allocation8 + $0x688] sm:$0xf]  ;;  %v5114_v38 = vor.u32 %v6740_v29, %v5113_v53 }
 0x11d   :  { %3731 = vmatpush.bf16.msra.mxu3 %v5498_v48  ;;  %3705 = vmatpush.bf16.msra.mxu1 %v4922_v56  ;;  %v6804_v32 = vld [vmem:[#allocation8 + $0x6a4] sm:$0xf0] }
 0x11e   :  { %v4537_v28 = vld [vmem:[#allocation8 + $0x8] sm:$0xf]  ;;  %v5370_v42 = vor.u32 %v6804_v32, %v5369_v31 }
 0x11f   :  { %3718 = vmatpush.bf16.msra.mxu2 %v5210_v58  ;;  %3692 = vmatpush.bf16.msra.mxu0 %v4634_v1  ;;  %v6596_v35 = vld [vmem:[#allocation8 + $0x24] sm:$0xf0] }
 0x120   :  { %v4793_v36 = vld [vmem:[#allocation8 + $0x208] sm:$0xf]  ;;  %v4538_v47 = vor.u32 %v6596_v35, %v4537_v28 }
 0x121   :  { %3732 = vmatpush.bf16.msra.mxu3 %v5466_v62  ;;  %3706 = vmatpush.bf16.msra.mxu1 %v4890_v5  ;;  %v6660_v37 = vld [vmem:[#allocation8 + $0x224] sm:$0xf0] }
 0x122   :  { %v5785_v39 = vld [vmem:[#allocation8 + $0x9c8] sm:$0xf]  ;;  %v4794_v50 = vor.u32 %v6660_v37, %v4793_v36 }
 0x123   :  { %3719 = vmatpush.bf16.msra.mxu2 %v5178_v8  ;;  %3693 = vmatpush.bf16.msra.mxu0 %v4602_v15  ;;  %v6908_v40 = vld [vmem:[#allocation8 + $0x9e4] sm:$0xf0] }
 0x124   :  { %v6041_v41 = vld [vmem:[#allocation8 + $0xbc8] sm:$0xf]  ;;  %v5786_v52 = vor.u32 %v6908_v40, %v5785_v39 }
 0x125   :  { %3733 = vmatpush.bf16.msra.mxu3 %v5434_v11  ;;  %3707 = vmatpush.bf16.msra.mxu1 %v4858_v19  ;;  %v6972_v43 = vld [vmem:[#allocation8 + $0xbe4] sm:$0xf0] }
 0x126   :  { %v5081_v44 = vld [vmem:[#allocation8 + $0x448] sm:$0xf]  ;;  %v6042_v55 = vor.u32 %v6972_v43, %v6041_v41 }
 0x127   :  { %3720 = vmatpush.bf16.msra.mxu2 %v5146_v22  ;;  %v6732_v46 = vld [vmem:[#allocation8 + $0x464] sm:$0xf0]  ;;  %3694 = vmatpush.bf16.msra.mxu0 %v4570_v30 }
 0x128   :  { %v5337_v48 = vld [vmem:[#allocation8 + $0x648] sm:$0xf]  ;;  %v5082_v56 = vor.u32 %v6732_v46, %v5081_v44 }
 0x129   :  { %3734 = vmatpush.bf16.msra.mxu3 %v5402_v26  ;;  %v6796_v49 = vld [vmem:[#allocation8 + $0x664] sm:$0xf0]  ;;  %3708 = vmatpush.bf16.msra.mxu1 %v4826_v33 }
 0x12a   :  { %v5753_v54 = vld [vmem:[#allocation8 + $0x988] sm:$0xf]  ;;  %v5338_v59 = vor.u32 %v6796_v49, %v5337_v48 }
 0x12b   :  { %3721 = vmatpush.bf16.msra.mxu2 %v5114_v38  ;;  %v6900_v57 = vld [vmem:[#allocation8 + $0x9a4] sm:$0xf0]  ;;  %3695 = vmatpush.bf16.msra.mxu0 %v4538_v47 }
 0x12c   :  { %v6009_v27 = vld [vmem:[#allocation8 + $0xb88] sm:$0xf]  ;;  %v5754_v4 = vor.u32 %v6900_v57, %v5753_v54 }
 0x12d   :  { %v6964_v58 = vld [vmem:[#allocation8 + $0xba4] sm:$0xf0]  ;;  %3735 = vmatpush.bf16.msra.mxu3 %v5370_v42  ;;  %3709 = vmatpush.bf16.msra.mxu1 %v4794_v50 }
 0x12e   :  { %v5049_v60 = vld [vmem:[#allocation8 + $0x408] sm:$0xf]  ;;  %v6010_v7 = vor.u32 %v6964_v58, %v6009_v27  ;;  %3696 = vmatmul.bf16.vlgmr.msra.gmra.mxu0 %v7373_v12 }
 0x12f   :  { %v6724_v62 = vld [vmem:[#allocation8 + $0x424] sm:$0xf0]  ;;  %3744 = vmatpush.bf16.msrb.mxu0 %v5786_v52  ;;  %3722 = vmatpush.bf16.msra.mxu2 %v5082_v56 }
 0x130   :  { %v5305_v63 = vld [vmem:[#allocation8 + $0x608] sm:$0xf]  ;;  %v5050_v8 = vor.u32 %v6724_v62, %v5049_v60  ;;  %3710 = vmatmul.bf16.vlgmr.msra.gmra.mxu1 %v7375_v17 }
 0x131   :  { %v6788_v0 = vld [vmem:[#allocation8 + $0x624] sm:$0xf0]  ;;  %3758 = vmatpush.bf16.msrb.mxu1 %v6042_v55  ;;  %3736 = vmatpush.bf16.msra.mxu3 %v5338_v59 }
 0x132   :  { %v6297_v1 = vld [vmem:[#allocation8 + $0xdc8] sm:$0xf]  ;;  %v5306_v11 = vor.u32 %v6788_v0, %v5305_v63 }
 0x133   :  { %v7036_v3 = vld [vmem:[#allocation8 + $0xde4] sm:$0xf0]  ;;  %3745 = vmatpush.bf16.msrb.mxu0 %v5754_v4  ;;  %3723 = vmatpush.bf16.msra.mxu2 %v5050_v8 }
 0x134   :  { %v6553_v5 = vld [vmem:[#allocation8 + $0xfc8] sm:$0xf]  ;;  %v6298_v13 = vor.u32 %v7036_v3, %v6297_v1 }
 0x135   :  { %v7100_v6 = vld [vmem:[#allocation8 + $0xfe4] sm:$0xf0]  ;;  %3759 = vmatpush.bf16.msrb.mxu1 %v6010_v7  ;;  %3737 = vmatpush.bf16.msra.mxu3 %v5306_v11 }
 0x136   :  { %v5721_v9 = vld [vmem:[#allocation8 + $0x948] sm:$0xf]  ;;  %v6554_v16 = vor.u32 %v7100_v6, %v6553_v5  ;;  %3724 = vmatmul.bf16.vlgmr.msra.gmra.mxu2 %v7381_v45 }
 0x137   :  { %v6892_v10 = vld [vmem:[#allocation8 + $0x964] sm:$0xf0]  ;;  %3772 = vmatpush.bf16.msrb.mxu2 %v6298_v13 }
 0x138   :  { %v5977_v14 = vld [vmem:[#allocation8 + $0xb48] sm:$0xf]  ;;  %v5722_v20 = vor.u32 %v6892_v10, %v5721_v9  ;;  %3738 = vmatmul.bf16.vlgmr.msra.gmra.mxu3 %v7383_v51 }
 0x139   :  { %v6956_v15 = vld [vmem:[#allocation8 + $0xb64] sm:$0xf0]  ;;  %3786 = vmatpush.bf16.msrb.mxu3 %v6554_v16 }
 0x13a   :  { %v6265_v18 = vld [vmem:[#allocation8 + $0xd88] sm:$0xf]  ;;  %v5978_v23 = vor.u32 %v6956_v15, %v5977_v14  ;;  %3746 = vmatpush.bf16.msrb.mxu0 %v5722_v20 }
 0x13b   :  { %v7028_v19 = vld [vmem:[#allocation8 + $0xda4] sm:$0xf0] }
 0x13c   :  { %v6521_v21 = vld [vmem:[#allocation8 + $0xf88] sm:$0xf]  ;;  %v6266_v53 = vor.u32 %v7028_v19, %v6265_v18  ;;  %3760 = vmatpush.bf16.msrb.mxu1 %v5978_v23  ;;  %v6712_v23 = vld [vmem:[#allocation8 + $0x3cc] sm:$0xf] }
 0x13d   :  { %v7092_v22 = vld [vmem:[#allocation8 + $0xfa4] sm:$0xf0] }
 0x13e   :  { %v5689_v24 = vld [vmem:[#allocation8 + $0x908] sm:$0xf]  ;;  %v6522_v31 = vor.u32 %v7092_v22, %v6521_v21  ;;  %3773 = vmatpush.bf16.msrb.mxu2 %v6266_v53  ;;  %v6648_v21 = vld [vmem:[#allocation8 + $0x1cc] sm:$0xf] }
 0x13f   :  { %v6884_v26 = vld [vmem:[#allocation8 + $0x924] sm:$0xf0]  ;;  %v4763_v22 = vld [vmem:[#allocation8 + $0x1e8] sm:$0xf0] }
 0x140   :  { %v5945_v29 = vld [vmem:[#allocation8 + $0xb08] sm:$0xf]  ;;  %v5690_v33 = vor.u32 %v6884_v26, %v5689_v24  ;;  %3787 = vmatpush.bf16.msrb.mxu3 %v6522_v31  ;;  %v5019_v26 = vld [vmem:[#allocation8 + $0x3e8] sm:$0xf0] }
 0x141   :  { %v6948_v30 = vld [vmem:[#allocation8 + $0xb24] sm:$0xf0] }
 0x142   :  { %v6233_v32 = vld [vmem:[#allocation8 + $0xd48] sm:$0xf]  ;;  %v5946_v37 = vor.u32 %v6948_v30, %v5945_v29  ;;  %3747 = vmatpush.bf16.msrb.mxu0 %v5690_v33  ;;  %v4766_v33 = vor.u32 %v6648_v21, %v4763_v22  ;;  %v6824_v22 = vld [vmem:[#allocation8 + $0x74c] sm:$0xf] }
 0x143   :  { %v7020_v28 = vld [vmem:[#allocation8 + $0xd64] sm:$0xf0] }
 0x144   :  { %v6489_v35 = vld [vmem:[#allocation8 + $0xf48] sm:$0xf]  ;;  %v6234_v40 = vor.u32 %v7020_v28, %v6233_v32  ;;  %3761 = vmatpush.bf16.msrb.mxu1 %v5946_v37 }
 0x145   :  { %v7084_v36 = vld [vmem:[#allocation8 + $0xf64] sm:$0xf0] }
 0x146   :  { %v5657_v38 = vld [vmem:[#allocation8 + $0x8c8] sm:$0xf]  ;;  %v6490_v43 = vor.u32 %v7084_v36, %v6489_v35  ;;  %3774 = vmatpush.bf16.msrb.mxu2 %v6234_v40  ;;  %v6640_v35 = vld [vmem:[#allocation8 + $0x18c] sm:$0xf]  ;;  %v5022_v36 = vor.u32 %v6712_v23, %v5019_v26 }
 0x147   :  { %v6876_v39 = vld [vmem:[#allocation8 + $0x8e4] sm:$0xf0]  ;;  %v4987_v40 = vld [vmem:[#allocation8 + $0x3a8] sm:$0xf0] }
 0x148   :  { %v5913_v41 = vld [vmem:[#allocation8 + $0xac8] sm:$0xf]  ;;  %v5658_v47 = vor.u32 %v6876_v39, %v5657_v38  ;;  %3788 = vmatpush.bf16.msrb.mxu3 %v6490_v43  ;;  %v4731_v38 = vld [vmem:[#allocation8 + $0x1a8] sm:$0xf0] }
 0x149   :  { %v6940_v42 = vld [vmem:[#allocation8 + $0xae4] sm:$0xf0]  ;;  %v6704_v39 = vld [vmem:[#allocation8 + $0x38c] sm:$0xf] }
 0x14a   :  { %v6201_v44 = vld [vmem:[#allocation8 + $0xd08] sm:$0xf]  ;;  %v5914_v50 = vor.u32 %v6940_v42, %v5913_v41  ;;  %3748 = vmatpush.bf16.msrb.mxu0 %v5658_v47  ;;  %v6776_v47 = vld [vmem:[#allocation8 + $0x5cc] sm:$0xf] }
 0x14b   :  { %v7012_v46 = vld [vmem:[#allocation8 + $0xd24] sm:$0xf0]  ;;  %v5467_v23 = vld [vmem:[#allocation8 + $0x768] sm:$0xf0] }
 0x14c   :  { %v6457_v48 = vld [vmem:[#allocation8 + $0xf08] sm:$0xf]  ;;  %v6202_v55 = vor.u32 %v7012_v46, %v6201_v44  ;;  %3762 = vmatpush.bf16.msrb.mxu1 %v5914_v50  ;;  %v6840_v50 = vld [vmem:[#allocation8 + $0x7cc] sm:$0xf] }
 0x14d   :  { %v7076_v49 = vld [vmem:[#allocation8 + $0xf24] sm:$0xf0]  ;;  %v6616_v26 = vld [vmem:[#allocation8 + $0xcc] sm:$0xf] }
 0x14e   :  { %v5625_v52 = vld [vmem:[#allocation8 + $0x888] sm:$0xf]  ;;  %v6458_v27 = vor.u32 %v7076_v49, %v6457_v48  ;;  %3775 = vmatpush.bf16.msrb.mxu2 %v6202_v55  ;;  %v5275_v48 = vld [vmem:[#allocation8 + $0x5e8] sm:$0xf0]  ;;  %v4734_v49 = vor.u32 %v6640_v35, %v4731_v38 }
 0x14f   :  { %v6868_v54 = vld [vmem:[#allocation8 + $0x8a4] sm:$0xf0]  ;;  %v5179_v35 = vld [vmem:[#allocation8 + $0x528] sm:$0xf0] }
 0x150   :  { %v5881_v56 = vld [vmem:[#allocation8 + $0xa88] sm:$0xf]  ;;  %v5626_v60 = vor.u32 %v6868_v54, %v5625_v52  ;;  %3789 = vmatpush.bf16.msrb.mxu3 %v6458_v27  ;;  %v5531_v52 = vld [vmem:[#allocation8 + $0x7e8] sm:$0xf0]  ;;  %v4990_v54 = vor.u32 %v6704_v39, %v4987_v40  ;;  %v7413_v27 = vld [vmem:[#allocation10] sm:$0xff] }
 0x151   :  { %v6932_v57 = vld [vmem:[#allocation8 + $0xaa4] sm:$0xf0]  ;;  %v5435_v38 = vld [vmem:[#allocation8 + $0x728] sm:$0xf0] }
 0x152   :  { %v6169_v58 = vld [vmem:[#allocation8 + $0xcc8] sm:$0xf]  ;;  %v5882_v0 = vor.u32 %v6932_v57, %v5881_v56  ;;  %3749 = vmatpush.bf16.msrb.mxu0 %v5626_v60  ;;  %v6632_v56 = vld [vmem:[#allocation8 + $0x14c] sm:$0xf] }
 0x153   :  { %v7004_v59 = vld [vmem:[#allocation8 + $0xce4] sm:$0xf0]  ;;  %v4699_v57 = vld [vmem:[#allocation8 + $0x168] sm:$0xf0] }
 0x154   :  { %v6425_v62 = vld [vmem:[#allocation8 + $0xec8] sm:$0xf]  ;;  %v6170_v4 = vor.u32 %v7004_v59, %v6169_v58  ;;  %3763 = vmatpush.bf16.msrb.mxu1 %v5882_v0  ;;  %v5278_v59 = vor.u32 %v6776_v47, %v5275_v48  ;;  %v6696_v60 = vld [vmem:[#allocation8 + $0x34c] sm:$0xf] }
 0x155   :  { %v7068_v63 = vld [vmem:[#allocation8 + $0xee4] sm:$0xf0]  ;;  %v6768_v0 = vld [vmem:[#allocation8 + $0x58c] sm:$0xf] }
 0x156   :  { %v5593_v1 = vld [vmem:[#allocation8 + $0x848] sm:$0xf]  ;;  %v6426_v7 = vor.u32 %v7068_v63, %v6425_v62  ;;  %3776 = vmatpush.bf16.msrb.mxu2 %v6170_v4  ;;  %v4955_v62 = vld [vmem:[#allocation8 + $0x368] sm:$0xf0]  ;;  %v5534_v63 = vor.u32 %v6840_v50, %v5531_v52  ;;  %v888_v4 = vperm.slane %v7413_v27, 0 }
 0x157   :  { %v6860_v3 = vld [vmem:[#allocation8 + $0x864] sm:$0xf0]  ;;  %v6608_v40 = vld [vmem:[#allocation8 + $0x8c] sm:$0xf] }
 0x158   :  { %v5849_v5 = vld [vmem:[#allocation8 + $0xa48] sm:$0xf]  ;;  %v5594_v10 = vor.u32 %v6860_v3, %v5593_v1  ;;  %3790 = vmatpush.bf16.msrb.mxu3 %v6426_v7  ;;  %v5243_v1 = vld [vmem:[#allocation8 + $0x5a8] sm:$0xf0]  ;;  %v4702_v3 = vor.u32 %v6632_v56, %v4699_v57  ;;  %v4958_v7 = vor.u32 %v6696_v60, %v4955_v62 }
 0x159   :  { %v6924_v6 = vld [vmem:[#allocation8 + $0xa64] sm:$0xf0]  ;;  %v6744_v48 = vld [vmem:[#allocation8 + $0x4cc] sm:$0xf] }
 0x15a   :  { %v6137_v8 = vld [vmem:[#allocation8 + $0xc88] sm:$0xf]  ;;  %v5850_v15 = vor.u32 %v6924_v6, %v5849_v5  ;;  %3750 = vmatpush.bf16.msrb.mxu0 %v5594_v10  ;;  %v6832_v5 = vld [vmem:[#allocation8 + $0x78c] sm:$0xf]  ;;  %v5246_v10 = vor.u32 %v6768_v0, %v5243_v1 }
 0x15b   :  { %v6996_v9 = vld [vmem:[#allocation8 + $0xca4] sm:$0xf0]  ;;  %v5499_v6 = vld [vmem:[#allocation8 + $0x7a8] sm:$0xf0] }
 0x15c   :  { %v6393_v11 = vld [vmem:[#allocation8 + $0xe88] sm:$0xf]  ;;  %v6138_v20 = vor.u32 %v6996_v9, %v6137_v8  ;;  %3764 = vmatpush.bf16.msrb.mxu1 %v5850_v15  ;;  %v6624_v8 = vld [vmem:[#allocation8 + $0x10c] sm:$0xf]  ;;  %v5502_v15 = vor.u32 %v6832_v5, %v5499_v6 }
 0x15d   :  { %v7060_v13 = vld [vmem:[#allocation8 + $0xea4] sm:$0xf0]  ;;  %v4667_v9 = vld [vmem:[#allocation8 + $0x128] sm:$0xf0] }
 0x15e   :  { %v5561_v14 = vld [vmem:[#allocation8 + $0x808] sm:$0xf]  ;;  %v6394_v24 = vor.u32 %v7060_v13, %v6393_v11  ;;  %3777 = vmatpush.bf16.msrb.mxu2 %v6138_v20  ;;  %v6688_v11 = vld [vmem:[#allocation8 + $0x30c] sm:$0xf]  ;;  %v3487_v20 = vpop.f32.mrf.mxu1  ;;  %v4670_v21 = vor.u32 %v6624_v8, %v4667_v9 }
 0x15f   :  { %v6852_v16 = vld [vmem:[#allocation8 + $0x824] sm:$0xf0]  ;;  %v4923_v13 = vld [vmem:[#allocation8 + $0x328] sm:$0xf0] }
 0x160   :  { %v5817_v18 = vld [vmem:[#allocation8 + $0xa08] sm:$0xf]  ;;  %v5562_v30 = vor.u32 %v6852_v16, %v5561_v14  ;;  %3791 = vmatpush.bf16.msrb.mxu3 %v6394_v24  ;;  %v3473_v14 = vpop.f32.mrf.mxu0  ;;  %v6760_v16 = vld [vmem:[#allocation8 + $0x54c] sm:$0xf]  ;;  %v4926_v24 = vor.u32 %v6688_v11, %v4923_v13 }
 0x161   :  { %v6916_v19 = vld [vmem:[#allocation8 + $0xa24] sm:$0xf0]  ;;  %v6600_v57 = vld [vmem:[#allocation8 + $0x4c] sm:$0xf] }
 0x162   :  { %v6105_v53 = vld [vmem:[#allocation8 + $0xc48] sm:$0xf]  ;;  %v5818_v28 = vor.u32 %v6916_v19, %v5817_v18  ;;  %3751 = vmatpush.bf16.msrb.mxu0 %v5562_v30  ;;  %v5211_v18 = vld [vmem:[#allocation8 + $0x568] sm:$0xf0]  ;;  %v3474_v19 = vadd.f32 %v3473_v14, %v888_v4 }
 0x163   :  { %v6988_v29 = vld [vmem:[#allocation8 + $0xc64] sm:$0xf0]  ;;  %v5214_v30 = vor.u32 %v6760_v16, %v5211_v18  ;;  %v6664_v60 = vld [vmem:[#allocation8 + $0x24c] sm:$0xf] }
 0x164   :  { %v6361_v31 = vld [vmem:[#allocation8 + $0xe48] sm:$0xf]  ;;  %v6106_v37 = vor.u32 %v6988_v29, %v6105_v53  ;;  %3765 = vmatpush.bf16.msrb.mxu1 %v5818_v28  ;;  %v4635_v53 = vld [vmem:[#allocation8 + $0xe8] sm:$0xf0]  ;;  %v3488_v29 = vadd.f32 %v3487_v20, %v3474_v19  ;;  %v5470_v28 = vor.u32 %v6824_v22, %v5467_v23 }
 0x165   :  { %v7052_v32 = vld [vmem:[#allocation8 + $0xe64] sm:$0xf0]  ;;  %3752 = vmatmul.bf16.vlgmr.msrb.gmra.mxu0 %v7389_v25  ;;  %v4827_v62 = vld [vmem:[#allocation8 + $0x268] sm:$0xf0] }
 0x166   :  { %v6362_v41 = vor.u32 %v7052_v32, %v6361_v31  ;;  %v6073_v42 = vld [vmem:[#allocation8 + $0xc08] sm:$0xf]  ;;  %3800 = vmatpush.bf16.msra.mxu0 %v4766_v33  ;;  %3778 = vmatpush.bf16.msrb.mxu2 %v6106_v37  ;;  %v6680_v31 = vld [vmem:[#allocation8 + $0x2cc] sm:$0xf]  ;;  %v7424_v50 = vpop.f32.mrf.mxu1  ;;  %v4830_v11 = vor.u32 %v6664_v60, %v4827_v62 }
 0x167   :  { %v6980_v43 = vld [vmem:[#allocation8 + $0xc24] sm:$0xf0]  ;;  %3766 = vmatmul.bf16.vlgmr.msrb.gmra.mxu1 %v7391_v34  ;;  %v4891_v32 = vld [vmem:[#allocation8 + $0x2e8] sm:$0xf0] }
 0x168   :  { %v6329_v44 = vld [vmem:[#allocation8 + $0xe08] sm:$0xf]  ;;  %3814 = vmatpush.bf16.msra.mxu1 %v5022_v36  ;;  %v6074_v55 = vor.u32 %v6980_v43, %v6073_v42  ;;  %3792 = vmatpush.bf16.msrb.mxu3 %v6362_v41  ;;  %v6752_v33 = vld [vmem:[#allocation8 + $0x50c] sm:$0xf]  ;;  %v4638_v36 = vor.u32 %v6616_v26, %v4635_v53  ;;  %v4894_v39 = vor.u32 %v6680_v31, %v4891_v32 }
 0x169   :  { %v7044_v46 = vld [vmem:[#allocation8 + $0xe24] sm:$0xf0]  ;;  %v6816_v37 = vld [vmem:[#allocation8 + $0x70c] sm:$0xf]  ;;  %v5182_v42 = vor.u32 %v6752_v33, %v5179_v35 }
 0x16a   :  { %v6330_v58 = vor.u32 %v7044_v46, %v6329_v44  ;;  %3801 = vmatpush.bf16.msra.mxu0 %v4734_v49  ;;  %3779 = vmatpush.bf16.msrb.mxu2 %v6074_v55  ;;  %v4603_v41 = vld [vmem:[#allocation8 + $0xa8] sm:$0xf0]  ;;  %v7422_v46 = vpop.f32.mrf.mxu0  ;;  %v5438_v47 = vor.u32 %v6816_v37, %v5435_v38 }
 0x16b   :  { %v6672_v43 = vld [vmem:[#allocation8 + $0x28c] sm:$0xf]  ;;  %v4606_v52 = vor.u32 %v6608_v40, %v4603_v41 }
 0x16c   :  { %3815 = vmatpush.bf16.msra.mxu1 %v4990_v54  ;;  %3793 = vmatpush.bf16.msrb.mxu3 %v6330_v58  ;;  %v4859_v44 = vld [vmem:[#allocation8 + $0x2a8] sm:$0xf0] }
 0x16d   :  { %3780 = vmatmul.bf16.vlgmr.msrb.gmra.mxu2 %v7395_v61  ;;  %v5147_v49 = vld [vmem:[#allocation8 + $0x4e8] sm:$0xf0]  ;;  %v4862_v56 = vor.u32 %v6672_v43, %v4859_v44 }
 0x16e   :  { %3828 = vmatpush.bf16.msra.mxu2 %v5278_v59  ;;  %3802 = vmatpush.bf16.msra.mxu0 %v4702_v3  ;;  %v6808_v54 = vld [vmem:[#allocation8 + $0x6cc] sm:$0xf]  ;;  %v5150_v59 = vor.u32 %v6744_v48, %v5147_v49  ;;  %v3501_v3 = vpop.f32.mrf.mxu2 }
 0x16f   :  { %3794 = vmatmul.bf16.vlgmr.msrb.gmra.mxu3 %v7397_v2  ;;  %v5403_v55 = vld [vmem:[#allocation8 + $0x6e8] sm:$0xf0]  ;;  %v3502_v9 = vadd.f32 %v3501_v3, %v3488_v29 }
 0x170   :  { %3842 = vmatpush.bf16.msra.mxu3 %v5534_v63  ;;  %3816 = vmatpush.bf16.msra.mxu1 %v4958_v7  ;;  %v4571_v58 = vld [vmem:[#allocation8 + $0x68] sm:$0xf0]  ;;  %v5406_v63 = vor.u32 %v6808_v54, %v5403_v55 }
 0x171   :  { %v6736_v0 = vld [vmem:[#allocation8 + $0x48c] sm:$0xf]  ;;  %v4574_v5 = vor.u32 %v6600_v57, %v4571_v58 }
 0x172   :  { %3829 = vmatpush.bf16.msra.mxu2 %v5246_v10  ;;  %3803 = vmatpush.bf16.msra.mxu0 %v4670_v21  ;;  %v5115_v1 = vld [vmem:[#allocation8 + $0x4a8] sm:$0xf0]  ;;  %v3515_v10 = vpop.f32.mrf.mxu3  ;;  %v3529_v22 = vpop.f32.mrf.mxu0 }
 0x173   :  { %v6800_v6 = vld [vmem:[#allocation8 + $0x68c] sm:$0xf]  ;;  %v5118_v16 = vor.u32 %v6736_v0, %v5115_v1  ;;  %v3516_v21 = vadd.f32 %v3515_v10, %v3502_v9 }
 0x174   :  { %3843 = vmatpush.bf16.msra.mxu3 %v5502_v15  ;;  %3817 = vmatpush.bf16.msra.mxu1 %v4926_v24  ;;  %v5371_v7 = vld [vmem:[#allocation8 + $0x6a8] sm:$0xf0] }
 0x175   :  { %v6592_v8 = vld [vmem:[#allocation8 + $0xc] sm:$0xf]  ;;  %v5374_v23 = vor.u32 %v6800_v6, %v5371_v7 }
 0x176   :  { %3830 = vmatpush.bf16.msra.mxu2 %v5214_v30  ;;  %3804 = vmatpush.bf16.msra.mxu0 %v4638_v36  ;;  %v4539_v13 = vld [vmem:[#allocation8 + $0x28] sm:$0xf0]  ;;  %v3543_v30 = vpop.f32.mrf.mxu1  ;;  %v7426_v49 = vpop.f32.mrf.mxu2 }
 0x177   :  { %v6656_v14 = vld [vmem:[#allocation8 + $0x20c] sm:$0xf]  ;;  %v4542_v29 = vor.u32 %v6592_v8, %v4539_v13 }
 0x178   :  { %3844 = vmatpush.bf16.msra.mxu3 %v5470_v28  ;;  %3818 = vmatpush.bf16.msra.mxu1 %v4894_v39  ;;  %v4795_v15 = vld [vmem:[#allocation8 + $0x228] sm:$0xf0]  ;;  %v3530_v28 = vadd.f32 %v3529_v22, %v3516_v21 }
 0x179   :  { %v6904_v18 = vld [vmem:[#allocation8 + $0x9cc] sm:$0xf]  ;;  %v4798_v33 = vor.u32 %v6656_v14, %v4795_v15 }
 0x17a   :  { %3831 = vmatpush.bf16.msra.mxu2 %v5182_v42  ;;  %3805 = vmatpush.bf16.msra.mxu0 %v4606_v52  ;;  %v5787_v19 = vld [vmem:[#allocation8 + $0x9e8] sm:$0xf0]  ;;  %v3544_v42 = vadd.f32 %v3543_v30, %v3530_v28  ;;  %v7431_v1 = vpop.f32.mrf.mxu0 }
 0x17b   :  { %v6968_v20 = vld [vmem:[#allocation8 + $0xbcc] sm:$0xf]  ;;  %v5790_v35 = vor.u32 %v6904_v18, %v5787_v19 }
 0x17c   :  { %3845 = vmatpush.bf16.msra.mxu3 %v5438_v47  ;;  %3819 = vmatpush.bf16.msra.mxu1 %v4862_v56  ;;  %v6043_v24 = vld [vmem:[#allocation8 + $0xbe8] sm:$0xf0]  ;;  %v7428_v56 = vpop.f32.mrf.mxu3 }
 0x17d   :  { %v6728_v26 = vld [vmem:[#allocation8 + $0x44c] sm:$0xf]  ;;  %v6046_v37 = vor.u32 %v6968_v20, %v6043_v24 }
 0x17e   :  { %3832 = vmatpush.bf16.msra.mxu2 %v5150_v59  ;;  %v5083_v53 = vld [vmem:[#allocation8 + $0x468] sm:$0xf0]  ;;  %3806 = vmatpush.bf16.msra.mxu0 %v4574_v5  ;;  %v7434_v8 = vpop.f32.mrf.mxu1 }
 0x17f   :  { %v6792_v31 = vld [vmem:[#allocation8 + $0x64c] sm:$0xf]  ;;  %v5086_v38 = vor.u32 %v6728_v26, %v5083_v53 }
 0x180   :  { %3846 = vmatpush.bf16.msra.mxu3 %v5406_v63  ;;  %v5339_v32 = vld [vmem:[#allocation8 + $0x668] sm:$0xf0]  ;;  %3820 = vmatpush.bf16.msra.mxu1 %v4830_v11 }
 0x181   :  { %v6896_v36 = vld [vmem:[#allocation8 + $0x98c] sm:$0xf]  ;;  %v5342_v43 = vor.u32 %v6792_v31, %v5339_v32  ;;  %v889_v31 = vperm.slane %v7413_v27, 1 }
 0x182   :  { %3833 = vmatpush.bf16.msra.mxu2 %v5118_v16  ;;  %v5755_v39 = vld [vmem:[#allocation8 + $0x9a8] sm:$0xf0]  ;;  %3807 = vmatpush.bf16.msra.mxu0 %v4542_v29 }
 0x183   :  { %v6960_v40 = vld [vmem:[#allocation8 + $0xb8c] sm:$0xf]  ;;  %v5758_v57 = vor.u32 %v6896_v36, %v5755_v39 }
 0x184   :  { %v6011_v41 = vld [vmem:[#allocation8 + $0xba8] sm:$0xf0]  ;;  %3847 = vmatpush.bf16.msra.mxu3 %v5374_v23  ;;  %3821 = vmatpush.bf16.msra.mxu1 %v4798_v33  ;;  %v3557_v23 = vpop.f32.mrf.mxu2  ;;  %v3571_v29 = vpop.f32.mrf.mxu3 }
 0x185   :  { %v6720_v44 = vld [vmem:[#allocation8 + $0x40c] sm:$0xf]  ;;  %v6014_v60 = vor.u32 %v6960_v40, %v6011_v41  ;;  %3808 = vmatmul.bf16.vlgmr.msra.gmra.mxu0 %v7373_v12  ;;  %v3558_v30 = vadd.f32 %v3557_v23, %v3544_v42  ;;  %v3585_v42 = vpop.f32.mrf.mxu0 }
 0x186   :  { %v5051_v47 = vld [vmem:[#allocation8 + $0x428] sm:$0xf0]  ;;  %3856 = vmatpush.bf16.msrb.mxu0 %v5790_v35  ;;  %3834 = vmatpush.bf16.msra.mxu2 %v5086_v38 }
 0x187   :  { %v6784_v48 = vld [vmem:[#allocation8 + $0x60c] sm:$0xf]  ;;  %v5054_v62 = vor.u32 %v6720_v44, %v5051_v47  ;;  %3822 = vmatmul.bf16.vlgmr.msra.gmra.mxu1 %v7375_v17  ;;  %v7439_v38 = vadd.f32 %v3571_v29, %v3558_v30 }
 0x188   :  { %v5307_v52 = vld [vmem:[#allocation8 + $0x628] sm:$0xf0]  ;;  %3870 = vmatpush.bf16.msrb.mxu1 %v6046_v37  ;;  %3848 = vmatpush.bf16.msra.mxu3 %v5342_v43 }
 0x189   :  { %v7032_v54 = vld [vmem:[#allocation8 + $0xdcc] sm:$0xf]  ;;  %v5310_v3 = vor.u32 %v6784_v48, %v5307_v52  ;;  %v3586_v48 = vadd.f32 %v3585_v42, %v889_v31  ;;  %v6717_v42 = vld [vmem:[#allocation8 + $0x3ec] sm:$0xf0] }
 0x18a   :  { %v6299_v55 = vld [vmem:[#allocation8 + $0xde8] sm:$0xf0]  ;;  %3857 = vmatpush.bf16.msrb.mxu0 %v5758_v57  ;;  %3835 = vmatpush.bf16.msra.mxu2 %v5054_v62  ;;  %v3599_v57 = vpop.f32.mrf.mxu1 }
 0x18b   :  { %v7096_v58 = vld [vmem:[#allocation8 + $0xfcc] sm:$0xf]  ;;  %v6302_v5 = vor.u32 %v7032_v54, %v6299_v55  ;;  %v3600_v62 = vadd.f32 %v3599_v57, %v3586_v48 }
 0x18c   :  { %v6555_v59 = vld [vmem:[#allocation8 + $0xfe8] sm:$0xf0]  ;;  %3871 = vmatpush.bf16.msrb.mxu1 %v6014_v60  ;;  %3849 = vmatpush.bf16.msra.mxu3 %v5310_v3 }
 0x18d   :  { %v6888_v63 = vld [vmem:[#allocation8 + $0x94c] sm:$0xf]  ;;  %v6558_v9 = vor.u32 %v7096_v58, %v6555_v59  ;;  %3836 = vmatmul.bf16.vlgmr.msra.gmra.mxu2 %v7381_v45 }
 0x18e   :  { %v5723_v0 = vld [vmem:[#allocation8 + $0x968] sm:$0xf0]  ;;  %3884 = vmatpush.bf16.msrb.mxu2 %v6302_v5  ;;  %v7443_v5 = vpop.f32.mrf.mxu2 }
 0x18f   :  { %v6952_v6 = vld [vmem:[#allocation8 + $0xb4c] sm:$0xf]  ;;  %v5726_v13 = vor.u32 %v6888_v63, %v5723_v0  ;;  %3850 = vmatmul.bf16.vlgmr.msra.gmra.mxu3 %v7383_v51 }
 0x190   :  { %v5979_v7 = vld [vmem:[#allocation8 + $0xb68] sm:$0xf0]  ;;  %3898 = vmatpush.bf16.msrb.mxu3 %v6558_v9 }
 0x191   :  { %v7024_v10 = vld [vmem:[#allocation8 + $0xd8c] sm:$0xf]  ;;  %v5982_v16 = vor.u32 %v6952_v6, %v5979_v7  ;;  %3858 = vmatpush.bf16.msrb.mxu0 %v5726_v13 }
 0x192   :  { %v6267_v11 = vld [vmem:[#allocation8 + $0xda8] sm:$0xf0] }
 0x193   :  { %v7088_v14 = vld [vmem:[#allocation8 + $0xf8c] sm:$0xf]  ;;  %v6270_v20 = vor.u32 %v7024_v10, %v6267_v11  ;;  %3872 = vmatpush.bf16.msrb.mxu1 %v5982_v16  ;;  %v7445_v10 = vpop.f32.mrf.mxu3 }
 0x194   :  { %v6523_v15 = vld [vmem:[#allocation8 + $0xfa8] sm:$0xf0] }
 0x195   :  { %v6880_v18 = vld [vmem:[#allocation8 + $0x90c] sm:$0xf]  ;;  %v6526_v24 = vor.u32 %v7088_v14, %v6523_v15  ;;  %3885 = vmatpush.bf16.msrb.mxu2 %v6270_v20 }
 0x196   :  { %v5691_v19 = vld [vmem:[#allocation8 + $0x928] sm:$0xf0] }
 0x197   :  { %v6944_v21 = vld [vmem:[#allocation8 + $0xb0c] sm:$0xf]  ;;  %v5694_v32 = vor.u32 %v6880_v18, %v5691_v19  ;;  %3899 = vmatpush.bf16.msrb.mxu3 %v6526_v24 }
 0x198   :  { %v5947_v22 = vld [vmem:[#allocation8 + $0xb28] sm:$0xf0] }
 0x199   :  { %v7016_v26 = vld [vmem:[#allocation8 + $0xd4c] sm:$0xf]  ;;  %v5950_v35 = vor.u32 %v6944_v21, %v5947_v22  ;;  %3859 = vmatpush.bf16.msrb.mxu0 %v5694_v32 }
 0x19a   :  { %v6235_v53 = vld [vmem:[#allocation8 + $0xd68] sm:$0xf0] }
 0x19b   :  { %v7080_v28 = vld [vmem:[#allocation8 + $0xf4c] sm:$0xf]  ;;  %v6238_v39 = vor.u32 %v7016_v26, %v6235_v53  ;;  %3873 = vmatpush.bf16.msrb.mxu1 %v5950_v35 }
 0x19c   :  { %v6491_v33 = vld [vmem:[#allocation8 + $0xf68] sm:$0xf0] }
 0x19d   :  { %v6872_v36 = vld [vmem:[#allocation8 + $0x8cc] sm:$0xf]  ;;  %v6494_v43 = vor.u32 %v7080_v28, %v6491_v33  ;;  %3886 = vmatpush.bf16.msrb.mxu2 %v6238_v39  ;;  %v6653_v39 = vld [vmem:[#allocation8 + $0x1ec] sm:$0xf0] }
 0x19e   :  { %v5659_v37 = vld [vmem:[#allocation8 + $0x8e8] sm:$0xf0] }
 0x19f   :  { %v6936_v40 = vld [vmem:[#allocation8 + $0xacc] sm:$0xf]  ;;  %v5662_v52 = vor.u32 %v6872_v36, %v5659_v37  ;;  %3900 = vmatpush.bf16.msrb.mxu3 %v6494_v43  ;;  %v4769_v37 = vld [vmem:[#allocation8 + $0x1d0] sm:$0xf] }
 0x1a0   :  { %v5915_v41 = vld [vmem:[#allocation8 + $0xae8] sm:$0xf0] }
 0x1a1   :  { %v7008_v44 = vld [vmem:[#allocation8 + $0xd0c] sm:$0xf]  ;;  %v5918_v58 = vor.u32 %v6936_v40, %v5915_v41  ;;  %3860 = vmatpush.bf16.msrb.mxu0 %v5662_v52  ;;  %v5025_v40 = vld [vmem:[#allocation8 + $0x3d0] sm:$0xf] }
 0x1a2   :  { %v6203_v47 = vld [vmem:[#allocation8 + $0xd28] sm:$0xf0] }
 0x1a3   :  { %v7072_v54 = vld [vmem:[#allocation8 + $0xf0c] sm:$0xf]  ;;  %v6206_v63 = vor.u32 %v7008_v44, %v6203_v47  ;;  %3874 = vmatpush.bf16.msrb.mxu1 %v5918_v58  ;;  %v3613_v47 = vpop.f32.mrf.mxu2  ;;  %v4770_v58 = vor.u32 %v6653_v39, %v4769_v37  ;;  %v5505_v39 = vld [vmem:[#allocation8 + $0x790] sm:$0xf] }
 0x1a4   :  { %v6459_v55 = vld [vmem:[#allocation8 + $0xf28] sm:$0xf0] }
 0x1a5   :  { %v6864_v59 = vld [vmem:[#allocation8 + $0x88c] sm:$0xf]  ;;  %v6462_v6 = vor.u32 %v7072_v54, %v6459_v55  ;;  %3887 = vmatpush.bf16.msrb.mxu2 %v6206_v63  ;;  %v3614_v55 = vadd.f32 %v3613_v47, %v3600_v62  ;;  %v5026_v63 = vor.u32 %v6717_v42, %v5025_v40  ;;  %v6837_v40 = vld [vmem:[#allocation8 + $0x7ac] sm:$0xf0] }
 0x1a6   :  { %v5627_v60 = vld [vmem:[#allocation8 + $0x8a8] sm:$0xf0] }
 0x1a7   :  { %v6928_v0 = vld [vmem:[#allocation8 + $0xa8c] sm:$0xf]  ;;  %v5630_v11 = vor.u32 %v6864_v59, %v5627_v60  ;;  %3901 = vmatpush.bf16.msrb.mxu3 %v6462_v6  ;;  %v4737_v59 = vld [vmem:[#allocation8 + $0x190] sm:$0xf]  ;;  %v3627_v60 = vpop.f32.mrf.mxu3 }
 0x1a8   :  { %v5883_v3 = vld [vmem:[#allocation8 + $0xaa8] sm:$0xf0]  ;;  %v4993_v6 = vld [vmem:[#allocation8 + $0x390] sm:$0xf] }
 0x1a9   :  { %v7000_v7 = vld [vmem:[#allocation8 + $0xccc] sm:$0xf]  ;;  %v5886_v15 = vor.u32 %v6928_v0, %v5883_v3  ;;  %3861 = vmatpush.bf16.msrb.mxu0 %v5630_v11  ;;  %v6645_v3 = vld [vmem:[#allocation8 + $0x1ac] sm:$0xf0] }
 0x1aa   :  { %v6171_v9 = vld [vmem:[#allocation8 + $0xce8] sm:$0xf0] }
 0x1ab   :  { %v7064_v13 = vld [vmem:[#allocation8 + $0xecc] sm:$0xf]  ;;  %v6174_v19 = vor.u32 %v7000_v7, %v6171_v9  ;;  %3875 = vmatpush.bf16.msrb.mxu1 %v5886_v15  ;;  %v6709_v7 = vld [vmem:[#allocation8 + $0x3ac] sm:$0xf0]  ;;  %v7447_v9 = vadd.f32 %v3627_v60, %v3614_v55 }
 0x1ac   :  { %v6427_v14 = vld [vmem:[#allocation8 + $0xee8] sm:$0xf0]  ;;  %v5217_v55 = vld [vmem:[#allocation8 + $0x550] sm:$0xf] }
 0x1ad   :  { %v6856_v16 = vld [vmem:[#allocation8 + $0x84c] sm:$0xf]  ;;  %v6430_v22 = vor.u32 %v7064_v13, %v6427_v14  ;;  %3888 = vmatpush.bf16.msrb.mxu2 %v6174_v19  ;;  %v4738_v19 = vor.u32 %v6645_v3, %v4737_v59  ;;  %v5473_v59 = vld [vmem:[#allocation8 + $0x750] sm:$0xf] }
 0x1ae   :  { %v5595_v18 = vld [vmem:[#allocation8 + $0x868] sm:$0xf0]  ;;  %v6829_v60 = vld [vmem:[#allocation8 + $0x76c] sm:$0xf0] }
 0x1af   :  { %v6920_v20 = vld [vmem:[#allocation8 + $0xa4c] sm:$0xf]  ;;  %v5598_v26 = vor.u32 %v6856_v16, %v5595_v18  ;;  %3902 = vmatpush.bf16.msrb.mxu3 %v6430_v22  ;;  %v5281_v16 = vld [vmem:[#allocation8 + $0x5d0] sm:$0xf]  ;;  %v4994_v22 = vor.u32 %v6709_v7, %v4993_v6 }
 0x1b0   :  { %v5851_v21 = vld [vmem:[#allocation8 + $0xa68] sm:$0xf0]  ;;  %v6781_v18 = vld [vmem:[#allocation8 + $0x5ec] sm:$0xf0] }
 0x1b1   :  { %v6992_v23 = vld [vmem:[#allocation8 + $0xc8c] sm:$0xf]  ;;  %v5854_v32 = vor.u32 %v6920_v20, %v5851_v21  ;;  %3862 = vmatpush.bf16.msrb.mxu0 %v5598_v26  ;;  %v5537_v20 = vld [vmem:[#allocation8 + $0x7d0] sm:$0xf] }
 0x1b2   :  { %v6139_v24 = vld [vmem:[#allocation8 + $0xca8] sm:$0xf0]  ;;  %v6845_v21 = vld [vmem:[#allocation8 + $0x7ec] sm:$0xf0] }
 0x1b3   :  { %v7056_v53 = vld [vmem:[#allocation8 + $0xe8c] sm:$0xf]  ;;  %v6142_v36 = vor.u32 %v6992_v23, %v6139_v24  ;;  %3876 = vmatpush.bf16.msrb.mxu1 %v5854_v32  ;;  %v4705_v24 = vld [vmem:[#allocation8 + $0x150] sm:$0xf] }
 0x1b4   :  { %v6395_v30 = vld [vmem:[#allocation8 + $0xea8] sm:$0xf0]  ;;  %v6637_v26 = vld [vmem:[#allocation8 + $0x16c] sm:$0xf0] }
 0x1b5   :  { %v6848_v29 = vld [vmem:[#allocation8 + $0x80c] sm:$0xf]  ;;  %v6398_v41 = vor.u32 %v7056_v53, %v6395_v30  ;;  %3889 = vmatpush.bf16.msrb.mxu2 %v6142_v36  ;;  %v5282_v30 = vor.u32 %v6781_v18, %v5281_v16  ;;  %v6701_v32 = vld [vmem:[#allocation8 + $0x36c] sm:$0xf0]  ;;  %v4706_v37 = vor.u32 %v6637_v26, %v4705_v24 }
 0x1b6   :  { %v5563_v28 = vld [vmem:[#allocation8 + $0x828] sm:$0xf0]  ;;  %v6773_v36 = vld [vmem:[#allocation8 + $0x5ac] sm:$0xf0] }
 0x1b7   :  { %v6912_v33 = vld [vmem:[#allocation8 + $0xa0c] sm:$0xf]  ;;  %v5566_v48 = vor.u32 %v6848_v29, %v5563_v28  ;;  %3903 = vmatpush.bf16.msrb.mxu3 %v6398_v41  ;;  %v4961_v29 = vld [vmem:[#allocation8 + $0x350] sm:$0xf]  ;;  %v7450_v28 = vpop.f32.mrf.mxu0  ;;  %v7453_v41 = vpop.f32.mrf.mxu1 }
 0x1b8   :  { %v5819_v35 = vld [vmem:[#allocation8 + $0xa28] sm:$0xf0]  ;;  %v4962_v42 = vor.u32 %v6701_v32, %v4961_v29  ;;  %v6621_v3 = vld [vmem:[#allocation8 + $0xec] sm:$0xf0]  ;;  %v7458_v32 = vpop.f32.mrf.mxu2 }
 0x1b9   :  { %v6984_v43 = vld [vmem:[#allocation8 + $0xc4c] sm:$0xf]  ;;  %v5822_v57 = vor.u32 %v6912_v33, %v5819_v35  ;;  %3863 = vmatpush.bf16.msrb.mxu0 %v5566_v48  ;;  %v5538_v33 = vor.u32 %v6845_v21, %v5537_v20  ;;  %v5249_v35 = vld [vmem:[#allocation8 + $0x590] sm:$0xf] }
 0x1ba   :  { %v6107_v44 = vld [vmem:[#allocation8 + $0xc68] sm:$0xf0]  ;;  %v5250_v47 = vor.u32 %v6773_v36, %v5249_v35  ;;  %v4929_v48 = vld [vmem:[#allocation8 + $0x310] sm:$0xf] }
 0x1bb   :  { %v7048_v52 = vld [vmem:[#allocation8 + $0xe4c] sm:$0xf]  ;;  %v6110_v0 = vor.u32 %v6984_v43, %v6107_v44  ;;  %3877 = vmatpush.bf16.msrb.mxu1 %v5822_v57  ;;  %v4673_v43 = vld [vmem:[#allocation8 + $0x110] sm:$0xf] }
 0x1bc   :  { %v6363_v54 = vld [vmem:[#allocation8 + $0xe68] sm:$0xf0]  ;;  %3864 = vmatmul.bf16.vlgmr.msrb.gmra.mxu0 %v7389_v25  ;;  %v6629_v44 = vld [vmem:[#allocation8 + $0x12c] sm:$0xf0] }
 0x1bd   :  { %v6366_v11 = vor.u32 %v7048_v52, %v6363_v54  ;;  %v6976_v13 = vld [vmem:[#allocation8 + $0xc0c] sm:$0xf]  ;;  %3912 = vmatpush.bf16.msra.mxu0 %v4770_v58  ;;  %3890 = vmatpush.bf16.msrb.mxu2 %v6110_v0  ;;  %v6693_v52 = vld [vmem:[#allocation8 + $0x32c] sm:$0xf0]  ;;  %v5506_v54 = vor.u32 %v6837_v40, %v5505_v39  ;;  %v4674_v58 = vor.u32 %v6629_v44, %v4673_v43  ;;  %v7460_v40 = vpop.f32.mrf.mxu3 }
 0x1be   :  { %v6075_v14 = vld [vmem:[#allocation8 + $0xc28] sm:$0xf0]  ;;  %3878 = vmatmul.bf16.vlgmr.msrb.gmra.mxu1 %v7391_v34  ;;  %v6765_v57 = vld [vmem:[#allocation8 + $0x56c] sm:$0xf0] }
 0x1bf   :  { %v7040_v15 = vld [vmem:[#allocation8 + $0xe0c] sm:$0xf]  ;;  %3926 = vmatpush.bf16.msra.mxu1 %v5026_v63  ;;  %v6078_v23 = vor.u32 %v6976_v13, %v6075_v14  ;;  %3904 = vmatpush.bf16.msrb.mxu3 %v6366_v11  ;;  %v4930_v63 = vor.u32 %v6693_v52, %v4929_v48  ;;  %v4641_v0 = vld [vmem:[#allocation8 + $0xd0] sm:$0xf]  ;;  %v5218_v6 = vor.u32 %v6765_v57, %v5217_v55  ;;  %v3641_v13 = vpop.f32.mrf.mxu0  ;;  %v3655_v21 = vpop.f32.mrf.mxu1 }
 0x1c0   :  { %v6331_v62 = vld [vmem:[#allocation8 + $0xe28] sm:$0xf0]  ;;  %v4897_v7 = vld [vmem:[#allocation8 + $0x2d0] sm:$0xf]  ;;  %v5474_v14 = vor.u32 %v6829_v60, %v5473_v59  ;;  %v3642_v16 = vadd.f32 %v3641_v13, %v7447_v9  ;;  %v4642_v18 = vor.u32 %v6621_v3, %v4641_v0 }
 0x1c1   :  { %v6334_v53 = vor.u32 %v7040_v15, %v6331_v62  ;;  %3913 = vmatpush.bf16.msra.mxu0 %v4738_v19  ;;  %3891 = vmatpush.bf16.msrb.mxu2 %v6078_v23  ;;  %v6685_v11 = vld [vmem:[#allocation8 + $0x2ec] sm:$0xf0] }
 0x1c2   :  { %v5185_v15 = vld [vmem:[#allocation8 + $0x510] sm:$0xf]  ;;  %v3656_v26 = vadd.f32 %v3655_v21, %v3642_v16  ;;  %v3669_v16 = vpop.f32.mrf.mxu2 }
 0x1c3   :  { %3927 = vmatpush.bf16.msra.mxu1 %v4994_v22  ;;  %3905 = vmatpush.bf16.msrb.mxu3 %v6334_v53  ;;  %v6757_v62 = vld [vmem:[#allocation8 + $0x52c] sm:$0xf0]  ;;  %v4898_v22 = vor.u32 %v6685_v11, %v4897_v7 }
 0x1c4   :  { %3892 = vmatmul.bf16.vlgmr.msrb.gmra.mxu2 %v7395_v61  ;;  %v5441_v19 = vld [vmem:[#allocation8 + $0x710] sm:$0xf]  ;;  %v5186_v53 = vor.u32 %v6757_v62, %v5185_v15 }
 0x1c5   :  { %3940 = vmatpush.bf16.msra.mxu2 %v5282_v30  ;;  %3914 = vmatpush.bf16.msra.mxu0 %v4706_v37  ;;  %v6821_v20 = vld [vmem:[#allocation8 + $0x72c] sm:$0xf0] }
 0x1c6   :  { %3906 = vmatmul.bf16.vlgmr.msrb.gmra.mxu3 %v7397_v2  ;;  %v4609_v23 = vld [vmem:[#allocation8 + $0x90] sm:$0xf] }
 0x1c7   :  { %3954 = vmatpush.bf16.msra.mxu3 %v5538_v33  ;;  %3928 = vmatpush.bf16.msra.mxu1 %v4962_v42  ;;  %v6613_v24 = vld [vmem:[#allocation8 + $0xac] sm:$0xf0]  ;;  %v5442_v33 = vor.u32 %v6821_v20, %v5441_v19 }
 0x1c8   :  { %v4865_v30 = vld [vmem:[#allocation8 + $0x290] sm:$0xf]  ;;  %v4610_v36 = vor.u32 %v6613_v24, %v4609_v23  ;;  %v3670_v23 = vadd.f32 %v3669_v16, %v3656_v26 }
 0x1c9   :  { %3941 = vmatpush.bf16.msra.mxu2 %v5250_v47  ;;  %3915 = vmatpush.bf16.msra.mxu0 %v4674_v58  ;;  %v6677_v29 = vld [vmem:[#allocation8 + $0x2ac] sm:$0xf0] }
 0x1ca   :  { %v5153_v35 = vld [vmem:[#allocation8 + $0x4d0] sm:$0xf]  ;;  %v4866_v42 = vor.u32 %v6677_v29, %v4865_v30  ;;  %v4360_v29 = vmax.f32 %v7439_v38, 0.0 }
 0x1cb   :  { %3955 = vmatpush.bf16.msra.mxu3 %v5506_v54  ;;  %3929 = vmatpush.bf16.msra.mxu1 %v4930_v63  ;;  %v6749_v9 = vld [vmem:[#allocation8 + $0x4ec] sm:$0xf0]  ;;  %v7462_v54 = vld [vmem:[#allocation11] sm:$0xff] }
 0x1cc   :  { %v5409_v37 = vld [vmem:[#allocation8 + $0x6d0] sm:$0xf]  ;;  %v5154_v47 = vor.u32 %v6749_v9, %v5153_v35  ;;  %v4379_v35 = vperm.slane %v7462_v54, 1 }
 0x1cd   :  { %3942 = vmatpush.bf16.msra.mxu2 %v5218_v6  ;;  %3916 = vmatpush.bf16.msra.mxu0 %v4642_v18  ;;  %v6813_v39 = vld [vmem:[#allocation8 + $0x6ec] sm:$0xf0] }
 0x1ce   :  { %v4577_v43 = vld [vmem:[#allocation8 + $0x50] sm:$0xf]  ;;  %v5410_v55 = vor.u32 %v6813_v39, %v5409_v37 }
 0x1cf   :  { %3956 = vmatpush.bf16.msra.mxu3 %v5474_v14  ;;  %3930 = vmatpush.bf16.msra.mxu1 %v4898_v22  ;;  %v6605_v44 = vld [vmem:[#allocation8 + $0x6c] sm:$0xf0]  ;;  %v7625_v22 = vperm.slane %v7462_v54, 0 }
 0x1d0   :  { %v4833_v48 = vld [vmem:[#allocation8 + $0x250] sm:$0xf]  ;;  %v4578_v59 = vor.u32 %v6605_v44, %v4577_v43 }
 0x1d1   :  { %3943 = vmatpush.bf16.msra.mxu2 %v5186_v53  ;;  %v6669_v52 = vld [vmem:[#allocation8 + $0x26c] sm:$0xf0]  ;;  %3917 = vmatpush.bf16.msra.mxu0 %v4610_v36 }
 0x1d2   :  { %v5121_v57 = vld [vmem:[#allocation8 + $0x490] sm:$0xf]  ;;  %v4834_v3 = vor.u32 %v6669_v52, %v4833_v48 }
 0x1d3   :  { %3957 = vmatpush.bf16.msra.mxu3 %v5442_v33  ;;  %v6741_v58 = vld [vmem:[#allocation8 + $0x4ac] sm:$0xf0]  ;;  %3931 = vmatpush.bf16.msra.mxu1 %v4866_v42  ;;  %v3683_v33 = vpop.f32.mrf.mxu3 }
 0x1d4   :  { %v5377_v60 = vld [vmem:[#allocation8 + $0x690] sm:$0xf]  ;;  %v5122_v13 = vor.u32 %v6741_v58, %v5121_v57  ;;  %v3684_v42 = vadd.f32 %v3683_v33, %v3670_v23 }
 0x1d5   :  { %v6805_v63 = vld [vmem:[#allocation8 + $0x6ac] sm:$0xf0]  ;;  %3944 = vmatpush.bf16.msra.mxu2 %v5154_v47  ;;  %3918 = vmatpush.bf16.msra.mxu0 %v4578_v59 }
 0x1d6   :  { %v4545_v0 = vld [vmem:[#allocation8 + $0x10] sm:$0xf]  ;;  %v5378_v18 = vor.u32 %v6805_v63, %v5377_v60  ;;  %v4361_v58 = vmax.f32 %v3684_v42, 0.0  ;;  %v4394_v63 = vmul.f32 %v7625_v22, %v4360_v29  ;;  %v7033_v22 = vld [vmem:[#allocation8 + $0xdd4] sm:$0xf] }
 0x1d7   :  { %v6597_v6 = vld [vmem:[#allocation8 + $0x2c] sm:$0xf0]  ;;  %3958 = vmatpush.bf16.msra.mxu3 %v5410_v55  ;;  %3932 = vmatpush.bf16.msra.mxu1 %v4834_v3 }
 0x1d8   :  { %v4801_v7 = vld [vmem:[#allocation8 + $0x210] sm:$0xf]  ;;  %v4546_v24 = vor.u32 %v6597_v6, %v4545_v0 }
 0x1d9   :  { %v6661_v11 = vld [vmem:[#allocation8 + $0x22c] sm:$0xf0]  ;;  %3945 = vmatpush.bf16.msra.mxu2 %v5122_v13 }
 0x1da   :  { %v5793_v14 = vld [vmem:[#allocation8 + $0x9d0] sm:$0xf]  ;;  %v4802_v9 = vor.u32 %v6661_v11, %v4801_v7  ;;  %3919 = vmatpush.bf16.msra.mxu0 %v4546_v24  ;;  %v4395_v7 = vmul.f32 %v4379_v35, %v4361_v58 }
 0x1db   :  { %v6909_v15 = vld [vmem:[#allocation8 + $0x9ec] sm:$0xf0]  ;;  %3959 = vmatpush.bf16.msra.mxu3 %v5378_v18 }
 0x1dc   :  { %v6049_v62 = vld [vmem:[#allocation8 + $0xbd0] sm:$0xf]  ;;  %v5794_v36 = vor.u32 %v6909_v15, %v5793_v14  ;;  %3933 = vmatpush.bf16.msra.mxu1 %v4802_v9 }
 0x1dd   :  { %v6973_v19 = vld [vmem:[#allocation8 + $0xbec] sm:$0xf0]  ;;  %3920 = vmatmul.bf16.vlgmr.msra.gmra.mxu0 %v7373_v12 }
 0x1de   :  { %v5089_v20 = vld [vmem:[#allocation8 + $0x450] sm:$0xf]  ;;  %v6050_v43 = vor.u32 %v6973_v19, %v6049_v62  ;;  %3968 = vmatpush.bf16.msrb.mxu0 %v5794_v36 }
 0x1df   :  { %v6733_v21 = vld [vmem:[#allocation8 + $0x46c] sm:$0xf0]  ;;  %3934 = vmatmul.bf16.vlgmr.msra.gmra.mxu1 %v7375_v17 }
 0x1e0   :  { %v5345_v53 = vld [vmem:[#allocation8 + $0x650] sm:$0xf]  ;;  %v5090_v44 = vor.u32 %v6733_v21, %v5089_v20  ;;  %3982 = vmatpush.bf16.msrb.mxu1 %v6050_v43  ;;  %v7472_v20 = vpop.f32.mrf.mxu0  ;;  %v7474_v21 = vadd.f32 %v4395_v7, %v4394_v63 }
 0x1e1   :  { %v6797_v30 = vld [vmem:[#allocation8 + $0x66c] sm:$0xf0] }
 0x1e2   :  { %v5761_v37 = vld [vmem:[#allocation8 + $0x990] sm:$0xf]  ;;  %v5346_v52 = vor.u32 %v6797_v30, %v5345_v53  ;;  %3946 = vmatpush.bf16.msra.mxu2 %v5090_v44  ;;  %v7477_v30 = vpop.f32.mrf.mxu1 }
 0x1e3   :  { %v6901_v39 = vld [vmem:[#allocation8 + $0x9ac] sm:$0xf0] }
 0x1e4   :  { %v6017_v47 = vld [vmem:[#allocation8 + $0xb90] sm:$0xf]  ;;  %v5762_v0 = vor.u32 %v6901_v39, %v5761_v37  ;;  %3960 = vmatpush.bf16.msra.mxu3 %v5346_v52  ;;  %v890_v52 = vperm.slane %v7413_v27, 2  ;;  %v5513_v27 = vld [vmem:[#allocation8 + $0x798] sm:$0xf] }
 0x1e5   :  { %v6965_v26 = vld [vmem:[#allocation8 + $0xbac] sm:$0xf0] }
 0x1e6   :  { %v5057_v48 = vld [vmem:[#allocation8 + $0x410] sm:$0xf]  ;;  %v6018_v11 = vor.u32 %v6965_v26, %v6017_v47  ;;  %3969 = vmatpush.bf16.msrb.mxu0 %v5762_v0 }
 0x1e7   :  { %v6725_v55 = vld [vmem:[#allocation8 + $0x42c] sm:$0xf0] }
 0x1e8   :  { %v5313_v57 = vld [vmem:[#allocation8 + $0x610] sm:$0xf]  ;;  %v5058_v13 = vor.u32 %v6725_v55, %v5057_v48  ;;  %3983 = vmatpush.bf16.msrb.mxu1 %v6018_v11 }
 0x1e9   :  { %v6789_v38 = vld [vmem:[#allocation8 + $0x62c] sm:$0xf0] }
 0x1ea   :  { %v6305_v59 = vld [vmem:[#allocation8 + $0xdd0] sm:$0xf]  ;;  %v5314_v62 = vor.u32 %v6789_v38, %v5313_v57  ;;  %3947 = vmatpush.bf16.msra.mxu2 %v5058_v13 }
 0x1eb   :  { %v7037_v60 = vld [vmem:[#allocation8 + $0xdec] sm:$0xf0] }
 0x1ec   :  { %v6561_v3 = vld [vmem:[#allocation8 + $0xfd0] sm:$0xf]  ;;  %v6306_v16 = vor.u32 %v7037_v60, %v6305_v59  ;;  %3961 = vmatpush.bf16.msra.mxu3 %v5314_v62 }
 0x1ed   :  { %v7101_v6 = vld [vmem:[#allocation8 + $0xfec] sm:$0xf0]  ;;  %3948 = vmatmul.bf16.vlgmr.msra.gmra.mxu2 %v7381_v45 }
 0x1ee   :  { %v5729_v14 = vld [vmem:[#allocation8 + $0x950] sm:$0xf]  ;;  %v6562_v23 = vor.u32 %v7101_v6, %v6561_v3  ;;  %3996 = vmatpush.bf16.msrb.mxu2 %v6306_v16  ;;  %v3697_v6 = vpop.f32.mrf.mxu0 }
 0x1ef   :  { %v6893_v15 = vld [vmem:[#allocation8 + $0x96c] sm:$0xf0]  ;;  %3962 = vmatmul.bf16.vlgmr.msra.gmra.mxu3 %v7383_v51 }
 0x1f0   :  { %v5985_v18 = vld [vmem:[#allocation8 + $0xb50] sm:$0xf]  ;;  %v5730_v29 = vor.u32 %v6893_v15, %v5729_v14  ;;  %4010 = vmatpush.bf16.msrb.mxu3 %v6562_v23  ;;  %v3698_v14 = vadd.f32 %v3697_v6, %v890_v52  ;;  %v3711_v15 = vpop.f32.mrf.mxu1 }
 0x1f1   :  { %v6957_v19 = vld [vmem:[#allocation8 + $0xb6c] sm:$0xf0] }
 0x1f2   :  { %v6273_v24 = vld [vmem:[#allocation8 + $0xd90] sm:$0xf]  ;;  %v5986_v36 = vor.u32 %v6957_v19, %v5985_v18  ;;  %3970 = vmatpush.bf16.msrb.mxu0 %v5730_v29 }
 0x1f3   :  { %v7029_v53 = vld [vmem:[#allocation8 + $0xdac] sm:$0xf0] }
 0x1f4   :  { %v6529_v33 = vld [vmem:[#allocation8 + $0xf90] sm:$0xf]  ;;  %v6274_v42 = vor.u32 %v7029_v53, %v6273_v24  ;;  %3984 = vmatpush.bf16.msrb.mxu1 %v5986_v36  ;;  %v3712_v53 = vadd.f32 %v3711_v15, %v3698_v14  ;;  %v7482_v36 = vpop.f32.mrf.mxu2 }
 0x1f5   :  { %v7093_v9 = vld [vmem:[#allocation8 + $0xfac] sm:$0xf0] }
 0x1f6   :  { %v5697_v37 = vld [vmem:[#allocation8 + $0x910] sm:$0xf]  ;;  %v6530_v47 = vor.u32 %v7093_v9, %v6529_v33  ;;  %3997 = vmatpush.bf16.msrb.mxu2 %v6274_v42 }
 0x1f7   :  { %v6885_v39 = vld [vmem:[#allocation8 + $0x92c] sm:$0xf0] }
 0x1f8   :  { %v5953_v43 = vld [vmem:[#allocation8 + $0xb10] sm:$0xf]  ;;  %v5698_v55 = vor.u32 %v6885_v39, %v5697_v37  ;;  %4011 = vmatpush.bf16.msrb.mxu3 %v6530_v47  ;;  %v3713_v15 = vpop.f32.mrf.mxu1 }
 0x1f9   :  { %v6949_v44 = vld [vmem:[#allocation8 + $0xb2c] sm:$0xf0] }
 0x1fa   :  { %v6241_v26 = vld [vmem:[#allocation8 + $0xd50] sm:$0xf]  ;;  %v5954_v58 = vor.u32 %v6949_v44, %v5953_v43  ;;  %3971 = vmatpush.bf16.msrb.mxu0 %v5698_v55  ;;  %v7484_v43 = vpop.f32.mrf.mxu3 }
 0x1fb   :  { %v7021_v48 = vld [vmem:[#allocation8 + $0xd6c] sm:$0xf0] }
 0x1fc   :  { %v6497_v57 = vld [vmem:[#allocation8 + $0xf50] sm:$0xf]  ;;  %v6242_v63 = vor.u32 %v7021_v48, %v6241_v26  ;;  %3985 = vmatpush.bf16.msrb.mxu1 %v5954_v58 }
 0x1fd   :  { %v7085_v38 = vld [vmem:[#allocation8 + $0xf6c] sm:$0xf0] }
 0x1fe   :  { %v5665_v59 = vld [vmem:[#allocation8 + $0x8d0] sm:$0xf]  ;;  %v6498_v7 = vor.u32 %v7085_v38, %v6497_v57  ;;  %3998 = vmatpush.bf16.msrb.mxu2 %v6242_v63 }
 0x1ff   :  { %v6877_v60 = vld [vmem:[#allocation8 + $0x8ec] sm:$0xf0] }
 0x200   :  { %v5921_v0 = vld [vmem:[#allocation8 + $0xad0] sm:$0xf]  ;;  %v5666_v62 = vor.u32 %v6877_v60, %v5665_v59  ;;  %4012 = vmatpush.bf16.msrb.mxu3 %v6498_v7  ;;  %v3699_v60 = vpop.f32.mrf.mxu0 }
 0x201   :  { %v6941_v3 = vld [vmem:[#allocation8 + $0xaec] sm:$0xf0]  ;;  %v3700_v6 = vadd.f32 %v3699_v60, %v890_v52 }
 0x202   :  { %v6209_v11 = vld [vmem:[#allocation8 + $0xd10] sm:$0xf]  ;;  %v5922_v19 = vor.u32 %v6941_v3, %v5921_v0  ;;  %3972 = vmatpush.bf16.msrb.mxu0 %v5666_v62 }
 0x203   :  { %v7013_v13 = vld [vmem:[#allocation8 + $0xd2c] sm:$0xf0] }
 0x204   :  { %v6465_v16 = vld [vmem:[#allocation8 + $0xf10] sm:$0xf]  ;;  %v6210_v29 = vor.u32 %v7013_v13, %v6209_v11  ;;  %3986 = vmatpush.bf16.msrb.mxu1 %v5922_v19 }
 0x205   :  { %v7077_v18 = vld [vmem:[#allocation8 + $0xf2c] sm:$0xf0] }
 0x206   :  { %v5633_v23 = vld [vmem:[#allocation8 + $0x890] sm:$0xf]  ;;  %v6466_v37 = vor.u32 %v7077_v18, %v6465_v16  ;;  %3999 = vmatpush.bf16.msrb.mxu2 %v6210_v29  ;;  %v6649_v29 = vld [vmem:[#allocation8 + $0x1d4] sm:$0xf] }
 0x207   :  { %v6869_v24 = vld [vmem:[#allocation8 + $0x8ac] sm:$0xf0] }
 0x208   :  { %v5889_v33 = vld [vmem:[#allocation8 + $0xa90] sm:$0xf]  ;;  %v5634_v44 = vor.u32 %v6869_v24, %v5633_v23  ;;  %4013 = vmatpush.bf16.msrb.mxu3 %v6466_v37  ;;  %v3714_v23 = vadd.f32 %v3713_v15, %v3700_v6  ;;  %v3725_v37 = vpop.f32.mrf.mxu2  ;;  %v6705_v6 = vld [vmem:[#allocation8 + $0x394] sm:$0xf] }
 0x209   :  { %v6933_v9 = vld [vmem:[#allocation8 + $0xaac] sm:$0xf0] }
 0x20a   :  { %v6177_v39 = vld [vmem:[#allocation8 + $0xcd0] sm:$0xf]  ;;  %v5890_v48 = vor.u32 %v6933_v9, %v5889_v33  ;;  %3973 = vmatpush.bf16.msrb.mxu0 %v5634_v44  ;;  %v4771_v33 = vld [vmem:[#allocation8 + $0x1f0] sm:$0xf0] }
 0x20b   :  { %v7005_v42 = vld [vmem:[#allocation8 + $0xcec] sm:$0xf0]  ;;  %v6713_v9 = vld [vmem:[#allocation8 + $0x3d4] sm:$0xf] }
 0x20c   :  { %v6433_v47 = vld [vmem:[#allocation8 + $0xed0] sm:$0xf]  ;;  %v6178_v38 = vor.u32 %v7005_v42, %v6177_v39  ;;  %3987 = vmatpush.bf16.msrb.mxu1 %v5890_v48  ;;  %v5027_v39 = vld [vmem:[#allocation8 + $0x3f0] sm:$0xf0] }
 0x20d   :  { %v7069_v26 = vld [vmem:[#allocation8 + $0xeec] sm:$0xf0] }
 0x20e   :  { %v5601_v55 = vld [vmem:[#allocation8 + $0x850] sm:$0xf]  ;;  %v6434_v63 = vor.u32 %v7069_v26, %v6433_v47  ;;  %4000 = vmatpush.bf16.msrb.mxu2 %v6178_v38  ;;  %v3726_v47 = vadd.f32 %v3725_v37, %v3712_v53  ;;  %v3739_v26 = vpop.f32.mrf.mxu3  ;;  %v6641_v38 = vld [vmem:[#allocation8 + $0x194] sm:$0xf] }
 0x20f   :  { %v6861_v57 = vld [vmem:[#allocation8 + $0x86c] sm:$0xf0]  ;;  %v4707_v37 = vld [vmem:[#allocation8 + $0x170] sm:$0xf0] }
 0x210   :  { %v5857_v58 = vld [vmem:[#allocation8 + $0xa50] sm:$0xf]  ;;  %v5602_v7 = vor.u32 %v6861_v57, %v5601_v55  ;;  %4014 = vmatpush.bf16.msrb.mxu3 %v6434_v63  ;;  %v7486_v60 = vadd.f32 %v3739_v26, %v3726_v47  ;;  %v4963_v47 = vld [vmem:[#allocation8 + $0x370] sm:$0xf0] }
 0x211   :  { %v6925_v59 = vld [vmem:[#allocation8 + $0xa6c] sm:$0xf0] }
 0x212   :  { %v6145_v0 = vld [vmem:[#allocation8 + $0xc90] sm:$0xf]  ;;  %v5858_v62 = vor.u32 %v6925_v59, %v5857_v58  ;;  %3974 = vmatpush.bf16.msrb.mxu0 %v5602_v7  ;;  %v4774_v59 = vor.u32 %v6649_v29, %v4771_v33  ;;  %v5539_v29 = vld [vmem:[#allocation8 + $0x7f0] sm:$0xf0] }
 0x213   :  { %v6997_v3 = vld [vmem:[#allocation8 + $0xcac] sm:$0xf0] }
 0x214   :  { %v6401_v11 = vld [vmem:[#allocation8 + $0xe90] sm:$0xf]  ;;  %v6146_v24 = vor.u32 %v6997_v3, %v6145_v0  ;;  %3988 = vmatpush.bf16.msrb.mxu1 %v5858_v62  ;;  %v5030_v0 = vor.u32 %v6713_v9, %v5027_v39  ;;  %v4739_v3 = vld [vmem:[#allocation8 + $0x1b0] sm:$0xf0] }
 0x215   :  { %v7061_v13 = vld [vmem:[#allocation8 + $0xeac] sm:$0xf0]  ;;  %v5283_v62 = vld [vmem:[#allocation8 + $0x5f0] sm:$0xf0] }
 0x216   :  { %v5569_v14 = vld [vmem:[#allocation8 + $0x810] sm:$0xf]  ;;  %v6402_v52 = vor.u32 %v7061_v13, %v6401_v11  ;;  %4001 = vmatpush.bf16.msrb.mxu2 %v6146_v24  ;;  %v4995_v11 = vld [vmem:[#allocation8 + $0x3b0] sm:$0xf0] }
 0x217   :  { %v6853_v16 = vld [vmem:[#allocation8 + $0x82c] sm:$0xf0]  ;;  %v4998_v24 = vor.u32 %v6705_v6, %v4995_v11  ;;  %v6633_v9 = vld [vmem:[#allocation8 + $0x154] sm:$0xf] }
 0x218   :  { %v5825_v18 = vld [vmem:[#allocation8 + $0xa10] sm:$0xf]  ;;  %v5570_v48 = vor.u32 %v6853_v16, %v5569_v14  ;;  %4015 = vmatpush.bf16.msrb.mxu3 %v6402_v52  ;;  %v6777_v16 = vld [vmem:[#allocation8 + $0x5d4] sm:$0xf]  ;;  %v3727_v52 = vpop.f32.mrf.mxu2 }
 0x219   :  { %v6917_v19 = vld [vmem:[#allocation8 + $0xa2c] sm:$0xf0]  ;;  %v3728_v26 = vadd.f32 %v3727_v52, %v3714_v23  ;;  %v6625_v6 = vld [vmem:[#allocation8 + $0x114] sm:$0xf]  ;;  %v3753_v52 = vpop.f32.mrf.mxu0 }
 0x21a   :  { %v6113_v42 = vld [vmem:[#allocation8 + $0xc50] sm:$0xf]  ;;  %v5826_v58 = vor.u32 %v6917_v19, %v5825_v18  ;;  %3975 = vmatpush.bf16.msrb.mxu0 %v5570_v48  ;;  %v4742_v18 = vor.u32 %v6641_v38, %v4739_v3  ;;  %v6841_v19 = vld [vmem:[#allocation8 + $0x7d4] sm:$0xf] }
 0x21b   :  { %v6989_v44 = vld [vmem:[#allocation8 + $0xc6c] sm:$0xf0]  ;;  %v5542_v48 = vor.u32 %v6841_v19, %v5539_v29  ;;  %v6833_v38 = vld [vmem:[#allocation8 + $0x794] sm:$0xf] }
 0x21c   :  { %v6369_v55 = vld [vmem:[#allocation8 + $0xe50] sm:$0xf]  ;;  %v6114_v63 = vor.u32 %v6989_v44, %v6113_v42  ;;  %3989 = vmatpush.bf16.msrb.mxu1 %v5826_v58  ;;  %v5286_v42 = vor.u32 %v6777_v16, %v5283_v62  ;;  %v6697_v44 = vld [vmem:[#allocation8 + $0x354] sm:$0xf]  ;;  %v3741_v58 = vpop.f32.mrf.mxu3 }
 0x21d   :  { %v7053_v57 = vld [vmem:[#allocation8 + $0xe6c] sm:$0xf0]  ;;  %3976 = vmatmul.bf16.vlgmr.msrb.gmra.mxu0 %v7389_v25  ;;  %v4966_v3 = vor.u32 %v6697_v44, %v4963_v47  ;;  %v4675_v11 = vld [vmem:[#allocation8 + $0x130] sm:$0xf0]  ;;  %v3754_v47 = vadd.f32 %v3753_v52, %v7486_v60 }
 0x21e   :  { %v6370_v13 = vor.u32 %v7053_v57, %v6369_v55  ;;  %v6081_v53 = vld [vmem:[#allocation8 + $0xc10] sm:$0xf]  ;;  %4024 = vmatpush.bf16.msra.mxu0 %v4774_v59  ;;  %4002 = vmatpush.bf16.msrb.mxu2 %v6114_v63  ;;  %v6769_v55 = vld [vmem:[#allocation8 + $0x594] sm:$0xf]  ;;  %v4710_v59 = vor.u32 %v6633_v9, %v4707_v37  ;;  %v7490_v63 = vadd.f32 %v3741_v58, %v3728_v26  ;;  %v3767_v26 = vpop.f32.mrf.mxu1 }
 0x21f   :  { %v6981_v15 = vld [vmem:[#allocation8 + $0xc2c] sm:$0xf0]  ;;  %3990 = vmatmul.bf16.vlgmr.msrb.gmra.mxu1 %v7391_v34  ;;  %v5251_v57 = vld [vmem:[#allocation8 + $0x5b0] sm:$0xf0]  ;;  %v4678_v16 = vor.u32 %v6625_v6, %v4675_v11 }
 0x220   :  { %v6337_v7 = vld [vmem:[#allocation8 + $0xe10] sm:$0xf]  ;;  %4038 = vmatpush.bf16.msra.mxu1 %v5030_v0  ;;  %v6082_v33 = vor.u32 %v6981_v15, %v6081_v53  ;;  %4016 = vmatpush.bf16.msrb.mxu3 %v6370_v13  ;;  %v5507_v0 = vld [vmem:[#allocation8 + $0x7b0] sm:$0xf0]  ;;  %v5254_v23 = vor.u32 %v6769_v55, %v5251_v57 }
 0x221   :  { %v7045_v14 = vld [vmem:[#allocation8 + $0xe2c] sm:$0xf0]  ;;  %v6689_v13 = vld [vmem:[#allocation8 + $0x314] sm:$0xf]  ;;  %v5510_v15 = vor.u32 %v6833_v38, %v5507_v0  ;;  %v3768_v0 = vadd.f32 %v3767_v26, %v3754_v47 }
 0x222   :  { %v6338_v39 = vor.u32 %v7045_v14, %v6337_v7  ;;  %4025 = vmatpush.bf16.msra.mxu0 %v4742_v18  ;;  %4003 = vmatpush.bf16.msrb.mxu2 %v6082_v33  ;;  %v4931_v53 = vld [vmem:[#allocation8 + $0x330] sm:$0xf0] }
 0x223   :  { %v6761_v7 = vld [vmem:[#allocation8 + $0x554] sm:$0xf]  ;;  %v4934_v19 = vor.u32 %v6689_v13, %v4931_v53 }
 0x224   :  { %4039 = vmatpush.bf16.msra.mxu1 %v4998_v24  ;;  %4017 = vmatpush.bf16.msrb.mxu3 %v6338_v39  ;;  %v5219_v14 = vld [vmem:[#allocation8 + $0x570] sm:$0xf0] }
 0x225   :  { %4004 = vmatmul.bf16.vlgmr.msrb.gmra.mxu2 %v7395_v61  ;;  %v6825_v62 = vld [vmem:[#allocation8 + $0x754] sm:$0xf]  ;;  %v5222_v33 = vor.u32 %v6761_v7, %v5219_v14 }
 0x226   :  { %4052 = vmatpush.bf16.msra.mxu2 %v5286_v42  ;;  %4026 = vmatpush.bf16.msra.mxu0 %v4710_v59  ;;  %v5475_v18 = vld [vmem:[#allocation8 + $0x770] sm:$0xf0]  ;;  %v3769_v26 = vpop.f32.mrf.mxu1 }
 0x227   :  { %4018 = vmatmul.bf16.vlgmr.msrb.gmra.mxu3 %v7397_v2  ;;  %v6617_v29 = vld [vmem:[#allocation8 + $0xd4] sm:$0xf]  ;;  %v5478_v39 = vor.u32 %v6825_v62, %v5475_v18 }
 0x228   :  { %4066 = vmatpush.bf16.msra.mxu3 %v5542_v48  ;;  %4040 = vmatpush.bf16.msra.mxu1 %v4966_v3  ;;  %v4643_v24 = vld [vmem:[#allocation8 + $0xf0] sm:$0xf0] }
 0x229   :  { %v6681_v9 = vld [vmem:[#allocation8 + $0x2d4] sm:$0xf]  ;;  %v4646_v48 = vor.u32 %v6617_v29, %v4643_v24  ;;  %v3755_v24 = vpop.f32.mrf.mxu0 }
 0x22a   :  { %4053 = vmatpush.bf16.msra.mxu2 %v5254_v23  ;;  %v4899_v37 = vld [vmem:[#allocation8 + $0x2f0] sm:$0xf0]  ;;  %4027 = vmatpush.bf16.msra.mxu0 %v4678_v16  ;;  %v3756_v52 = vadd.f32 %v3755_v24, %v7490_v63 }
 0x22b   :  { %v6753_v42 = vld [vmem:[#allocation8 + $0x514] sm:$0xf]  ;;  %v4902_v58 = vor.u32 %v6681_v9, %v4899_v37 }
 0x22c   :  { %4067 = vmatpush.bf16.msra.mxu3 %v5510_v15  ;;  %v5187_v44 = vld [vmem:[#allocation8 + $0x530] sm:$0xf0]  ;;  %4041 = vmatpush.bf16.msra.mxu1 %v4934_v19 }
 0x22d   :  { %v6817_v55 = vld [vmem:[#allocation8 + $0x714] sm:$0xf]  ;;  %v5190_v3 = vor.u32 %v6753_v42, %v5187_v44 }
 0x22e   :  { %v5443_v57 = vld [vmem:[#allocation8 + $0x730] sm:$0xf0]  ;;  %4054 = vmatpush.bf16.msra.mxu2 %v5222_v33  ;;  %4028 = vmatpush.bf16.msra.mxu0 %v4646_v48 }
 0x22f   :  { %v6609_v59 = vld [vmem:[#allocation8 + $0x94] sm:$0xf]  ;;  %v5446_v23 = vor.u32 %v6817_v55, %v5443_v57 }
 0x230   :  { %v4611_v38 = vld [vmem:[#allocation8 + $0xb0] sm:$0xf0]  ;;  %4068 = vmatpush.bf16.msra.mxu3 %v5478_v39  ;;  %4042 = vmatpush.bf16.msra.mxu1 %v4902_v58 }
 0x231   :  { %v6673_v6 = vld [vmem:[#allocation8 + $0x294] sm:$0xf]  ;;  %v4614_v60 = vor.u32 %v6609_v59, %v4611_v38  ;;  %v3770_v59 = vadd.f32 %v3769_v26, %v3756_v52 }
 0x232   :  { %v4867_v11 = vld [vmem:[#allocation8 + $0x2b0] sm:$0xf0]  ;;  %4055 = vmatpush.bf16.msra.mxu2 %v5190_v3 }
 0x233   :  { %v6745_v13 = vld [vmem:[#allocation8 + $0x4d4] sm:$0xf]  ;;  %v4870_v14 = vor.u32 %v6673_v6, %v4867_v11  ;;  %4029 = vmatpush.bf16.msra.mxu0 %v4614_v60 }
 0x234   :  { %v5155_v53 = vld [vmem:[#allocation8 + $0x4f0] sm:$0xf0]  ;;  %4069 = vmatpush.bf16.msra.mxu3 %v5446_v23  ;;  %v3781_v23 = vpop.f32.mrf.mxu2 }
 0x235   :  { %v6809_v15 = vld [vmem:[#allocation8 + $0x6d4] sm:$0xf]  ;;  %v5158_v18 = vor.u32 %v6745_v13, %v5155_v53  ;;  %4043 = vmatpush.bf16.msra.mxu1 %v4870_v14 }
 0x236   :  { %v5411_v7 = vld [vmem:[#allocation8 + $0x6f0] sm:$0xf0] }
 0x237   :  { %v6601_v16 = vld [vmem:[#allocation8 + $0x54] sm:$0xf]  ;;  %v5414_v33 = vor.u32 %v6809_v15, %v5411_v7  ;;  %4056 = vmatpush.bf16.msra.mxu2 %v5158_v18  ;;  %v3782_v15 = vadd.f32 %v3781_v23, %v3768_v0  ;;  %v3795_v7 = vpop.f32.mrf.mxu3 }
 0x238   :  { %v4579_v62 = vld [vmem:[#allocation8 + $0x70] sm:$0xf0] }
 0x239   :  { %v6665_v19 = vld [vmem:[#allocation8 + $0x254] sm:$0xf]  ;;  %v4582_v39 = vor.u32 %v6601_v16, %v4579_v62  ;;  %4070 = vmatpush.bf16.msra.mxu3 %v5414_v33 }
 0x23a   :  { %v4835_v29 = vld [vmem:[#allocation8 + $0x270] sm:$0xf0] }
 0x23b   :  { %v6737_v9 = vld [vmem:[#allocation8 + $0x494] sm:$0xf]  ;;  %v4838_v48 = vor.u32 %v6665_v19, %v4835_v29  ;;  %4030 = vmatpush.bf16.msra.mxu0 %v4582_v39  ;;  %v7626_v19 = vperm.slane %v7462_v54, 2 }
 0x23c   :  { %v5123_v37 = vld [vmem:[#allocation8 + $0x4b0] sm:$0xf0] }
 0x23d   :  { %v6801_v42 = vld [vmem:[#allocation8 + $0x694] sm:$0xf]  ;;  %v5126_v38 = vor.u32 %v6737_v9, %v5123_v37  ;;  %4044 = vmatpush.bf16.msra.mxu1 %v4838_v48  ;;  %v3796_v37 = vadd.f32 %v3795_v7, %v3782_v15 }
 0x23e   :  { %v5379_v44 = vld [vmem:[#allocation8 + $0x6b0] sm:$0xf0] }
 0x23f   :  { %v6593_v47 = vld [vmem:[#allocation8 + $0x14] sm:$0xf]  ;;  %v5382_v63 = vor.u32 %v6801_v42, %v5379_v44  ;;  %4057 = vmatpush.bf16.msra.mxu2 %v5126_v38  ;;  %v4362_v23 = vmax.f32 %v3796_v37, 0.0 }
 0x240   :  { %v4547_v55 = vld [vmem:[#allocation8 + $0x30] sm:$0xf0] }
 0x241   :  { %v6657_v57 = vld [vmem:[#allocation8 + $0x214] sm:$0xf]  ;;  %v4550_v14 = vor.u32 %v6593_v47, %v4547_v55  ;;  %4071 = vmatpush.bf16.msra.mxu3 %v5382_v63  ;;  %v4396_v38 = vmul.f32 %v7626_v19, %v4362_v23  ;;  %v7507_v23 = vld [vmem:[#allocation10] sm:$0xff] }
 0x242   :  { %v4803_v58 = vld [vmem:[#allocation8 + $0x230] sm:$0xf0] }
 0x243   :  { %v6905_v3 = vld [vmem:[#allocation8 + $0x9d4] sm:$0xf]  ;;  %v4806_v18 = vor.u32 %v6657_v57, %v4803_v58  ;;  %4031 = vmatpush.bf16.msra.mxu0 %v4550_v14 }
 0x244   :  { %v5795_v6 = vld [vmem:[#allocation8 + $0x9f0] sm:$0xf0] }
 0x245   :  { %v6969_v11 = vld [vmem:[#allocation8 + $0xbd4] sm:$0xf]  ;;  %v5798_v29 = vor.u32 %v6905_v3, %v5795_v6  ;;  %4045 = vmatpush.bf16.msra.mxu1 %v4806_v18 }
 0x246   :  { %v6051_v13 = vld [vmem:[#allocation8 + $0xbf0] sm:$0xf0]  ;;  %4032 = vmatmul.bf16.vlgmr.msra.gmra.mxu0 %v7373_v12 }
 0x247   :  { %v6729_v53 = vld [vmem:[#allocation8 + $0x454] sm:$0xf]  ;;  %v6054_v33 = vor.u32 %v6969_v11, %v6051_v13  ;;  %4080 = vmatpush.bf16.msrb.mxu0 %v5798_v29 }
 0x248   :  { %v5091_v60 = vld [vmem:[#allocation8 + $0x470] sm:$0xf0]  ;;  %4046 = vmatmul.bf16.vlgmr.msra.gmra.mxu1 %v7375_v17 }
 0x249   :  { %v6793_v16 = vld [vmem:[#allocation8 + $0x654] sm:$0xf]  ;;  %v5094_v52 = vor.u32 %v6729_v53, %v5091_v60  ;;  %4094 = vmatpush.bf16.msrb.mxu1 %v6054_v33  ;;  %v3783_v53 = vpop.f32.mrf.mxu2 }
 0x24a   :  { %v5347_v62 = vld [vmem:[#allocation8 + $0x670] sm:$0xf0] }
 0x24b   :  { %v6897_v24 = vld [vmem:[#allocation8 + $0x994] sm:$0xf]  ;;  %v5350_v0 = vor.u32 %v6793_v16, %v5347_v62  ;;  %4058 = vmatpush.bf16.msra.mxu2 %v5094_v52  ;;  %v7501_v16 = vadd.f32 %v7474_v21, %v4396_v38  ;;  %v3784_v62 = vadd.f32 %v3783_v53, %v3770_v59 }
 0x24c   :  { %v5763_v9 = vld [vmem:[#allocation8 + $0x9b0] sm:$0xf0] }
 0x24d   :  { %v6961_v42 = vld [vmem:[#allocation8 + $0xb94] sm:$0xf]  ;;  %v5766_v57 = vor.u32 %v6897_v24, %v5763_v9  ;;  %4072 = vmatpush.bf16.msra.mxu3 %v5350_v0  ;;  %v3797_v9 = vpop.f32.mrf.mxu3 }
 0x24e   :  { %v6019_v44 = vld [vmem:[#allocation8 + $0xbb0] sm:$0xf0] }
 0x24f   :  { %v6721_v26 = vld [vmem:[#allocation8 + $0x414] sm:$0xf]  ;;  %v6022_v6 = vor.u32 %v6961_v42, %v6019_v44  ;;  %4081 = vmatpush.bf16.msrb.mxu0 %v5766_v57  ;;  %v7504_v42 = vadd.f32 %v3797_v9, %v3784_v62 }
 0x250   :  { %v5059_v39 = vld [vmem:[#allocation8 + $0x430] sm:$0xf0] }
 0x251   :  { %v6785_v47 = vld [vmem:[#allocation8 + $0x614] sm:$0xf]  ;;  %v5062_v11 = vor.u32 %v6721_v26, %v5059_v39  ;;  %4095 = vmatpush.bf16.msrb.mxu1 %v6022_v6 }
 0x252   :  { %v5315_v55 = vld [vmem:[#allocation8 + $0x630] sm:$0xf0] }
 0x253   :  { %v6307_v48 = vld [vmem:[#allocation8 + $0xdf0] sm:$0xf0]  ;;  %v5318_v60 = vor.u32 %v6785_v47, %v5315_v55  ;;  %4059 = vmatpush.bf16.msra.mxu2 %v5062_v11 }
 0x254   :  { %v7097_v58 = vld [vmem:[#allocation8 + $0xfd4] sm:$0xf]  ;;  %v6310_v15 = vor.u32 %v7033_v22, %v6307_v48  ;;  %v891_v48 = vperm.slane %v7507_v23, 3 }
 0x255   :  { %v6563_v3 = vld [vmem:[#allocation8 + $0xff0] sm:$0xf0]  ;;  %4073 = vmatpush.bf16.msra.mxu3 %v5318_v60  ;;  %v3809_v60 = vpop.f32.mrf.mxu0 }
 0x256   :  { %v6889_v63 = vld [vmem:[#allocation8 + $0x954] sm:$0xf]  ;;  %v6566_v18 = vor.u32 %v7097_v58, %v6563_v3  ;;  %4060 = vmatmul.bf16.vlgmr.msra.gmra.mxu2 %v7381_v45  ;;  %v3810_v62 = vadd.f32 %v3809_v60, %v891_v48 }
 0x257   :  { %v5731_v13 = vld [vmem:[#allocation8 + $0x970] sm:$0xf0]  ;;  %4108 = vmatpush.bf16.msrb.mxu2 %v6310_v15 }
 0x258   :  { %v6953_v7 = vld [vmem:[#allocation8 + $0xb54] sm:$0xf]  ;;  %v5734_v37 = vor.u32 %v6889_v63, %v5731_v13  ;;  %4074 = vmatmul.bf16.vlgmr.msra.gmra.mxu3 %v7383_v51 }
 0x259   :  { %v5987_v14 = vld [vmem:[#allocation8 + $0xb70] sm:$0xf0]  ;;  %4122 = vmatpush.bf16.msrb.mxu3 %v6566_v18  ;;  %v3823_v18 = vpop.f32.mrf.mxu1 }
 0x25a   :  { %v7025_v29 = vld [vmem:[#allocation8 + $0xd94] sm:$0xf]  ;;  %v5990_v22 = vor.u32 %v6953_v7, %v5987_v14  ;;  %4082 = vmatpush.bf16.msrb.mxu0 %v5734_v37 }
 0x25b   :  { %v6275_v24 = vld [vmem:[#allocation8 + $0xdb0] sm:$0xf0] }
 0x25c   :  { %v7089_v33 = vld [vmem:[#allocation8 + $0xf94] sm:$0xf]  ;;  %v6278_v21 = vor.u32 %v7025_v29, %v6275_v24  ;;  %4096 = vmatpush.bf16.msrb.mxu1 %v5990_v22  ;;  %v3824_v22 = vadd.f32 %v3823_v18, %v3810_v62 }
 0x25d   :  { %v6531_v52 = vld [vmem:[#allocation8 + $0xfb0] sm:$0xf0] }
 0x25e   :  { %v6881_v44 = vld [vmem:[#allocation8 + $0x914] sm:$0xf]  ;;  %v6534_v39 = vor.u32 %v7089_v33, %v6531_v52  ;;  %4109 = vmatpush.bf16.msrb.mxu2 %v6278_v21 }
 0x25f   :  { %v5699_v26 = vld [vmem:[#allocation8 + $0x930] sm:$0xf0] }
 0x260   :  { %v6945_v59 = vld [vmem:[#allocation8 + $0xb14] sm:$0xf]  ;;  %v5702_v57 = vor.u32 %v6881_v44, %v5699_v26  ;;  %4123 = vmatpush.bf16.msrb.mxu3 %v6534_v39 }
 0x261   :  { %v5955_v0 = vld [vmem:[#allocation8 + $0xb30] sm:$0xf0] }
 0x262   :  { %v7017_v47 = vld [vmem:[#allocation8 + $0xd54] sm:$0xf]  ;;  %v5958_v38 = vor.u32 %v6945_v59, %v5955_v0  ;;  %4083 = vmatpush.bf16.msrb.mxu0 %v5702_v57 }
 0x263   :  { %v6243_v55 = vld [vmem:[#allocation8 + $0xd70] sm:$0xf0] }
 0x264   :  { %v7081_v58 = vld [vmem:[#allocation8 + $0xf54] sm:$0xf]  ;;  %v6246_v63 = vor.u32 %v7017_v47, %v6243_v55  ;;  %4097 = vmatpush.bf16.msrb.mxu1 %v5958_v38 }
 0x265   :  { %v6499_v3 = vld [vmem:[#allocation8 + $0xf70] sm:$0xf0] }
 0x266   :  { %v6873_v6 = vld [vmem:[#allocation8 + $0x8d4] sm:$0xf]  ;;  %v6502_v15 = vor.u32 %v7081_v58, %v6499_v3  ;;  %4110 = vmatpush.bf16.msrb.mxu2 %v6246_v63  ;;  %v3811_v63 = vpop.f32.mrf.mxu0 }
 0x267   :  { %v5667_v11 = vld [vmem:[#allocation8 + $0x8f0] sm:$0xf0] }
 0x268   :  { %v6937_v13 = vld [vmem:[#allocation8 + $0xad4] sm:$0xf]  ;;  %v5670_v29 = vor.u32 %v6873_v6, %v5667_v11  ;;  %4124 = vmatpush.bf16.msrb.mxu3 %v6502_v15 }
 0x269   :  { %v5923_v53 = vld [vmem:[#allocation8 + $0xaf0] sm:$0xf0] }
 0x26a   :  { %v7009_v7 = vld [vmem:[#allocation8 + $0xd14] sm:$0xf]  ;;  %v5926_v37 = vor.u32 %v6937_v13, %v5923_v53  ;;  %4084 = vmatpush.bf16.msrb.mxu0 %v5670_v29 }
 0x26b   :  { %v6211_v14 = vld [vmem:[#allocation8 + $0xd30] sm:$0xf0] }
 0x26c   :  { %v7073_v24 = vld [vmem:[#allocation8 + $0xf14] sm:$0xf]  ;;  %v6214_v44 = vor.u32 %v7009_v7, %v6211_v14  ;;  %4098 = vmatpush.bf16.msrb.mxu1 %v5926_v37  ;;  %v3812_v7 = vadd.f32 %v3811_v63, %v891_v48 }
 0x26d   :  { %v6467_v9 = vld [vmem:[#allocation8 + $0xf30] sm:$0xf0] }
 0x26e   :  { %v6865_v33 = vld [vmem:[#allocation8 + $0x894] sm:$0xf]  ;;  %v6470_v59 = vor.u32 %v7073_v24, %v6467_v9  ;;  %4111 = vmatpush.bf16.msrb.mxu2 %v6214_v44  ;;  %v3825_v24 = vpop.f32.mrf.mxu1 }
 0x26f   :  { %v5635_v52 = vld [vmem:[#allocation8 + $0x8b0] sm:$0xf0]  ;;  %v3826_v44 = vadd.f32 %v3825_v24, %v3812_v7  ;;  %v6646_v24 = vld [vmem:[#allocation8 + $0x1b4] sm:$0xf0] }
 0x270   :  { %v6929_v26 = vld [vmem:[#allocation8 + $0xa94] sm:$0xf]  ;;  %v5638_v47 = vor.u32 %v6865_v33, %v5635_v52  ;;  %4125 = vmatpush.bf16.msrb.mxu3 %v6470_v59  ;;  %v6654_v59 = vld [vmem:[#allocation8 + $0x1f4] sm:$0xf0] }
 0x271   :  { %v5891_v21 = vld [vmem:[#allocation8 + $0xab0] sm:$0xf0] }
 0x272   :  { %v7001_v0 = vld [vmem:[#allocation8 + $0xcd4] sm:$0xf]  ;;  %v5894_v58 = vor.u32 %v6929_v26, %v5891_v21  ;;  %4085 = vmatpush.bf16.msrb.mxu0 %v5638_v47  ;;  %v4777_v21 = vld [vmem:[#allocation8 + $0x1d8] sm:$0xf] }
 0x273   :  { %v6179_v39 = vld [vmem:[#allocation8 + $0xcf0] sm:$0xf0]  ;;  %v6718_v47 = vld [vmem:[#allocation8 + $0x3f4] sm:$0xf0]  ;;  %v4778_v7 = vor.u32 %v6654_v59, %v4777_v21 }
 0x274   :  { %v7065_v55 = vld [vmem:[#allocation8 + $0xed4] sm:$0xf]  ;;  %v6182_v6 = vor.u32 %v7001_v0, %v6179_v39  ;;  %4099 = vmatpush.bf16.msrb.mxu1 %v5894_v58  ;;  %v5033_v0 = vld [vmem:[#allocation8 + $0x3d8] sm:$0xf]  ;;  %v3837_v39 = vpop.f32.mrf.mxu2 }
 0x275   :  { %v6435_v57 = vld [vmem:[#allocation8 + $0xef0] sm:$0xf0]  ;;  %v6846_v21 = vld [vmem:[#allocation8 + $0x7f4] sm:$0xf0] }
 0x276   :  { %v6857_v3 = vld [vmem:[#allocation8 + $0x854] sm:$0xf]  ;;  %v6438_v53 = vor.u32 %v7065_v55, %v6435_v57  ;;  %4112 = vmatpush.bf16.msrb.mxu2 %v6182_v6  ;;  %v4745_v6 = vld [vmem:[#allocation8 + $0x198] sm:$0xf] }
 0x277   :  { %v5603_v38 = vld [vmem:[#allocation8 + $0x870] sm:$0xf0] }
 0x278   :  { %v6921_v11 = vld [vmem:[#allocation8 + $0xa54] sm:$0xf]  ;;  %v5606_v14 = vor.u32 %v6857_v3, %v5603_v38  ;;  %4126 = vmatpush.bf16.msrb.mxu3 %v6438_v53  ;;  %v3838_v3 = vadd.f32 %v3837_v39, %v3824_v22  ;;  %v3851_v38 = vpop.f32.mrf.mxu3 }
 0x279   :  { %v5859_v13 = vld [vmem:[#allocation8 + $0xa70] sm:$0xf0] }
 0x27a   :  { %v6993_v60 = vld [vmem:[#allocation8 + $0xc94] sm:$0xf]  ;;  %v5862_v9 = vor.u32 %v6921_v11, %v5859_v13  ;;  %4086 = vmatpush.bf16.msrb.mxu0 %v5606_v14 }
 0x27b   :  { %v6147_v15 = vld [vmem:[#allocation8 + $0xcb0] sm:$0xf0] }
 0x27c   :  { %v7057_v62 = vld [vmem:[#allocation8 + $0xe94] sm:$0xf]  ;;  %v6150_v26 = vor.u32 %v6993_v60, %v6147_v15  ;;  %4100 = vmatpush.bf16.msrb.mxu1 %v5862_v9  ;;  %v7511_v60 = vadd.f32 %v3851_v38, %v3838_v3  ;;  %v5034_v15 = vor.u32 %v6718_v47, %v5033_v0  ;;  %v6782_v9 = vld [vmem:[#allocation8 + $0x5f4] sm:$0xf0] }
 0x27d   :  { %v6403_v18 = vld [vmem:[#allocation8 + $0xeb0] sm:$0xf0]  ;;  %v6638_v47 = vld [vmem:[#allocation8 + $0x174] sm:$0xf0] }
 0x27e   :  { %v6849_v29 = vld [vmem:[#allocation8 + $0x814] sm:$0xf]  ;;  %v6406_v48 = vor.u32 %v7057_v62, %v6403_v18  ;;  %4113 = vmatpush.bf16.msrb.mxu2 %v6150_v26  ;;  %v5001_v62 = vld [vmem:[#allocation8 + $0x398] sm:$0xf]  ;;  %v3476_v26 = vadd.f32 %v7422_v46, %v888_v4 }
 0x27f   :  { %v5571_v37 = vld [vmem:[#allocation8 + $0x830] sm:$0xf0]  ;;  %v6710_v18 = vld [vmem:[#allocation8 + $0x3b4] sm:$0xf0] }
 0x280   :  { %v6913_v33 = vld [vmem:[#allocation8 + $0xa14] sm:$0xf]  ;;  %v5574_v58 = vor.u32 %v6849_v29, %v5571_v37  ;;  %4127 = vmatpush.bf16.msrb.mxu3 %v6406_v48  ;;  %v5289_v37 = vld [vmem:[#allocation8 + $0x5d8] sm:$0xf]  ;;  %v5002_v59 = vor.u32 %v6710_v18, %v5001_v62 }
 0x281   :  { %v5827_v52 = vld [vmem:[#allocation8 + $0xa30] sm:$0xf0]  ;;  %v4713_v48 = vld [vmem:[#allocation8 + $0x158] sm:$0xf]  ;;  %v5290_v38 = vor.u32 %v6782_v9, %v5289_v37 }
 0x282   :  { %v6985_v55 = vld [vmem:[#allocation8 + $0xc54] sm:$0xf]  ;;  %v5830_v63 = vor.u32 %v6913_v33, %v5827_v52  ;;  %4087 = vmatpush.bf16.msrb.mxu0 %v5574_v58  ;;  %v4746_v33 = vor.u32 %v6646_v24, %v4745_v6  ;;  %v5545_v52 = vld [vmem:[#allocation8 + $0x7d8] sm:$0xf]  ;;  %v4714_v6 = vor.u32 %v6638_v47, %v4713_v48 }
 0x283   :  { %v6115_v57 = vld [vmem:[#allocation8 + $0xc70] sm:$0xf0]  ;;  %v4969_v58 = vld [vmem:[#allocation8 + $0x358] sm:$0xf]  ;;  %v5546_v4 = vor.u32 %v6846_v21, %v5545_v52 }
 0x284   :  { %v7049_v11 = vld [vmem:[#allocation8 + $0xe54] sm:$0xf]  ;;  %v6118_v53 = vor.u32 %v6985_v55, %v6115_v57  ;;  %4101 = vmatpush.bf16.msrb.mxu1 %v5830_v63  ;;  %v3588_v55 = vadd.f32 %v7450_v28, %v889_v31  ;;  %v3839_v57 = vpop.f32.mrf.mxu2  ;;  %v5257_v46 = vld [vmem:[#allocation8 + $0x598] sm:$0xf]  ;;  %v3490_v31 = vadd.f32 %v7424_v50, %v3476_v26 }
 0x285   :  { %v6371_v13 = vld [vmem:[#allocation8 + $0xe70] sm:$0xf0]  ;;  %4088 = vmatmul.bf16.vlgmr.msrb.gmra.mxu0 %v7389_v25  ;;  %v6774_v63 = vld [vmem:[#allocation8 + $0x5b4] sm:$0xf0] }
 0x286   :  { %v6374_v19 = vor.u32 %v7049_v11, %v6371_v13  ;;  %v6977_v22 = vld [vmem:[#allocation8 + $0xc14] sm:$0xf]  ;;  %4136 = vmatpush.bf16.msra.mxu0 %v4778_v7  ;;  %4114 = vmatpush.bf16.msrb.mxu2 %v6118_v53  ;;  %v6702_v11 = vld [vmem:[#allocation8 + $0x374] sm:$0xf0]  ;;  %v3840_v13 = vadd.f32 %v3839_v57, %v3826_v44  ;;  %v3853_v7 = vpop.f32.mrf.mxu3  ;;  %v3602_v44 = vadd.f32 %v7453_v41, %v3588_v55 }
 0x287   :  { %v6083_v39 = vld [vmem:[#allocation8 + $0xc30] sm:$0xf0]  ;;  %4102 = vmatmul.bf16.vlgmr.msrb.gmra.mxu1 %v7391_v34  ;;  %v4681_v53 = vld [vmem:[#allocation8 + $0x118] sm:$0xf]  ;;  %v5258_v62 = vor.u32 %v6774_v63, %v5257_v46 }
 0x288   :  { %v7041_v14 = vld [vmem:[#allocation8 + $0xe14] sm:$0xf]  ;;  %4150 = vmatpush.bf16.msra.mxu1 %v5034_v15  ;;  %v6086_v0 = vor.u32 %v6977_v22, %v6083_v39  ;;  %4128 = vmatpush.bf16.msrb.mxu3 %v6374_v19  ;;  %v6838_v15 = vld [vmem:[#allocation8 + $0x7b4] sm:$0xf0]  ;;  %v7522_v28 = vadd.f32 %v3853_v7, %v3840_v13  ;;  %v4970_v19 = vor.u32 %v6702_v11, %v4969_v58  ;;  %v3879_v58 = vpop.f32.mrf.mxu1 }
 0x289   :  { %v6339_v29 = vld [vmem:[#allocation8 + $0xe30] sm:$0xf0]  ;;  %v6630_v24 = vld [vmem:[#allocation8 + $0x134] sm:$0xf0]  ;;  %v3504_v39 = vadd.f32 %v7426_v49, %v3490_v31  ;;  %v3616_v37 = vadd.f32 %v7458_v32, %v3602_v44  ;;  %v3865_v32 = vpop.f32.mrf.mxu0 }
 0x28a   :  { %v6342_v3 = vor.u32 %v7041_v14, %v6339_v29  ;;  %4137 = vmatpush.bf16.msra.mxu0 %v4746_v33  ;;  %4115 = vmatpush.bf16.msrb.mxu2 %v6086_v0  ;;  %v4937_v18 = vld [vmem:[#allocation8 + $0x318] sm:$0xf]  ;;  %v5514_v14 = vor.u32 %v6838_v15, %v5513_v27  ;;  %v4682_v9 = vor.u32 %v6630_v24, %v4681_v53 }
 0x28b   :  { %v6694_v22 = vld [vmem:[#allocation8 + $0x334] sm:$0xf0]  ;;  %v3518_v48 = vadd.f32 %v7428_v56, %v3504_v39 }
 0x28c   :  { %4151 = vmatpush.bf16.msra.mxu1 %v5002_v59  ;;  %4129 = vmatpush.bf16.msrb.mxu3 %v6342_v3  ;;  %v5225_v29 = vld [vmem:[#allocation8 + $0x558] sm:$0xf]  ;;  %v4938_v41 = vor.u32 %v6694_v22, %v4937_v18  ;;  %v3630_v3 = vadd.f32 %v7460_v40, %v3616_v37 }
 0x28d   :  { %v6766_v50 = vld [vmem:[#allocation8 + $0x574] sm:$0xf0]  ;;  %4116 = vmatmul.bf16.vlgmr.msrb.gmra.mxu2 %v7395_v61  ;;  %v3532_v40 = vadd.f32 %v7431_v1, %v3518_v48 }
 0x28e   :  { %4164 = vmatpush.bf16.msra.mxu2 %v5290_v38  ;;  %4138 = vmatpush.bf16.msra.mxu0 %v4714_v6  ;;  %v5481_v33 = vld [vmem:[#allocation8 + $0x758] sm:$0xf]  ;;  %v5226_v49 = vor.u32 %v6766_v50, %v5225_v29  ;;  %v3866_v38 = vadd.f32 %v3865_v32, %v7511_v60  ;;  %v3644_v56 = vadd.f32 %v7472_v20, %v3630_v3 }
 0x28f   :  { %v6830_v52 = vld [vmem:[#allocation8 + $0x774] sm:$0xf0]  ;;  %4130 = vmatmul.bf16.vlgmr.msrb.gmra.mxu3 %v7397_v2  ;;  %v3546_v1 = vadd.f32 %v7434_v8, %v3532_v40  ;;  %v7543_v40 = vld [vmem:[#allocation11] sm:$0xff] }
 0x290   :  { %4178 = vmatpush.bf16.msra.mxu3 %v5546_v4  ;;  %4152 = vmatpush.bf16.msra.mxu1 %v4970_v19  ;;  %v4649_v21 = vld [vmem:[#allocation8 + $0xd8] sm:$0xf]  ;;  %v5482_v47 = vor.u32 %v6830_v52, %v5481_v33  ;;  %v3880_v6 = vadd.f32 %v3879_v58, %v3866_v38  ;;  %v3658_v20 = vadd.f32 %v7477_v30, %v3644_v56  ;;  %v3881_v48 = vpop.f32.mrf.mxu1  ;;  %v3893_v58 = vpop.f32.mrf.mxu2 }
 0x291   :  { %v6622_v26 = vld [vmem:[#allocation8 + $0xf4] sm:$0xf0]  ;;  %v3867_v37 = vpop.f32.mrf.mxu0 }
 0x292   :  { %4165 = vmatpush.bf16.msra.mxu2 %v5258_v62  ;;  %v4905_v59 = vld [vmem:[#allocation8 + $0x2d8] sm:$0xf]  ;;  %4139 = vmatpush.bf16.msra.mxu0 %v4682_v9  ;;  %v4650_v11 = vor.u32 %v6622_v26, %v4649_v21  ;;  %v3868_v21 = vadd.f32 %v3867_v37, %v7522_v28 }
 0x293   :  { %v6686_v0 = vld [vmem:[#allocation8 + $0x2f4] sm:$0xf0] }
 0x294   :  { %4179 = vmatpush.bf16.msra.mxu3 %v5514_v14  ;;  %v5193_v55 = vld [vmem:[#allocation8 + $0x518] sm:$0xf]  ;;  %4153 = vmatpush.bf16.msra.mxu1 %v4938_v41  ;;  %v4906_v46 = vor.u32 %v6686_v0, %v4905_v59  ;;  %v3672_v41 = vadd.f32 %v7482_v36, %v3658_v20  ;;  %v3560_v0 = vadd.f32 %v7443_v5, %v3546_v1 }
 0x295   :  { %v6758_v57 = vld [vmem:[#allocation8 + $0x534] sm:$0xf0] }
 0x296   :  { %v5449_v13 = vld [vmem:[#allocation8 + $0x718] sm:$0xf]  ;;  %4166 = vmatpush.bf16.msra.mxu2 %v5226_v49  ;;  %v5194_v27 = vor.u32 %v6758_v57, %v5193_v55  ;;  %4140 = vmatpush.bf16.msra.mxu0 %v4650_v11  ;;  %v7539_v57 = vadd.f32 %v3881_v48, %v3868_v21  ;;  %v3686_v5 = vadd.f32 %v7484_v43, %v3672_v41 }
 0x297   :  { %v6822_v4 = vld [vmem:[#allocation8 + $0x734] sm:$0xf0] }
 0x298   :  { %v4617_v63 = vld [vmem:[#allocation8 + $0x98] sm:$0xf]  ;;  %4180 = vmatpush.bf16.msra.mxu3 %v5482_v47  ;;  %v5450_v60 = vor.u32 %v6822_v4, %v5449_v13  ;;  %4154 = vmatpush.bf16.msra.mxu1 %v4906_v46 }
 0x299   :  { %v6614_v7 = vld [vmem:[#allocation8 + $0xb4] sm:$0xf0] }
 0x29a   :  { %v4873_v15 = vld [vmem:[#allocation8 + $0x298] sm:$0xf]  ;;  %v4618_v24 = vor.u32 %v6614_v7, %v4617_v63  ;;  %4167 = vmatpush.bf16.msra.mxu2 %v5194_v27  ;;  %v3894_v63 = vadd.f32 %v3893_v58, %v3880_v6  ;;  %v3907_v7 = vpop.f32.mrf.mxu3 }
 0x29b   :  { %v6678_v31 = vld [vmem:[#allocation8 + $0x2b4] sm:$0xf0] }
 0x29c   :  { %v5161_v19 = vld [vmem:[#allocation8 + $0x4d8] sm:$0xf]  ;;  %v4874_v18 = vor.u32 %v6678_v31, %v4873_v15  ;;  %4181 = vmatpush.bf16.msra.mxu3 %v5450_v60  ;;  %4141 = vmatpush.bf16.msra.mxu0 %v4618_v24  ;;  %v3574_v31 = vadd.f32 %v7445_v10, %v3560_v0  ;;  %v4381_v60 = vperm.slane %v7543_v40, 3 }
 0x29d   :  { %v6750_v53 = vld [vmem:[#allocation8 + $0x4f4] sm:$0xf0] }
 0x29e   :  { %v5417_v44 = vld [vmem:[#allocation8 + $0x6d8] sm:$0xf]  ;;  %v5162_v14 = vor.u32 %v6750_v53, %v5161_v19  ;;  %4155 = vmatpush.bf16.msra.mxu1 %v4874_v18 }
 0x29f   :  { %v6814_v62 = vld [vmem:[#allocation8 + $0x6f4] sm:$0xf0] }
 0x2a0   :  { %v4585_v22 = vld [vmem:[#allocation8 + $0x58] sm:$0xf]  ;;  %v5418_v9 = vor.u32 %v6814_v62, %v5417_v44  ;;  %4168 = vmatpush.bf16.msra.mxu2 %v5162_v14  ;;  %v3908_v62 = vadd.f32 %v3907_v7, %v3894_v63 }
 0x2a1   :  { %v6606_v39 = vld [vmem:[#allocation8 + $0x74] sm:$0xf0] }
 0x2a2   :  { %v4841_v29 = vld [vmem:[#allocation8 + $0x258] sm:$0xf]  ;;  %v4586_v26 = vor.u32 %v6606_v39, %v4585_v22  ;;  %4182 = vmatpush.bf16.msra.mxu3 %v5418_v9  ;;  %v4363_v1 = vmax.f32 %v3908_v62, 0.0 }
 0x2a3   :  { %v6670_v50 = vld [vmem:[#allocation8 + $0x274] sm:$0xf0] }
 0x2a4   :  { %v5129_v33 = vld [vmem:[#allocation8 + $0x498] sm:$0xf]  ;;  %v4842_v32 = vor.u32 %v6670_v50, %v4841_v29  ;;  %4142 = vmatpush.bf16.msra.mxu0 %v4586_v26  ;;  %v4369_v50 = vmax.f32 %v3686_v5, 0.0  ;;  %v4370_v26 = vmax.f32 %v7504_v42, 0.0 }
 0x2a5   :  { %v6742_v52 = vld [vmem:[#allocation8 + $0x4b4] sm:$0xf0] }
 0x2a6   :  { %v5385_v49 = vld [vmem:[#allocation8 + $0x698] sm:$0xf]  ;;  %v5130_v3 = vor.u32 %v6742_v52, %v5129_v33  ;;  %4156 = vmatpush.bf16.msra.mxu1 %v4842_v32  ;;  %v4368_v33 = vmax.f32 %v3574_v31, 0.0  ;;  %v3895_v32 = vpop.f32.mrf.mxu2  ;;  %v4403_v42 = vmul.f32 %v4379_v35, %v4369_v50  ;;  %v7628_v35 = vperm.slane %v7462_v54, 2 }
 0x2a7   :  { %v6806_v59 = vld [vmem:[#allocation8 + $0x6b4] sm:$0xf0] }
 0x2a8   :  { %v4553_v30 = vld [vmem:[#allocation8 + $0x18] sm:$0xf]  ;;  %v5386_v11 = vor.u32 %v6806_v59, %v5385_v49  ;;  %4169 = vmatpush.bf16.msra.mxu2 %v5130_v3  ;;  %v4397_v49 = vmul.f32 %v4381_v60, %v4363_v1 }
 0x2a9   :  { %v6598_v8 = vld [vmem:[#allocation8 + $0x34] sm:$0xf0] }
 0x2aa   :  { %v4809_v47 = vld [vmem:[#allocation8 + $0x218] sm:$0xf]  ;;  %v4554_v56 = vor.u32 %v6598_v8, %v4553_v30  ;;  %4183 = vmatpush.bf16.msra.mxu3 %v5386_v11 }
 0x2ab   :  { %v6662_v55 = vld [vmem:[#allocation8 + $0x234] sm:$0xf0] }
 0x2ac   :  { %v5801_v36 = vld [vmem:[#allocation8 + $0x9d8] sm:$0xf]  ;;  %v4810_v19 = vor.u32 %v6662_v55, %v4809_v47  ;;  %4143 = vmatpush.bf16.msra.mxu0 %v4554_v56  ;;  %v4404_v56 = vmul.f32 %v7628_v35, %v4370_v26 }
 0x2ad   :  { %v6910_v38 = vld [vmem:[#allocation8 + $0x9f4] sm:$0xf0] }
 0x2ae   :  { %v6057_v28 = vld [vmem:[#allocation8 + $0xbd8] sm:$0xf]  ;;  %v5802_v53 = vor.u32 %v6910_v38, %v5801_v36  ;;  %4157 = vmatpush.bf16.msra.mxu1 %v4810_v19  ;;  %v7553_v36 = vadd.f32 %v7501_v16, %v4397_v49  ;;  %v3896_v38 = vadd.f32 %v3895_v32, %v7539_v57  ;;  %v3935_v49 = vpop.f32.mrf.mxu1 }
 0x2af   :  { %v6974_v13 = vld [vmem:[#allocation8 + $0xbf4] sm:$0xf0]  ;;  %4144 = vmatmul.bf16.vlgmr.msra.gmra.mxu0 %v7373_v12 }
 0x2b0   :  { %v5097_v4 = vld [vmem:[#allocation8 + $0x458] sm:$0xf]  ;;  %v6058_v43 = vor.u32 %v6974_v13, %v6057_v28  ;;  %4192 = vmatpush.bf16.msrb.mxu0 %v5802_v53  ;;  %v7627_v13 = vperm.slane %v7462_v54, 0  ;;  %v892_v54 = vperm.slane %v7507_v23, 4  ;;  %v3921_v23 = vpop.f32.mrf.mxu0 }
 0x2b1   :  { %v6734_v46 = vld [vmem:[#allocation8 + $0x474] sm:$0xf0]  ;;  %4158 = vmatmul.bf16.vlgmr.msra.gmra.mxu1 %v7375_v17 }
 0x2b2   :  { %v5353_v27 = vld [vmem:[#allocation8 + $0x658] sm:$0xf]  ;;  %v5098_v6 = vor.u32 %v6734_v46, %v5097_v4  ;;  %4206 = vmatpush.bf16.msrb.mxu1 %v6058_v43  ;;  %v4402_v4 = vmul.f32 %v7627_v13, %v4368_v33  ;;  %v3909_v46 = vpop.f32.mrf.mxu3  ;;  %v3922_v26 = vadd.f32 %v3921_v23, %v892_v54 }
 0x2b3   :  { %v6798_v15 = vld [vmem:[#allocation8 + $0x674] sm:$0xf0]  ;;  %v3910_v16 = vadd.f32 %v3909_v46, %v3896_v38 }
 0x2b4   :  { %v5769_v24 = vld [vmem:[#allocation8 + $0x998] sm:$0xf]  ;;  %v5354_v20 = vor.u32 %v6798_v15, %v5353_v27  ;;  %4170 = vmatpush.bf16.msra.mxu2 %v5098_v6 }
 0x2b5   :  { %v6902_v44 = vld [vmem:[#allocation8 + $0x9b4] sm:$0xf0] }
 0x2b6   :  { %v6025_v18 = vld [vmem:[#allocation8 + $0xb98] sm:$0xf]  ;;  %v5770_v52 = vor.u32 %v6902_v44, %v5769_v24  ;;  %4184 = vmatpush.bf16.msra.mxu3 %v5354_v20  ;;  %v4419_v24 = vadd.f32 %v4403_v42, %v4402_v4  ;;  %v4371_v44 = vmax.f32 %v3910_v16, 0.0 }
 0x2b7   :  { %v6966_v22 = vld [vmem:[#allocation8 + $0xbb4] sm:$0xf0] }
 0x2b8   :  { %v5065_v39 = vld [vmem:[#allocation8 + $0x418] sm:$0xf]  ;;  %v6026_v59 = vor.u32 %v6966_v22, %v6025_v18  ;;  %4193 = vmatpush.bf16.msrb.mxu0 %v5770_v52  ;;  %v4420_v20 = vadd.f32 %v4419_v24, %v4404_v56  ;;  %v3923_v56 = vpop.f32.mrf.mxu0 }
 0x2b9   :  { %v6726_v14 = vld [vmem:[#allocation8 + $0x434] sm:$0xf0] }
 0x2ba   :  { %v5321_v10 = vld [vmem:[#allocation8 + $0x618] sm:$0xf]  ;;  %v5066_v30 = vor.u32 %v6726_v14, %v5065_v39  ;;  %4207 = vmatpush.bf16.msrb.mxu1 %v6026_v59  ;;  %v4405_v14 = vmul.f32 %v4381_v60, %v4371_v44  ;;  %v3937_v44 = vpop.f32.mrf.mxu1  ;;  %v3963_v23 = vpop.f32.mrf.mxu3 }
 0x2bb   :  { %v6790_v29 = vld [vmem:[#allocation8 + $0x634] sm:$0xf0] }
 0x2bc   :  { %v6313_v37 = vld [vmem:[#allocation8 + $0xdd8] sm:$0xf]  ;;  %v5322_v8 = vor.u32 %v6790_v29, %v5321_v10  ;;  %4171 = vmatpush.bf16.msra.mxu2 %v5066_v30  ;;  %v7566_v33 = vadd.f32 %v4420_v20, %v4405_v14  ;;  %v6650_v20 = vld [vmem:[#allocation8 + $0x1dc] sm:$0xf] }
 0x2bd   :  { %v7038_v9 = vld [vmem:[#allocation8 + $0xdf4] sm:$0xf0]  ;;  %v4779_v14 = vld [vmem:[#allocation8 + $0x1f8] sm:$0xf0] }
 0x2be   :  { %v6569_v41 = vld [vmem:[#allocation8 + $0xfd8] sm:$0xf]  ;;  %v6314_v47 = vor.u32 %v7038_v9, %v6313_v37  ;;  %4185 = vmatpush.bf16.msra.mxu3 %v5322_v8  ;;  %v3936_v8 = vadd.f32 %v3935_v49, %v3922_v26  ;;  %v4782_v49 = vor.u32 %v6650_v20, %v4779_v14  ;;  %v4683_v20 = vld [vmem:[#allocation8 + $0x138] sm:$0xf0] }
 0x2bf   :  { %v7102_v21 = vld [vmem:[#allocation8 + $0xff4] sm:$0xf0]  ;;  %4172 = vmatmul.bf16.vlgmr.msra.gmra.mxu2 %v7381_v45  ;;  %v6690_v14 = vld [vmem:[#allocation8 + $0x31c] sm:$0xf] }
 0x2c0   :  { %v5737_v0 = vld [vmem:[#allocation8 + $0x958] sm:$0xf]  ;;  %v6570_v28 = vor.u32 %v7102_v21, %v6569_v41  ;;  %4220 = vmatpush.bf16.msrb.mxu2 %v6314_v47 }
 0x2c1   :  { %v6894_v48 = vld [vmem:[#allocation8 + $0x974] sm:$0xf0]  ;;  %4186 = vmatmul.bf16.vlgmr.msra.gmra.mxu3 %v7383_v51 }
 0x2c2   :  { %v5993_v55 = vld [vmem:[#allocation8 + $0xb58] sm:$0xf]  ;;  %v5738_v5 = vor.u32 %v6894_v48, %v5737_v0  ;;  %4234 = vmatpush.bf16.msrb.mxu3 %v6570_v28 }
 0x2c3   :  { %v6958_v3 = vld [vmem:[#allocation8 + $0xb74] sm:$0xf0] }
 0x2c4   :  { %v6281_v58 = vld [vmem:[#allocation8 + $0xd98] sm:$0xf]  ;;  %v5994_v57 = vor.u32 %v6958_v3, %v5993_v55  ;;  %4194 = vmatpush.bf16.msrb.mxu0 %v5738_v5 }
 0x2c5   :  { %v7030_v11 = vld [vmem:[#allocation8 + $0xdb4] sm:$0xf0] }
 0x2c6   :  { %v6537_v63 = vld [vmem:[#allocation8 + $0xf98] sm:$0xf]  ;;  %v6282_v31 = vor.u32 %v7030_v11, %v6281_v58  ;;  %4208 = vmatpush.bf16.msrb.mxu1 %v5994_v57 }
 0x2c7   :  { %v7094_v7 = vld [vmem:[#allocation8 + $0xfb4] sm:$0xf0] }
 0x2c8   :  { %v5705_v27 = vld [vmem:[#allocation8 + $0x918] sm:$0xf]  ;;  %v6538_v62 = vor.u32 %v7094_v7, %v6537_v63  ;;  %4221 = vmatpush.bf16.msrb.mxu2 %v6282_v31 }
 0x2c9   :  { %v6886_v15 = vld [vmem:[#allocation8 + $0x934] sm:$0xf0] }
 0x2ca   :  { %v5961_v19 = vld [vmem:[#allocation8 + $0xb18] sm:$0xf]  ;;  %v5706_v18 = vor.u32 %v6886_v15, %v5705_v27  ;;  %4235 = vmatpush.bf16.msrb.mxu3 %v6538_v62  ;;  %v3924_v15 = vadd.f32 %v3923_v56, %v892_v54 }
 0x2cb   :  { %v6950_v53 = vld [vmem:[#allocation8 + $0xb34] sm:$0xf0] }
 0x2cc   :  { %v6249_v43 = vld [vmem:[#allocation8 + $0xd58] sm:$0xf]  ;;  %v5962_v10 = vor.u32 %v6950_v53, %v5961_v19  ;;  %4195 = vmatpush.bf16.msrb.mxu0 %v5706_v18 }
 0x2cd   :  { %v7022_v6 = vld [vmem:[#allocation8 + $0xd74] sm:$0xf0] }
 0x2ce   :  { %v6505_v22 = vld [vmem:[#allocation8 + $0xf58] sm:$0xf]  ;;  %v6250_v1 = vor.u32 %v7022_v6, %v6249_v43  ;;  %4209 = vmatpush.bf16.msrb.mxu1 %v5962_v10  ;;  %v6714_v10 = vld [vmem:[#allocation8 + $0x3dc] sm:$0xf] }
 0x2cf   :  { %v7086_v39 = vld [vmem:[#allocation8 + $0xf74] sm:$0xf0] }
 0x2d0   :  { %v5673_v29 = vld [vmem:[#allocation8 + $0x8d8] sm:$0xf]  ;;  %v6506_v52 = vor.u32 %v7086_v39, %v6505_v22  ;;  %4222 = vmatpush.bf16.msrb.mxu2 %v6250_v1  ;;  %v3938_v22 = vadd.f32 %v3937_v44, %v3924_v15 }
 0x2d1   :  { %v6878_v50 = vld [vmem:[#allocation8 + $0x8f4] sm:$0xf0] }
 0x2d2   :  { %v5929_v37 = vld [vmem:[#allocation8 + $0xad8] sm:$0xf]  ;;  %v5674_v60 = vor.u32 %v6878_v50, %v5673_v29  ;;  %4236 = vmatpush.bf16.msrb.mxu3 %v6506_v52  ;;  %v3949_v29 = vpop.f32.mrf.mxu2  ;;  %v5035_v50 = vld [vmem:[#allocation8 + $0x3f8] sm:$0xf0] }
 0x2d3   :  { %v6942_v9 = vld [vmem:[#allocation8 + $0xaf4] sm:$0xf0] }
 0x2d4   :  { %v6217_v41 = vld [vmem:[#allocation8 + $0xd18] sm:$0xf]  ;;  %v5930_v0 = vor.u32 %v6942_v9, %v5929_v37  ;;  %4196 = vmatpush.bf16.msrb.mxu0 %v5674_v60  ;;  %v3950_v9 = vadd.f32 %v3949_v29, %v3936_v8  ;;  %v6642_v60 = vld [vmem:[#allocation8 + $0x19c] sm:$0xf] }
 0x2d5   :  { %v7014_v21 = vld [vmem:[#allocation8 + $0xd34] sm:$0xf0] }
 0x2d6   :  { %v6473_v59 = vld [vmem:[#allocation8 + $0xf18] sm:$0xf]  ;;  %v6218_v47 = vor.u32 %v7014_v21, %v6217_v41  ;;  %4210 = vmatpush.bf16.msrb.mxu1 %v5930_v0 }
 0x2d7   :  { %v7078_v30 = vld [vmem:[#allocation8 + $0xf34] sm:$0xf0] }
 0x2d8   :  { %v5641_v48 = vld [vmem:[#allocation8 + $0x898] sm:$0xf]  ;;  %v6474_v42 = vor.u32 %v7078_v30, %v6473_v59  ;;  %4223 = vmatpush.bf16.msrb.mxu2 %v6218_v47  ;;  %v7568_v59 = vadd.f32 %v3963_v23, %v3950_v9  ;;  %v5038_v30 = vor.u32 %v6714_v10, %v5035_v50  ;;  %v5003_v47 = vld [vmem:[#allocation8 + $0x3b8] sm:$0xf0] }
 0x2d9   :  { %v6870_v32 = vld [vmem:[#allocation8 + $0x8b4] sm:$0xf0]  ;;  %v4939_v10 = vld [vmem:[#allocation8 + $0x338] sm:$0xf0] }
 0x2da   :  { %v5897_v55 = vld [vmem:[#allocation8 + $0xa98] sm:$0xf]  ;;  %v5642_v58 = vor.u32 %v6870_v32, %v5641_v48  ;;  %4237 = vmatpush.bf16.msrb.mxu3 %v6474_v42  ;;  %v4747_v48 = vld [vmem:[#allocation8 + $0x1b8] sm:$0xf0]  ;;  %v4942_v23 = vor.u32 %v6690_v14, %v4939_v10 }
 0x2db   :  { %v6934_v3 = vld [vmem:[#allocation8 + $0xab4] sm:$0xf0]  ;;  %v6706_v32 = vld [vmem:[#allocation8 + $0x39c] sm:$0xf] }
 0x2dc   :  { %v6185_v38 = vld [vmem:[#allocation8 + $0xcd8] sm:$0xf]  ;;  %v5898_v4 = vor.u32 %v6934_v3, %v5897_v55  ;;  %4197 = vmatpush.bf16.msrb.mxu0 %v5642_v58  ;;  %v5291_v58 = vld [vmem:[#allocation8 + $0x5f8] sm:$0xf0] }
 0x2dd   :  { %v7006_v28 = vld [vmem:[#allocation8 + $0xcf4] sm:$0xf0]  ;;  %v5227_v50 = vld [vmem:[#allocation8 + $0x578] sm:$0xf0] }
 0x2de   :  { %v6441_v11 = vld [vmem:[#allocation8 + $0xed8] sm:$0xf]  ;;  %v6186_v63 = vor.u32 %v7006_v28, %v6185_v38  ;;  %4211 = vmatpush.bf16.msrb.mxu1 %v5898_v4  ;;  %v6778_v28 = vld [vmem:[#allocation8 + $0x5dc] sm:$0xf] }
 0x2df   :  { %v7070_v13 = vld [vmem:[#allocation8 + $0xef4] sm:$0xf0]  ;;  %v5547_v4 = vld [vmem:[#allocation8 + $0x7f8] sm:$0xf0] }
 0x2e0   :  { %v5609_v46 = vld [vmem:[#allocation8 + $0x858] sm:$0xf]  ;;  %v6442_v16 = vor.u32 %v7070_v13, %v6441_v11  ;;  %4224 = vmatpush.bf16.msrb.mxu2 %v6186_v63  ;;  %v4750_v11 = vor.u32 %v6642_v60, %v4747_v48  ;;  %v6842_v13 = vld [vmem:[#allocation8 + $0x7dc] sm:$0xf]  ;;  %v3977_v60 = vpop.f32.mrf.mxu0 }
 0x2e1   :  { %v6862_v5 = vld [vmem:[#allocation8 + $0x874] sm:$0xf0]  ;;  %v6634_v63 = vld [vmem:[#allocation8 + $0x15c] sm:$0xf] }
 0x2e2   :  { %v5865_v7 = vld [vmem:[#allocation8 + $0xa58] sm:$0xf]  ;;  %v5610_v31 = vor.u32 %v6862_v5, %v5609_v46  ;;  %4238 = vmatpush.bf16.msrb.mxu3 %v6442_v16  ;;  %v5006_v46 = vor.u32 %v6706_v32, %v5003_v47  ;;  %v5294_v16 = vor.u32 %v6778_v28, %v5291_v58  ;;  %v5483_v9 = vld [vmem:[#allocation8 + $0x778] sm:$0xf0]  ;;  %v3978_v32 = vadd.f32 %v3977_v60, %v7568_v59  ;;  %v3991_v47 = vpop.f32.mrf.mxu1 }
 0x2e3   :  { %v6926_v35 = vld [vmem:[#allocation8 + $0xa74] sm:$0xf0]  ;;  %v5195_v48 = vld [vmem:[#allocation8 + $0x538] sm:$0xf0] }
 0x2e4   :  { %v6153_v57 = vld [vmem:[#allocation8 + $0xc98] sm:$0xf]  ;;  %v5866_v62 = vor.u32 %v6926_v35, %v5865_v7  ;;  %4198 = vmatpush.bf16.msrb.mxu0 %v5610_v31  ;;  %v4715_v7 = vld [vmem:[#allocation8 + $0x178] sm:$0xf0]  ;;  %v3951_v35 = vpop.f32.mrf.mxu2  ;;  %v5550_v31 = vor.u32 %v6842_v13, %v5547_v4  ;;  %v3992_v58 = vadd.f32 %v3991_v47, %v3978_v32  ;;  %v4382_v32 = vperm.slane %v7543_v40, 4 }
 0x2e5   :  { %v6998_v27 = vld [vmem:[#allocation8 + $0xcb4] sm:$0xf0]  ;;  %v3952_v15 = vadd.f32 %v3951_v35, %v3938_v22  ;;  %v4718_v44 = vor.u32 %v6634_v63, %v4715_v7  ;;  %v4619_v28 = vld [vmem:[#allocation8 + $0xb8] sm:$0xf0] }
 0x2e6   :  { %v6409_v19 = vld [vmem:[#allocation8 + $0xe98] sm:$0xf]  ;;  %v6154_v39 = vor.u32 %v6998_v27, %v6153_v57  ;;  %4212 = vmatpush.bf16.msrb.mxu1 %v5866_v62  ;;  %v6698_v57 = vld [vmem:[#allocation8 + $0x35c] sm:$0xf] }
 0x2e7   :  { %v7062_v53 = vld [vmem:[#allocation8 + $0xeb4] sm:$0xf0]  ;;  %v4971_v27 = vld [vmem:[#allocation8 + $0x378] sm:$0xf0] }
 0x2e8   :  { %v5577_v24 = vld [vmem:[#allocation8 + $0x818] sm:$0xf]  ;;  %v6410_v54 = vor.u32 %v7062_v53, %v6409_v19  ;;  %4225 = vmatpush.bf16.msrb.mxu2 %v6154_v39  ;;  %v6770_v19 = vld [vmem:[#allocation8 + $0x59c] sm:$0xf] }
 0x2e9   :  { %v6854_v43 = vld [vmem:[#allocation8 + $0x834] sm:$0xf0]  ;;  %v5259_v53 = vld [vmem:[#allocation8 + $0x5b8] sm:$0xf0] }
 0x2ea   :  { %v5833_v6 = vld [vmem:[#allocation8 + $0xa18] sm:$0xf]  ;;  %v5578_v52 = vor.u32 %v6854_v43, %v5577_v24  ;;  %4239 = vmatpush.bf16.msrb.mxu3 %v6410_v54  ;;  %v3965_v24 = vpop.f32.mrf.mxu3  ;;  %v6834_v62 = vld [vmem:[#allocation8 + $0x79c] sm:$0xf]  ;;  %v5262_v22 = vor.u32 %v6770_v19, %v5259_v53  ;;  %v3979_v19 = vpop.f32.mrf.mxu0 }
 0x2eb   :  { %v6918_v18 = vld [vmem:[#allocation8 + $0xa34] sm:$0xf0]  ;;  %v5515_v43 = vld [vmem:[#allocation8 + $0x7b8] sm:$0xf0] }
 0x2ec   :  { %v6121_v1 = vld [vmem:[#allocation8 + $0xc58] sm:$0xf]  ;;  %v5834_v26 = vor.u32 %v6918_v18, %v5833_v6  ;;  %4199 = vmatpush.bf16.msrb.mxu0 %v5578_v52  ;;  %v7572_v6 = vadd.f32 %v3965_v24, %v3952_v15  ;;  %v4974_v18 = vor.u32 %v6698_v57, %v4971_v27  ;;  %v6626_v39 = vld [vmem:[#allocation8 + $0x11c] sm:$0xf]  ;;  %v5518_v29 = vor.u32 %v6834_v62, %v5515_v43 }
 0x2ed   :  { %v6990_v37 = vld [vmem:[#allocation8 + $0xc74] sm:$0xf0]  ;;  %v6762_v54 = vld [vmem:[#allocation8 + $0x55c] sm:$0xf] }
 0x2ee   :  { %v6377_v41 = vld [vmem:[#allocation8 + $0xe58] sm:$0xf]  ;;  %v6122_v0 = vor.u32 %v6990_v37, %v6121_v1  ;;  %4213 = vmatpush.bf16.msrb.mxu1 %v5834_v26  ;;  %v4686_v1 = vor.u32 %v6626_v39, %v4683_v20  ;;  %v6826_v37 = vld [vmem:[#allocation8 + $0x75c] sm:$0xf]  ;;  %v3980_v62 = vadd.f32 %v3979_v19, %v7572_v6 }
 0x2ef   :  { %v7054_v21 = vld [vmem:[#allocation8 + $0xe74] sm:$0xf0]  ;;  %4200 = vmatmul.bf16.vlgmr.msrb.gmra.mxu0 %v7389_v25  ;;  %v6618_v52 = vld [vmem:[#allocation8 + $0xdc] sm:$0xf] }
 0x2f0   :  { %v6378_v55 = vor.u32 %v7054_v21, %v6377_v41  ;;  %v6089_v8 = vld [vmem:[#allocation8 + $0xc18] sm:$0xf]  ;;  %4248 = vmatpush.bf16.msra.mxu0 %v4782_v49  ;;  %4226 = vmatpush.bf16.msrb.mxu2 %v6122_v0  ;;  %v4651_v41 = vld [vmem:[#allocation8 + $0xf8] sm:$0xf0]  ;;  %v5230_v21 = vor.u32 %v6762_v54, %v5227_v50 }
 0x2f1   :  { %v6982_v3 = vld [vmem:[#allocation8 + $0xc34] sm:$0xf0]  ;;  %4214 = vmatmul.bf16.vlgmr.msrb.gmra.mxu1 %v7391_v34  ;;  %v6682_v26 = vld [vmem:[#allocation8 + $0x2dc] sm:$0xf] }
 0x2f2   :  { %v6345_v42 = vld [vmem:[#allocation8 + $0xe18] sm:$0xf]  ;;  %4262 = vmatpush.bf16.msra.mxu1 %v5038_v30  ;;  %v6090_v5 = vor.u32 %v6982_v3, %v6089_v8  ;;  %4240 = vmatpush.bf16.msrb.mxu3 %v6378_v55  ;;  %v4907_v49 = vld [vmem:[#allocation8 + $0x2f8] sm:$0xf0]  ;;  %v5486_v30 = vor.u32 %v6826_v37, %v5483_v9  ;;  %v4654_v55 = vor.u32 %v6618_v52, %v4651_v41  ;;  %v4005_v52 = vpop.f32.mrf.mxu2  ;;  %v4019_v60 = vpop.f32.mrf.mxu3 }
 0x2f3   :  { %v7046_v38 = vld [vmem:[#allocation8 + $0xe34] sm:$0xf0]  ;;  %v6754_v0 = vld [vmem:[#allocation8 + $0x51c] sm:$0xf] }
 0x2f4   :  { %v6346_v56 = vor.u32 %v7046_v38, %v6345_v42  ;;  %4249 = vmatpush.bf16.msra.mxu0 %v4750_v11  ;;  %4227 = vmatpush.bf16.msrb.mxu2 %v6090_v5  ;;  %v6818_v8 = vld [vmem:[#allocation8 + $0x71c] sm:$0xf]  ;;  %v4910_v42 = vor.u32 %v6682_v26, %v4907_v49  ;;  %v5198_v11 = vor.u32 %v6754_v0, %v5195_v48 }
 0x2f5   :  { %v5451_v3 = vld [vmem:[#allocation8 + $0x738] sm:$0xf0]  ;;  %v4006_v49 = vadd.f32 %v4005_v52, %v3992_v58 }
 0x2f6   :  { %4263 = vmatpush.bf16.msra.mxu1 %v5006_v46  ;;  %4241 = vmatpush.bf16.msrb.mxu3 %v6346_v56  ;;  %v6610_v38 = vld [vmem:[#allocation8 + $0x9c] sm:$0xf]  ;;  %v5454_v46 = vor.u32 %v6818_v8, %v5451_v3 }
 0x2f7   :  { %4228 = vmatmul.bf16.vlgmr.msrb.gmra.mxu2 %v7395_v61  ;;  %v6674_v13 = vld [vmem:[#allocation8 + $0x29c] sm:$0xf]  ;;  %v4622_v59 = vor.u32 %v6610_v38, %v4619_v28 }
 0x2f8   :  { %4276 = vmatpush.bf16.msra.mxu2 %v5294_v16  ;;  %4250 = vmatpush.bf16.msra.mxu0 %v4718_v44  ;;  %v4875_v4 = vld [vmem:[#allocation8 + $0x2b8] sm:$0xf0] }
 0x2f9   :  { %4242 = vmatmul.bf16.vlgmr.msrb.gmra.mxu3 %v7397_v2  ;;  %v6746_v5 = vld [vmem:[#allocation8 + $0x4dc] sm:$0xf]  ;;  %v4878_v56 = vor.u32 %v6674_v13, %v4875_v4 }
 0x2fa   :  { %4290 = vmatpush.bf16.msra.mxu3 %v5550_v31  ;;  %4264 = vmatpush.bf16.msra.mxu1 %v4974_v18  ;;  %v5163_v63 = vld [vmem:[#allocation8 + $0x4f8] sm:$0xf0] }
 0x2fb   :  { %v6810_v7 = vld [vmem:[#allocation8 + $0x6dc] sm:$0xf]  ;;  %v5166_v27 = vor.u32 %v6746_v5, %v5163_v63 }
 0x2fc   :  { %4277 = vmatpush.bf16.msra.mxu2 %v5262_v22  ;;  %4251 = vmatpush.bf16.msra.mxu0 %v4686_v1  ;;  %v5419_v35 = vld [vmem:[#allocation8 + $0x6f8] sm:$0xf0]  ;;  %v3993_v22 = vpop.f32.mrf.mxu1 }
 0x2fd   :  { %v6602_v16 = vld [vmem:[#allocation8 + $0x5c] sm:$0xf]  ;;  %v5422_v53 = vor.u32 %v6810_v7, %v5419_v35  ;;  %v3994_v50 = vadd.f32 %v3993_v22, %v3980_v62 }
 0x2fe   :  { %4291 = vmatpush.bf16.msra.mxu3 %v5518_v29  ;;  %4265 = vmatpush.bf16.msra.mxu1 %v4942_v23  ;;  %v4587_v57 = vld [vmem:[#allocation8 + $0x78] sm:$0xf0] }
 0x2ff   :  { %v6666_v15 = vld [vmem:[#allocation8 + $0x25c] sm:$0xf]  ;;  %v4590_v43 = vor.u32 %v6602_v16, %v4587_v57 }
 0x300   :  { %4278 = vmatpush.bf16.msra.mxu2 %v5230_v21  ;;  %4252 = vmatpush.bf16.msra.mxu0 %v4654_v55  ;;  %v4843_v31 = vld [vmem:[#allocation8 + $0x278] sm:$0xf0] }
 0x301   :  { %v6738_v24 = vld [vmem:[#allocation8 + $0x49c] sm:$0xf]  ;;  %v4846_v14 = vor.u32 %v6666_v15, %v4843_v31 }
 0x302   :  { %4292 = vmatpush.bf16.msra.mxu3 %v5486_v30  ;;  %4266 = vmatpush.bf16.msra.mxu1 %v4910_v42  ;;  %v5131_v44 = vld [vmem:[#allocation8 + $0x4b8] sm:$0xf0]  ;;  %v4020_v42 = vadd.f32 %v4019_v60, %v4006_v49  ;;  %v7587_v49 = vld [vmem:[#allocation10] sm:$0xff] }
 0x303   :  { %v6802_v18 = vld [vmem:[#allocation8 + $0x69c] sm:$0xf]  ;;  %v5134_v1 = vor.u32 %v6738_v24, %v5131_v44  ;;  %v4007_v24 = vpop.f32.mrf.mxu2  ;;  %v893_v60 = vperm.slane %v7587_v49, 5 }
 0x304   :  { %4279 = vmatpush.bf16.msra.mxu2 %v5198_v11  ;;  %4253 = vmatpush.bf16.msra.mxu0 %v4622_v59  ;;  %v5387_v39 = vld [vmem:[#allocation8 + $0x6b8] sm:$0xf0]  ;;  %v4364_v59 = vmax.f32 %v4020_v42, 0.0 }
 0x305   :  { %v6594_v20 = vld [vmem:[#allocation8 + $0x1c] sm:$0xf]  ;;  %v5390_v6 = vor.u32 %v6802_v18, %v5387_v39 }
 0x306   :  { %4293 = vmatpush.bf16.msra.mxu3 %v5454_v46  ;;  %4267 = vmatpush.bf16.msra.mxu1 %v4878_v56  ;;  %v4555_v10 = vld [vmem:[#allocation8 + $0x38] sm:$0xf0] }
 0x307   :  { %v6658_v29 = vld [vmem:[#allocation8 + $0x21c] sm:$0xf]  ;;  %v4558_v30 = vor.u32 %v6594_v20, %v4555_v10  ;;  %v4008_v20 = vadd.f32 %v4007_v24, %v3994_v50 }
 0x308   :  { %v4811_v54 = vld [vmem:[#allocation8 + $0x238] sm:$0xf0]  ;;  %4280 = vmatpush.bf16.msra.mxu2 %v5166_v27  ;;  %4254 = vmatpush.bf16.msra.mxu0 %v4590_v43  ;;  %v4398_v27 = vmul.f32 %v4382_v32, %v4364_v59 }
 0x309   :  { %v6906_v37 = vld [vmem:[#allocation8 + $0x9dc] sm:$0xf]  ;;  %v4814_v47 = vor.u32 %v6658_v29, %v4811_v54  ;;  %v4021_v29 = vpop.f32.mrf.mxu3 }
 0x30a   :  { %v5803_v9 = vld [vmem:[#allocation8 + $0x9f8] sm:$0xf0]  ;;  %4294 = vmatpush.bf16.msra.mxu3 %v5422_v53  ;;  %4268 = vmatpush.bf16.msra.mxu1 %v4846_v14  ;;  %v7583_v39 = vadd.f32 %v7553_v36, %v4398_v27 }
 0x30b   :  { %v6970_v23 = vld [vmem:[#allocation8 + $0xbdc] sm:$0xf]  ;;  %v5806_v55 = vor.u32 %v6906_v37, %v5803_v9  ;;  %v4022_v9 = vadd.f32 %v4021_v29, %v4008_v20 }
 0x30c   :  { %v6059_v41 = vld [vmem:[#allocation8 + $0xbf8] sm:$0xf0]  ;;  %4281 = vmatpush.bf16.msra.mxu2 %v5134_v1  ;;  %4255 = vmatpush.bf16.msra.mxu0 %v4558_v30 }
 0x30d   :  { %v6730_v21 = vld [vmem:[#allocation8 + $0x45c] sm:$0xf]  ;;  %v6062_v38 = vor.u32 %v6970_v23, %v6059_v41 }
 0x30e   :  { %v5099_v26 = vld [vmem:[#allocation8 + $0x478] sm:$0xf0]  ;;  %4295 = vmatpush.bf16.msra.mxu3 %v5390_v6  ;;  %4269 = vmatpush.bf16.msra.mxu1 %v4814_v47 }
 0x30f   :  { %v6794_v0 = vld [vmem:[#allocation8 + $0x65c] sm:$0xf]  ;;  %v5102_v28 = vor.u32 %v6730_v21, %v5099_v26  ;;  %4256 = vmatmul.bf16.vlgmr.msra.gmra.mxu0 %v7373_v12 }
 0x310   :  { %v5355_v48 = vld [vmem:[#allocation8 + $0x678] sm:$0xf0]  ;;  %4304 = vmatpush.bf16.msrb.mxu0 %v5806_v55 }
 0x311   :  { %v6898_v8 = vld [vmem:[#allocation8 + $0x99c] sm:$0xf]  ;;  %v5358_v58 = vor.u32 %v6794_v0, %v5355_v48  ;;  %4282 = vmatpush.bf16.msra.mxu2 %v5102_v28  ;;  %4270 = vmatmul.bf16.vlgmr.msra.gmra.mxu1 %v7375_v17  ;;  %v4372_v17 = vmax.f32 %v4022_v9, 0.0 }
 0x312   :  { %v5771_v3 = vld [vmem:[#allocation8 + $0x9b8] sm:$0xf0]  ;;  %4318 = vmatpush.bf16.msrb.mxu1 %v6062_v38 }
 0x313   :  { %v6962_v11 = vld [vmem:[#allocation8 + $0xb9c] sm:$0xf]  ;;  %v5774_v56 = vor.u32 %v6898_v8, %v5771_v3  ;;  %4296 = vmatpush.bf16.msra.mxu3 %v5358_v58  ;;  %v4406_v47 = vmul.f32 %v4382_v32, %v4372_v17  ;;  %v4047_v32 = vpop.f32.mrf.mxu1 }
 0x314   :  { %v6027_v13 = vld [vmem:[#allocation8 + $0xbb8] sm:$0xf0] }
 0x315   :  { %v6722_v4 = vld [vmem:[#allocation8 + $0x41c] sm:$0xf]  ;;  %v6030_v15 = vor.u32 %v6962_v11, %v6027_v13  ;;  %4305 = vmatpush.bf16.msrb.mxu0 %v5774_v56  ;;  %v7594_v28 = vadd.f32 %v7566_v33, %v4406_v47  ;;  %v4033_v11 = vpop.f32.mrf.mxu0  ;;  %v4075_v47 = vpop.f32.mrf.mxu3 }
 0x316   :  { %v5067_v46 = vld [vmem:[#allocation8 + $0x438] sm:$0xf0] }
 0x317   :  { %v6786_v5 = vld [vmem:[#allocation8 + $0x61c] sm:$0xf]  ;;  %v5070_v31 = vor.u32 %v6722_v4, %v5067_v46  ;;  %4319 = vmatpush.bf16.msrb.mxu1 %v6030_v15  ;;  %v4034_v46 = vadd.f32 %v4033_v11, %v893_v60 }
 0x318   :  { %v5323_v63 = vld [vmem:[#allocation8 + $0x638] sm:$0xf0] }
 0x319   :  { %v7034_v7 = vld [vmem:[#allocation8 + $0xddc] sm:$0xf]  ;;  %v5326_v44 = vor.u32 %v6786_v5, %v5323_v63  ;;  %4283 = vmatpush.bf16.msra.mxu2 %v5070_v31  ;;  %v4048_v56 = vadd.f32 %v4047_v32, %v4034_v46 }
 0x31a   :  { %v6315_v35 = vld [vmem:[#allocation8 + $0xdf8] sm:$0xf0] }
 0x31b   :  { %v7098_v16 = vld [vmem:[#allocation8 + $0xfdc] sm:$0xf]  ;;  %v6318_v62 = vor.u32 %v7034_v7, %v6315_v35  ;;  %4297 = vmatpush.bf16.msra.mxu3 %v5326_v44 }
 0x31c   :  { %v6571_v57 = vld [vmem:[#allocation8 + $0xff8] sm:$0xf0]  ;;  %4284 = vmatmul.bf16.vlgmr.msra.gmra.mxu2 %v7381_v45 }
 0x31d   :  { %v6890_v19 = vld [vmem:[#allocation8 + $0x95c] sm:$0xf]  ;;  %v6574_v22 = vor.u32 %v7098_v16, %v6571_v57  ;;  %4332 = vmatpush.bf16.msrb.mxu2 %v6318_v62 }
 0x31e   :  { %v5739_v53 = vld [vmem:[#allocation8 + $0x978] sm:$0xf0]  ;;  %4298 = vmatmul.bf16.vlgmr.msra.gmra.mxu3 %v7383_v51 }
 0x31f   :  { %v6954_v43 = vld [vmem:[#allocation8 + $0xb5c] sm:$0xf]  ;;  %v5742_v54 = vor.u32 %v6890_v19, %v5739_v53  ;;  %4346 = vmatpush.bf16.msrb.mxu3 %v6574_v22 }
 0x320   :  { %v5995_v18 = vld [vmem:[#allocation8 + $0xb78] sm:$0xf0] }
 0x321   :  { %v7026_v14 = vld [vmem:[#allocation8 + $0xd9c] sm:$0xf]  ;;  %v5998_v12 = vor.u32 %v6954_v43, %v5995_v18  ;;  %4306 = vmatpush.bf16.msrb.mxu0 %v5742_v54 }
 0x322   :  { %v6283_v10 = vld [vmem:[#allocation8 + $0xdb8] sm:$0xf0] }
 0x323   :  { %v7090_v1 = vld [vmem:[#allocation8 + $0xf9c] sm:$0xf]  ;;  %v6286_v36 = vor.u32 %v7026_v14, %v6283_v10  ;;  %4320 = vmatpush.bf16.msrb.mxu1 %v5998_v12  ;;  %v4035_v14 = vpop.f32.mrf.mxu0 }
 0x324   :  { %v6539_v37 = vld [vmem:[#allocation8 + $0xfb8] sm:$0xf0] }
 0x325   :  { %v6882_v23 = vld [vmem:[#allocation8 + $0x91c] sm:$0xf]  ;;  %v6542_v41 = vor.u32 %v7090_v1, %v6539_v37  ;;  %4333 = vmatpush.bf16.msrb.mxu2 %v6286_v36  ;;  %v4036_v1 = vadd.f32 %v4035_v14, %v893_v60 }
 0x326   :  { %v5707_v52 = vld [vmem:[#allocation8 + $0x938] sm:$0xf0] }
 0x327   :  { %v6946_v50 = vld [vmem:[#allocation8 + $0xb1c] sm:$0xf]  ;;  %v5710_v30 = vor.u32 %v6882_v23, %v5707_v52  ;;  %4347 = vmatpush.bf16.msrb.mxu3 %v6542_v41  ;;  %v4049_v23 = vpop.f32.mrf.mxu1 }
 0x328   :  { %v5963_v6 = vld [vmem:[#allocation8 + $0xb38] sm:$0xf0] }
 0x329   :  { %v7018_v21 = vld [vmem:[#allocation8 + $0xd5c] sm:$0xf]  ;;  %v5966_v55 = vor.u32 %v6946_v50, %v5963_v6  ;;  %4307 = vmatpush.bf16.msrb.mxu0 %v5710_v30  ;;  %v4050_v6 = vadd.f32 %v4049_v23, %v4036_v1 }
 0x32a   :  { %v6251_v26 = vld [vmem:[#allocation8 + $0xd78] sm:$0xf0] }
 0x32b   :  { %v7082_v0 = vld [vmem:[#allocation8 + $0xf5c] sm:$0xf]  ;;  %v6254_v42 = vor.u32 %v7018_v21, %v6251_v26  ;;  %4321 = vmatpush.bf16.msrb.mxu1 %v5966_v55  ;;  %v4061_v26 = vpop.f32.mrf.mxu2 }
 0x32c   :  { %v6507_v48 = vld [vmem:[#allocation8 + $0xf78] sm:$0xf0]  ;;  %v4062_v60 = vadd.f32 %v4061_v26, %v4048_v56 }
 0x32d   :  { %v6874_v8 = vld [vmem:[#allocation8 + $0x8dc] sm:$0xf]  ;;  %v6510_v13 = vor.u32 %v7082_v0, %v6507_v48  ;;  %4334 = vmatpush.bf16.msrb.mxu2 %v6254_v42 }
 0x32e   :  { %v5675_v3 = vld [vmem:[#allocation8 + $0x8f8] sm:$0xf0] }
 0x32f   :  { %v6938_v45 = vld [vmem:[#allocation8 + $0xadc] sm:$0xf]  ;;  %v5678_v51 = vor.u32 %v6874_v8, %v5675_v3  ;;  %4348 = vmatpush.bf16.msrb.mxu3 %v6510_v13 }
 0x330   :  { %v5931_v38 = vld [vmem:[#allocation8 + $0xaf8] sm:$0xf0] }
 0x331   :  { %v7010_v4 = vld [vmem:[#allocation8 + $0xd1c] sm:$0xf]  ;;  %v5934_v59 = vor.u32 %v6938_v45, %v5931_v38  ;;  %4308 = vmatpush.bf16.msrb.mxu0 %v5678_v51  ;;  %v4076_v45 = vadd.f32 %v4075_v47, %v4062_v60  ;;  %v895_v47 = vperm.slane %v7587_v49, 7 }
 0x332   :  { %v6219_v58 = vld [vmem:[#allocation8 + $0xd38] sm:$0xf0] }
 0x333   :  { %v7074_v5 = vld [vmem:[#allocation8 + $0xf1c] sm:$0xf]  ;;  %v6222_v16 = vor.u32 %v7010_v4, %v6219_v58  ;;  %4322 = vmatpush.bf16.msrb.mxu1 %v5934_v59  ;;  %v4063_v51 = vpop.f32.mrf.mxu2  ;;  %v4077_v59 = vpop.f32.mrf.mxu3 }
 0x334   :  { %v6475_v63 = vld [vmem:[#allocation8 + $0xf38] sm:$0xf0] }
 0x335   :  { %v6866_v7 = vld [vmem:[#allocation8 + $0x89c] sm:$0xf]  ;;  %v6478_v27 = vor.u32 %v7074_v5, %v6475_v63  ;;  %4335 = vmatpush.bf16.msrb.mxu2 %v6222_v16  ;;  %v4064_v63 = vadd.f32 %v4063_v51, %v4050_v6  ;;  %v4103_v16 = vpop.f32.mrf.mxu1 }
 0x336   :  { %v5643_v35 = vld [vmem:[#allocation8 + $0x8b8] sm:$0xf0] }
 0x337   :  { %v6930_v33 = vld [vmem:[#allocation8 + $0xa9c] sm:$0xf]  ;;  %v5646_v19 = vor.u32 %v6866_v7, %v5643_v35  ;;  %4349 = vmatpush.bf16.msrb.mxu3 %v6478_v27  ;;  %v4078_v7 = vadd.f32 %v4077_v59, %v4064_v63  ;;  %v4089_v35 = vpop.f32.mrf.mxu0 }
 0x338   :  { %v5899_v57 = vld [vmem:[#allocation8 + $0xab8] sm:$0xf0]  ;;  %v4090_v56 = vadd.f32 %v4089_v35, %v4076_v45 }
 0x339   :  { %v7002_v15 = vld [vmem:[#allocation8 + $0xcdc] sm:$0xf]  ;;  %v5902_v44 = vor.u32 %v6930_v33, %v5899_v57  ;;  %4309 = vmatpush.bf16.msrb.mxu0 %v5646_v19 }
 0x33a   :  { %v6187_v31 = vld [vmem:[#allocation8 + $0xcf8] sm:$0xf0]  ;;  %v4104_v33 = vadd.f32 %v4103_v16, %v4090_v56 }
 0x33b   :  { %v7066_v53 = vld [vmem:[#allocation8 + $0xedc] sm:$0xf]  ;;  %v6190_v18 = vor.u32 %v7002_v15, %v6187_v31  ;;  %4323 = vmatpush.bf16.msrb.mxu1 %v5902_v44  ;;  %v4117_v27 = vpop.f32.mrf.mxu2 }
 0x33c   :  { %v6443_v24 = vld [vmem:[#allocation8 + $0xef8] sm:$0xf0]  ;;  %v4118_v15 = vadd.f32 %v4117_v27, %v4104_v33 }
 0x33d   :  { %v6858_v62 = vld [vmem:[#allocation8 + $0x85c] sm:$0xf]  ;;  %v6446_v10 = vor.u32 %v7066_v53, %v6443_v24  ;;  %4336 = vmatpush.bf16.msrb.mxu2 %v6190_v18  ;;  %v4105_v24 = vpop.f32.mrf.mxu1 }
 0x33e   :  { %v5611_v43 = vld [vmem:[#allocation8 + $0x878] sm:$0xf0] }
 0x33f   :  { %v6922_v20 = vld [vmem:[#allocation8 + $0xa5c] sm:$0xf]  ;;  %v5614_v37 = vor.u32 %v6858_v62, %v5611_v43  ;;  %4350 = vmatpush.bf16.msrb.mxu3 %v6446_v10  ;;  %v4091_v57 = vpop.f32.mrf.mxu0 }
 0x340   :  { %v5867_v22 = vld [vmem:[#allocation8 + $0xa78] sm:$0xf0]  ;;  %v4092_v31 = vadd.f32 %v4091_v57, %v4078_v7 }
 0x341   :  { %v6994_v29 = vld [vmem:[#allocation8 + $0xc9c] sm:$0xf]  ;;  %v5870_v52 = vor.u32 %v6922_v20, %v5867_v22  ;;  %4310 = vmatpush.bf16.msrb.mxu0 %v5614_v37 }
 0x342   :  { %v6155_v54 = vld [vmem:[#allocation8 + $0xcb8] sm:$0xf0]  ;;  %v4106_v44 = vadd.f32 %v4105_v24, %v4092_v31 }
 0x343   :  { %v7058_v9 = vld [vmem:[#allocation8 + $0xe9c] sm:$0xf]  ;;  %v6158_v17 = vor.u32 %v6994_v29, %v6155_v54  ;;  %4324 = vmatpush.bf16.msrb.mxu1 %v5870_v52  ;;  %v4119_v43 = vpop.f32.mrf.mxu2 }
 0x344   :  { %v6411_v12 = vld [vmem:[#allocation8 + $0xeb8] sm:$0xf0] }
 0x345   :  { %v6850_v36 = vld [vmem:[#allocation8 + $0x81c] sm:$0xf]  ;;  %v6414_v30 = vor.u32 %v7058_v9, %v6411_v12  ;;  %4337 = vmatpush.bf16.msrb.mxu2 %v6158_v17  ;;  %v4159_v54 = vpop.f32.mrf.mxu1  ;;  %v894_v17 = vperm.slane %v7587_v49, 6 }
 0x346   :  { %v5579_v50 = vld [vmem:[#allocation8 + $0x838] sm:$0xf0] }
 0x347   :  { %v6914_v41 = vld [vmem:[#allocation8 + $0xa1c] sm:$0xf]  ;;  %v5582_v55 = vor.u32 %v6850_v36, %v5579_v50  ;;  %4351 = vmatpush.bf16.msrb.mxu3 %v6414_v30  ;;  %v4145_v29 = vpop.f32.mrf.mxu0 }
 0x348   :  { %v5835_v21 = vld [vmem:[#allocation8 + $0xa38] sm:$0xf0] }
 0x349   :  { %v6986_v0 = vld [vmem:[#allocation8 + $0xc5c] sm:$0xf]  ;;  %v5838_v42 = vor.u32 %v6914_v41, %v5835_v21  ;;  %4311 = vmatpush.bf16.msrb.mxu0 %v5582_v55  ;;  %v4146_v21 = vadd.f32 %v4145_v29, %v894_v17 }
 0x34a   :  { %v6123_v48 = vld [vmem:[#allocation8 + $0xc78] sm:$0xf0] }
 0x34b   :  { %v7050_v8 = vld [vmem:[#allocation8 + $0xe5c] sm:$0xf]  ;;  %v6126_v38 = vor.u32 %v6986_v0, %v6123_v48  ;;  %4325 = vmatpush.bf16.msrb.mxu1 %v5838_v42  ;;  %v4160_v0 = vadd.f32 %v4159_v54, %v4146_v21 }
 0x34c   :  { %v6379_v3 = vld [vmem:[#allocation8 + $0xe78] sm:$0xf0]  ;;  %4312 = vmatmul.bf16.vlgmr.msrb.gmra.mxu0 %v7389_v25  ;;  %v4131_v25 = vpop.f32.mrf.mxu3 }
 0x34d   :  { %v6382_v11 = vor.u32 %v7050_v8, %v6379_v3  ;;  %v6978_v13 = vld [vmem:[#allocation8 + $0xc1c] sm:$0xf]  ;;  %4338 = vmatpush.bf16.msrb.mxu2 %v6126_v38  ;;  %v4132_v19 = vadd.f32 %v4131_v25, %v4118_v15  ;;  %v4161_v9 = vpop.f32.mrf.mxu1 }
 0x34e   :  { %v6091_v4 = vld [vmem:[#allocation8 + $0xc38] sm:$0xf0]  ;;  %4326 = vmatmul.bf16.vlgmr.msrb.gmra.mxu1 %v7391_v34  ;;  %v4383_v34 = vperm.slane %v7543_v40, 5  ;;  %v4173_v40 = vpop.f32.mrf.mxu2 }
 0x34f   :  { %v7042_v58 = vld [vmem:[#allocation8 + $0xe1c] sm:$0xf]  ;;  %v6094_v32 = vor.u32 %v6978_v13, %v6091_v4  ;;  %4352 = vmatpush.bf16.msrb.mxu3 %v6382_v11  ;;  %v4365_v53 = vmax.f32 %v4132_v19, 0.0  ;;  %v4147_v1 = vpop.f32.mrf.mxu0  ;;  %v4174_v48 = vadd.f32 %v4173_v40, %v4160_v0  ;;  %v7113_v0 = vld [vmem:[#allocation2] ss:$0 sm:$0xff] }
 0x350   :  { %v6347_v46 = vld [vmem:[#allocation8 + $0xe38] sm:$0xf0]  ;;  %v4148_v55 = vadd.f32 %v4147_v1, %v894_v17 }
 0x351   :  { %v6350_v5 = vor.u32 %v7042_v58, %v6347_v46  ;;  %4339 = vmatpush.bf16.msrb.mxu2 %v6094_v32  ;;  %v4399_v62 = vmul.f32 %v4383_v34, %v4365_v53 }
 0x352   :  { %v4162_v13 = vadd.f32 %v4161_v9, %v4148_v55 }
 0x353   :  { %4353 = vmatpush.bf16.msrb.mxu3 %v6350_v5 }
 0x354   :  { %4340 = vmatmul.bf16.vlgmr.msrb.gmra.mxu2 %v7395_v61  ;;  %v4120_v61 = vadd.f32 %v4119_v43, %v4106_v44  ;;  %v4133_v18 = vpop.f32.mrf.mxu3 }
 0x356   :  { %4354 = vmatmul.bf16.vlgmr.msrb.gmra.mxu3 %v7397_v2  ;;  %v7602_v2 = vadd.f32 %v7583_v39, %v4399_v62  ;;  %v4134_v20 = vadd.f32 %v4133_v18, %v4120_v61  ;;  %v4175_v23 = vpop.f32.mrf.mxu2 }
 0x357   :  { %v4176_v4 = vadd.f32 %v4175_v23, %v4162_v13 }
 0x358   :  { %v4373_v22 = vmax.f32 %v4134_v20, 0.0 }
 0x35a   :  { %v4407_v14 = vmul.f32 %v4383_v34, %v4373_v22  ;;  %v7125_v34 = vld [vmem:[#allocation11] sm:$0xff] }
 0x35b   :  { %v4384_v53 = vperm.slane %v7125_v34, 6  ;;  %v4385_v1 = vperm.slane %v7125_v34, 7 }
 0x35c   :  { %v7605_v10 = vadd.f32 %v7594_v28, %v4407_v14  ;;  %v4187_v37 = vpop.f32.mrf.mxu3 }
 0x35d   :  { %v4188_v8 = vadd.f32 %v4187_v37, %v4174_v48 }
 0x364   :  { %v4189_v52 = vpop.f32.mrf.mxu3 }
 0x365   :  { %v4190_v59 = vadd.f32 %v4189_v52, %v4176_v4 }
 0x36c   :  { %v4201_v12 = vpop.f32.mrf.mxu0 }
 0x36d   :  { %v4202_v11 = vadd.f32 %v4201_v12, %v4188_v8 }
 0x36e   :  { %v4215_v36 = vpop.f32.mrf.mxu1 }
 0x36f   :  { %v4216_v46 = vadd.f32 %v4215_v36, %v4202_v11 }
 0x374   :  { %v4203_v50 = vpop.f32.mrf.mxu0 }
 0x375   :  { %v4204_v56 = vadd.f32 %v4203_v50, %v4190_v59 }
 0x376   :  { %v4217_v41 = vpop.f32.mrf.mxu1 }
 0x377   :  { %v4218_v25 = vadd.f32 %v4217_v41, %v4204_v56 }
 0x37a   :  { %v4229_v39 = vpop.f32.mrf.mxu2 }
 0x37b   :  { %v4230_v5 = vadd.f32 %v4229_v39, %v4216_v46 }
 0x37c   :  { %v4243_v6 = vpop.f32.mrf.mxu3 }
 0x37d   :  { %v4244_v33 = vadd.f32 %v4243_v6, %v4230_v5 }
 0x37f   :  { %v4366_v19 = vmax.f32 %v4244_v33, 0.0 }
 0x381   :  { %v4400_v22 = vmul.f32 %v4384_v53, %v4366_v19 }
 0x382   :  { %v4231_v28 = vpop.f32.mrf.mxu2 }
 0x383   :  { %v4232_v24 = vadd.f32 %v4231_v28, %v4218_v25  ;;  %v4415_v52 = vadd.f32 %v7602_v2, %v4400_v22 }
 0x384   :  { %v4245_v30 = vpop.f32.mrf.mxu3 }
 0x385   :  { %v4246_v14 = vadd.f32 %v4245_v30, %v4232_v24 }
 0x387   :  { %v4374_v9 = vmax.f32 %v4246_v14, 0.0 }
 0x389   :  { %v4408_v17 = vmul.f32 %v4384_v53, %v4374_v9 }
 0x38b   :  { %v4424_v28 = vadd.f32 %v7605_v10, %v4408_v17 }
 0x38c   :  { %v4257_v26 = vpop.f32.mrf.mxu0 }
 0x38d   :  { %v4258_v45 = vadd.f32 %v4257_v26, %v895_v47 }
 0x38e   :  { %v4271_v60 = vpop.f32.mrf.mxu1 }
 0x38f   :  { %v4272_v58 = vadd.f32 %v4271_v60, %v4258_v45 }
 0x394   :  { %v4259_v3 = vpop.f32.mrf.mxu0 }
 0x395   :  { %v4260_v7 = vadd.f32 %v4259_v3, %v895_v47 }
 0x396   :  { %v4273_v32 = vpop.f32.mrf.mxu1 }
 0x397   :  { %v4274_v57 = vadd.f32 %v4273_v32, %v4260_v7 }
 0x39f   :  { %v4285_v42 = vpop.f32.mrf.mxu2 }
 0x3a0   :  { %v4286_v51 = vadd.f32 %v4285_v42, %v4272_v58 }
 0x3a1   :  { %v4299_v38 = vpop.f32.mrf.mxu3 }
 0x3a2   :  { %v4300_v49 = vadd.f32 %v4299_v38, %v4286_v51 }
 0x3a7   :  { %v4287_v35 = vpop.f32.mrf.mxu2 }
 0x3a8   :  { %v4288_v31 = vadd.f32 %v4287_v35, %v4274_v57 }
 0x3a9   :  { %v4301_v16 = vpop.f32.mrf.mxu3 }
 0x3aa   :  { %v4302_v61 = vadd.f32 %v4301_v16, %v4288_v31 }
 0x3c9   :  { %v4313_v63 = vpop.f32.mrf.mxu0 }
 0x3ca   :  { %v4314_v27 = vadd.f32 %v4313_v63, %v4300_v49 }
 0x3cb   :  { %v4327_v15 = vpop.f32.mrf.mxu1 }
 0x3cc   :  { %v4328_v44 = vadd.f32 %v4327_v15, %v4314_v27 }
 0x3d1   :  { %v4315_v62 = vpop.f32.mrf.mxu0 }
 0x3d2   :  { %v4316_v29 = vadd.f32 %v4315_v62, %v4302_v61 }
 0x3d3   :  { %v4329_v37 = vpop.f32.mrf.mxu1 }
 0x3d4   :  { %v4330_v12 = vadd.f32 %v4329_v37, %v4316_v29 }
 0x3d7   :  { %v4341_v43 = vpop.f32.mrf.mxu2 }
 0x3d8   :  { %v4342_v18 = vadd.f32 %v4341_v43, %v4328_v44 }
 0x3d9   :  { %v4355_v20 = vpop.f32.mrf.mxu3 }
 0x3da   :  { %v4356_v54 = vadd.f32 %v4355_v20, %v4342_v18 }
 0x3dc   :  { %v4367_v40 = vmax.f32 %v4356_v54, 0.0 }
 0x3de   :  { %v4401_v23 = vmul.f32 %v4385_v1, %v4367_v40 }
 0x3df   :  { %v4343_v36 = vpop.f32.mrf.mxu2 }
 0x3e0   :  { %v4344_v50 = vadd.f32 %v4343_v36, %v4330_v12  ;;  %v4416_v39 = vadd.f32 %v4415_v52, %v4401_v23 }
 0x3e1   :  { %v4357_v6 = vpop.f32.mrf.mxu3 }
 0x3e2   :  { %v4358_v41 = vadd.f32 %v4357_v6, %v4344_v50  ;;  %4417 = vadd.xlane.f32.xlu0 %v4416_v39 }
 0x3e4   :  { %v4375_v21 = vmax.f32 %v4358_v41, 0.0 }
 0x3e6   :  { %v4409_v26 = vmul.f32 %v4385_v1, %v4375_v21 }
 0x3e8   :  { %v4425_v30 = vadd.f32 %v4424_v28, %v4409_v26 }
 0x3ea   :  { %4426 = vadd.xlane.f32.xlu0 %v4425_v30 }
 0x455   :  { %v4418_v48 = vpop.xlane.xlu0 %4417 }
 0x456   :  { %v4432_v60 = vadd.f32 %v7113_v0, %v4418_v48 }
 0x458   :  { %v4434_v47 = vsub.f32 0.0, %v4432_v60 }
 0x45a   :  { %v4436_v55 = vmul.f32 1.442695, %v4434_v47 }
 0x45c   :  { %7114 = vpow2.f32 %v4436_v55 }
 0x45d   :  { %v4427_v2 = vpop.xlane.xlu0 %4426 }
 0x45e   :  { %v4433_v8 = vadd.f32 %v7113_v0, %v4427_v2 }
 0x460   :  { %v4435_v3 = vsub.f32 0.0, %v4433_v8 }
 0x462   :  { %v7115_v42 = vpop.eup %7114  ;;  %v4438_v45 = vmul.f32 1.442695, %v4435_v3 }
 0x463   :  { %v4440_v38 = vadd.f32 1.0, %v7115_v42 }
 0x464   :  { %7116 = vpow2.f32 %v4438_v45 }
 0x465   :  { %7118 = vrcp.f32 %v4440_v38 }
 0x46a   :  { %v7117_v11 = vpop.eup %7116 }
 0x46b   :  { %v7119_v13 = vpop.eup %7118  ;;  %v4441_v10 = vadd.f32 1.0, %v7117_v11 }
 0x46c   :  { %4445 = vst.msk [vmem:[%s7624_s7] sm:$0xff] %vm4444_vm1, %v7119_v13 }
 0x46d   :  { %7120 = vrcp.f32 %v4441_v10 }
 0x473   :  { %v7121_v4 = vpop.eup %7120 }
 0x474   :  { %4446 = vst.msk [vmem:[%s7624_s7 + $0x8] sm:$0xff] %vm4444_vm1, %v7121_v4 }
 0x475   :  { %4451 = vsyncpa [#allocation4], 1 }
 0x476   :  { %4452 = vsyncpa [#allocation6], 1 }
 0x477   :  { %4453 = vsyncpa [#allocation9], 1 }
 0x478   :  { %4454 = vsyncpa [#allocation12], 1 }

</bundles_post_ra>
